<compile_context>
chip_gen: v5e
topology: v5e:2x2
jax: 0.10.0
libtpu: 0.0.40
codegen_flags: <defaults>
</compile_context>

<pallas_src>
from functools import partial

import jax
import jax.numpy as jnp
import numpy as np
from jax import lax
from jax.experimental import pallas as pl
from jax.experimental.pallas import tpu as pltpu


# rows x 1024 channels x 4 B (f32 conv3 matmul output) <= 8 MiB
_MAX_ROWS_PER_STEP = 2048


# ----------------------------------------------------------------------------
# Pallas kernel: one (batch block, point chunk) tile per grid step.
# ----------------------------------------------------------------------------
def stn3d_kernel(x_ref,
                 w1_ref, b1_ref,
                 w2_ref, b2_ref,
                 w3_ref, b3_ref,
                 w4_ref, b4_ref,
                 w5_ref, b5_ref,
                 w6_ref, b6_ref,
                 o_ref,
                 gmax_ref,
                 *, n_valid, n_padded):
    k = pl.program_id(1)
    bt, _, nc = x_ref.shape
    m = bt * nc

    # x chunk: (Bt, 3, Nc) f32 -> bf16 (f32 accumulation below).
    x = x_ref[...].astype(jnp.bfloat16)

    # conv1 (1x1) + bn1 + relu: contract the channel axis of the NCL tile.
    # (K=3 matmul; kept on the proven dot_general path — see header note.)
    h = lax.dot_general(x, w1_ref[...], (((1,), (0,)), ((), ())),
                        preferred_element_type=jnp.float32)          # (Bt, Nc, 64)
    h = jnp.maximum(h + b1_ref[...], 0.0).astype(jnp.bfloat16)
    # Merge leading dims (layout-free: nc % 128 == 0) -> one long-M matmul.
    h = h.reshape(m, 64)

    # conv2 (1x1) + bn2 + relu -> (M, 128)
    h = jnp.dot(h, w2_ref[...], preferred_element_type=jnp.float32)
    h = jnp.maximum(h + b2_ref[...], 0.0).astype(jnp.bfloat16)

    # conv3 (1x1) raw matmul -> (M, 1024) f32.  bias+relu hoisted past the max.
    h = jnp.dot(h, w3_ref[...], preferred_element_type=jnp.float32)
    h = h.reshape(bt, nc, 1024)

    if n_valid < n_padded:
        # Padded point columns must not win the max: additive -inf mask.
        # (Static Python branch: only traced when the wrapper actually padded.)
        col = k * nc + lax.broadcasted_iota(jnp.int32, (1, nc, 1), 1)
        h = h + jnp.where(col < n_valid,
                          jnp.float32(0.0), jnp.float32(-jnp.inf))

    # MaxPool1d(num_points), chunked: running max over point chunks.
    chunk_max = jnp.max(h, axis=1)                                   # (Bt, 1024)

    @pl.when(k == 0)
    def _():
        gmax_ref[...] = chunk_max

    @pl.when(k > 0)
    def _():
        gmax_ref[...] = jnp.maximum(gmax_ref[...], chunk_max)

    # fc stage once per batch block, after the last point chunk.
    @pl.when(k == pl.num_programs(1) - 1)
    def _():
        # conv3 bias + relu applied once to the pooled max (commutes with max).
        g = jnp.maximum(gmax_ref[...] + b3_ref[...], 0.0).astype(jnp.bfloat16)
        # fc1 + bn4 + relu -> (Bt, 512)
        f = jnp.dot(g, w4_ref[...], preferred_element_type=jnp.float32) + b4_ref[...]
        f = jnp.maximum(f, 0.0).astype(jnp.bfloat16)
        # fc2 + bn5 + relu -> (Bt, 256)
        f = jnp.dot(f, w5_ref[...], preferred_element_type=jnp.float32) + b5_ref[...]
        f = jnp.maximum(f, 0.0).astype(jnp.bfloat16)
        # fc3 (output padded to 128 lanes; 3x3 identity folded into its bias)
        out = jnp.dot(f, w6_ref[...], preferred_element_type=jnp.float32) + b6_ref[...]
        o_ref[...] = out                                             # lane-dense store


# ----------------------------------------------------------------------------
# Wrapper: tiling heuristics, BlockSpecs / grid, final slice + reshape.
# ----------------------------------------------------------------------------
def stn3d_forward(x_ncl, flat_params, *, block_b=None, n_chunk=None):
    B, C_in, N = x_ncl.shape
    assert C_in == 3
    x = x_ncl.astype(jnp.float32)          # keep PyTorch NCL layout; no HBM transpose

    # Batch block: 8 rows per step (>= 2 "parallel" blocks when B >= 16, so both
    # v7x TensorCores get work); small/odd batches use a single full-B block so
    # the (block_b, 128) output block stays legal (== full dim or multiple of 8).
    if block_b is None:
        block_b = 8 if (B % 8 == 0 and B >= 16) else B
    assert B % block_b == 0
    assert block_b == B or block_b % 8 == 0

    # Point chunk: multiple of 128, sized so block_b * n_chunk <= 2048 rows
    # (conv3 f32 intermediate <= 8 MiB — fits every generation incl. v7x).
    if n_chunk is None:
        cap_rows = max(128, (_MAX_ROWS_PER_STEP // block_b) // 128 * 128)
        n_chunk = min(512, cap_rows, max(128, pl.cdiv(N, 128) * 128))
    assert n_chunk % 128 == 0

    # Pad ragged N; padded columns are masked to -inf inside the kernel.
    n_padded = pl.cdiv(N, n_chunk) * n_chunk
    if n_padded != N:
        x = jnp.pad(x, ((0, 0), (0, 0), (0, n_padded - N)))

    grid = (B // block_b, n_padded // n_chunk)

    def const_spec(arr):
        nd = arr.ndim
        return pl.BlockSpec(arr.shape, lambda i, k, _nd=nd: (0,) * _nd)

    in_specs = [pl.BlockSpec((block_b, 3, n_chunk), lambda i, k: (i, 0, k))]
    in_specs += [const_spec(p) for p in flat_params]
    out_specs = pl.BlockSpec((block_b, 128), lambda i, k: (i, 0))

    kernel = partial(stn3d_kernel, n_valid=N, n_padded=n_padded)

    out = pl.pallas_call(
        kernel,
        out_shape=jax.ShapeDtypeStruct((B, 128), jnp.float32),
        grid_spec=pltpu.PrefetchScalarGridSpec(
            num_scalar_prefetch=0,
            grid=grid,
            in_specs=in_specs,
            out_specs=out_specs,
            scratch_shapes=[pltpu.VMEM((block_b, 1024), jnp.float32)],
        ),
        compiler_params=pltpu.CompilerParams(
            dimension_semantics=("parallel", "arbitrary"),
            vmem_limit_bytes=40 * 1024 * 1024),
    )(x, *flat_params)

    return out[:, :9].reshape(B, 3, 3)


# ----------------------------------------------------------------------------
# Deterministic parameter construction (synthetic init, BN folded, bf16 weights,
# fc3 padded to 128 outputs with the 3x3 identity folded into its bias).
# ----------------------------------------------------------------------------
def make_params(key):
    eps = 1e-5
    dims = [(3, 64), (64, 128), (128, 1024), (1024, 512), (512, 256), (256, 9)]
    has_bn = [True, True, True, True, True, False]
    flat = []
    keys = jax.random.split(key, len(dims) * 6)
    ki = 0
    for li, ((cin, cout), bn) in enumerate(zip(dims, has_bn)):
        W = jax.random.normal(keys[ki], (cin, cout), jnp.float32) * 0.05; ki += 1
        b = jax.random.normal(keys[ki], (cout,), jnp.float32) * 0.05;     ki += 1
        if bn:
            gamma = 1.0 + 0.1 * jax.random.normal(keys[ki], (cout,), jnp.float32); ki += 1
            beta = 0.1 * jax.random.normal(keys[ki], (cout,), jnp.float32);        ki += 1
            mean = 0.1 * jax.random.normal(keys[ki], (cout,), jnp.float32);        ki += 1
            var = jnp.abs(jax.random.normal(keys[ki], (cout,), jnp.float32)) + 0.5; ki += 1
            scale = gamma / jnp.sqrt(var + eps)
            W = W * scale[None, :]
            b = (b - mean) * scale + beta
        else:
            ki += 4
        if li == len(dims) - 1:
            # fc3: pad 9 -> 128 output lanes; fold the flattened 3x3 identity
            # into the bias (lane-dense final store; no captured constants).
            Wp = jnp.zeros((cin, 128), jnp.float32).at[:, :9].set(W)
            iden = jnp.zeros((128,), jnp.float32).at[jnp.array([0, 4, 8])].set(1.0)
            bp = jnp.zeros((128,), jnp.float32).at[:9].set(b) + iden
            W, b = Wp, bp
        flat.append(W.astype(jnp.bfloat16))
        flat.append(b.reshape(1, -1).astype(jnp.float32))
    return flat


# ----------------------------------------------------------------------------
# Pure-JAX reference (same folded/padded bf16 params) for a correctness check.
# ----------------------------------------------------------------------------
def stn3d_ref(x_ncl, p):
    w1, b1, w2, b2, w3, b3, w4, b4, w5, b5, w6, b6 = p
    x = x_ncl.astype(jnp.bfloat16)                                 # (B, 3, N)
    h = lax.dot_general(x, w1, (((1,), (0,)), ((), ())),
                        preferred_element_type=jnp.float32) + b1   # (B, N, 64)
    h = jnp.maximum(h, 0.0).astype(jnp.bfloat16)
    h = lax.dot_general(h, w2, (((2,), (0,)), ((), ())),
                        preferred_element_type=jnp.float32) + b2
    h = jnp.maximum(h, 0.0).astype(jnp.bfloat16)
    h = lax.dot_general(h, w3, (((2,), (0,)), ((), ())),
                        preferred_element_type=jnp.float32) + b3
    h = jnp.maximum(h, 0.0)                                        # (B, N, 1024) f32
    g = jnp.max(h, axis=1).astype(jnp.bfloat16)                    # (B, 1024)
    f = jnp.dot(g, w4, preferred_element_type=jnp.float32) + b4
    f = jnp.maximum(f, 0.0).astype(jnp.bfloat16)
    f = jnp.dot(f, w5, preferred_element_type=jnp.float32) + b5
    f = jnp.maximum(f, 0.0).astype(jnp.bfloat16)
    out = jnp.dot(f, w6, preferred_element_type=jnp.float32) + b6
    return out[:, :9].reshape(-1, 3, 3)


if __name__ == "__main__":
    key = jax.random.PRNGKey(0)
    kx1, kx2, kp = jax.random.split(key, 3)
    params = make_params(kp)

    # Test 1: multi-chunk running-max / pl.when reduction path.
    # B=2, N=256, two 128-point chunks; input in PyTorch NCL layout.
    B1, N1 = 2, 256
    x1 = jax.random.normal(kx1, (B1, 3, N1), jnp.float32)
    out1 = jax.block_until_ready(stn3d_forward(x1, params, n_chunk=128))
    ref1 = stn3d_ref(x1, params)
    assert out1.shape == (B1, 3, 3)
    np.testing.assert_allclose(np.asarray(out1), np.asarray(ref1),
                               rtol=2e-2, atol=2e-2)

    # Test 2: batch blocking (two "parallel" batch blocks) + ragged N
    # (200 points padded to 256, padded columns masked before the max).
    B2, N2 = 16, 200
    x2 = jax.random.normal(kx2, (B2, 3, N2), jnp.float32)
    out2 = jax.block_until_ready(stn3d_forward(x2, params))
    ref2 = stn3d_ref(x2, params)
    assert out2.shape == (B2, 3, 3)
    np.testing.assert_allclose(np.asarray(out2), np.asarray(ref2),
                               rtol=2e-2, atol=2e-2)

    print("KERNEL_OK")
</pallas_src>

<mosaic_0001>
module attributes {stable_mosaic.version = 11 : i64} {
  func.func @stn3d_kernel(%arg0: i32, %arg1: i32, %arg2: memref<2x3x128xf32, #tpu.memory_space<vmem>>, %arg3: memref<3x64xbf16, #tpu.memory_space<vmem>>, %arg4: memref<1x64xf32, #tpu.memory_space<vmem>>, %arg5: memref<64x128xbf16, #tpu.memory_space<vmem>>, %arg6: memref<1x128xf32, #tpu.memory_space<vmem>>, %arg7: memref<128x1024xbf16, #tpu.memory_space<vmem>>, %arg8: memref<1x1024xf32, #tpu.memory_space<vmem>>, %arg9: memref<1024x512xbf16, #tpu.memory_space<vmem>>, %arg10: memref<1x512xf32, #tpu.memory_space<vmem>>, %arg11: memref<512x256xbf16, #tpu.memory_space<vmem>>, %arg12: memref<1x256xf32, #tpu.memory_space<vmem>>, %arg13: memref<256x128xbf16, #tpu.memory_space<vmem>>, %arg14: memref<1x128xf32, #tpu.memory_space<vmem>>, %arg15: memref<2x128xf32, #tpu.memory_space<vmem>>, %arg16: memref<2x1024xf32, #tpu.memory_space<vmem>>) attributes {dimension_semantics = [#tpu.dimension_semantics<parallel>, #tpu.dimension_semantics<arbitrary>], iteration_bounds = array<i64: 1, 2>, scalar_prefetch = 0 : i64, scratch_operands = 1 : i64, tpu.core_type = #tpu.core_type<tc>, window_params = [{transform_indices = @transform_0, window_bounds = array<i64: 2, 3, 128>}, {pipeline_mode = #tpu.pipeline_mode<synchronous>, transform_indices = @transform_1, window_bounds = array<i64: 3, 64>}, {pipeline_mode = #tpu.pipeline_mode<synchronous>, transform_indices = @transform_2, window_bounds = array<i64: 1, 64>}, {pipeline_mode = #tpu.pipeline_mode<synchronous>, transform_indices = @transform_3, window_bounds = array<i64: 64, 128>}, {pipeline_mode = #tpu.pipeline_mode<synchronous>, transform_indices = @transform_4, window_bounds = array<i64: 1, 128>}, {pipeline_mode = #tpu.pipeline_mode<synchronous>, transform_indices = @transform_5, window_bounds = array<i64: 128, 1024>}, {pipeline_mode = #tpu.pipeline_mode<synchronous>, transform_indices = @transform_6, window_bounds = array<i64: 1, 1024>}, {pipeline_mode = #tpu.pipeline_mode<synchronous>, transform_indices = @transform_7, window_bounds = array<i64: 1024, 512>}, {pipeline_mode = #tpu.pipeline_mode<synchronous>, transform_indices = @transform_8, window_bounds = array<i64: 1, 512>}, {pipeline_mode = #tpu.pipeline_mode<synchronous>, transform_indices = @transform_9, window_bounds = array<i64: 512, 256>}, {pipeline_mode = #tpu.pipeline_mode<synchronous>, transform_indices = @transform_10, window_bounds = array<i64: 1, 256>}, {pipeline_mode = #tpu.pipeline_mode<synchronous>, transform_indices = @transform_11, window_bounds = array<i64: 256, 128>}, {pipeline_mode = #tpu.pipeline_mode<synchronous>, transform_indices = @transform_12, window_bounds = array<i64: 1, 128>}, {transform_indices = @transform_13, window_bounds = array<i64: 2, 128>}]} {
    %c0 = arith.constant 0 : index
    %c0_0 = arith.constant 0 : index
    %c0_1 = arith.constant 0 : index
    %0 = vector.load %arg2[%c0, %c0_0, %c0_1] : memref<2x3x128xf32, #tpu.memory_space<vmem>>, vector<2x3x128xf32>
    %1 = arith.truncf %0 : vector<2x3x128xf32> to vector<2x3x128xbf16>
    %c0_2 = arith.constant 0 : index
    %c0_3 = arith.constant 0 : index
    %2 = vector.load %arg3[%c0_2, %c0_3] : memref<3x64xbf16, #tpu.memory_space<vmem>>, vector<3x64xbf16>
    %cst = arith.constant dense<0.000000e+00> : vector<2x128x64xf32>
    %3 = tpu.matmul %1, %2, %cst {dimension_numbers = #tpu.dot_dimension_numbers<[1], [0], [0, 2], [1], [0, 0, 0, 2, 1, 1], [], []>} : vector<2x3x128xbf16>, vector<3x64xbf16>, vector<2x128x64xf32> -> vector<2x128x64xf32>
    %c0_4 = arith.constant 0 : index
    %c0_5 = arith.constant 0 : index
    %4 = vector.load %arg4[%c0_4, %c0_5] : memref<1x64xf32, #tpu.memory_space<vmem>>, vector<1x64xf32>
    %5 = vector.shape_cast %4 : vector<1x64xf32> to vector<1x1x64xf32>
    %6 = vector.broadcast %5 : vector<1x1x64xf32> to vector<2x128x64xf32>
    %7 = arith.addf %3, %6 : vector<2x128x64xf32>
    %cst_6 = arith.constant 0.000000e+00 : f32
    %8 = vector.broadcast %cst_6 : f32 to vector<2x128x64xf32>
    %9 = arith.maximumf %7, %8 : vector<2x128x64xf32>
    %10 = arith.truncf %9 : vector<2x128x64xf32> to vector<2x128x64xbf16>
    %11 = vector.shape_cast %10 : vector<2x128x64xbf16> to vector<256x64xbf16>
    %c0_7 = arith.constant 0 : index
    %c0_8 = arith.constant 0 : index
    %12 = vector.load %arg5[%c0_7, %c0_8] : memref<64x128xbf16, #tpu.memory_space<vmem>>, vector<64x128xbf16>
    %cst_9 = arith.constant dense<0.000000e+00> : vector<256x128xf32>
    %13 = tpu.matmul %11, %12, %cst_9 {dimension_numbers = #tpu.dot_dimension_numbers<[1], [0], [0], [1], [0, 0, 1, 1], [], []>} : vector<256x64xbf16>, vector<64x128xbf16>, vector<256x128xf32> -> vector<256x128xf32>
    %c0_10 = arith.constant 0 : index
    %c0_11 = arith.constant 0 : index
    %14 = vector.load %arg6[%c0_10, %c0_11] : memref<1x128xf32, #tpu.memory_space<vmem>>, vector<1x128xf32>
    %15 = vector.broadcast %14 : vector<1x128xf32> to vector<256x128xf32>
    %16 = arith.addf %13, %15 : vector<256x128xf32>
    %cst_12 = arith.constant 0.000000e+00 : f32
    %17 = vector.broadcast %cst_12 : f32 to vector<256x128xf32>
    %18 = arith.maximumf %16, %17 : vector<256x128xf32>
    %19 = arith.truncf %18 : vector<256x128xf32> to vector<256x128xbf16>
    %c0_13 = arith.constant 0 : index
    %c0_14 = arith.constant 0 : index
    %20 = vector.load %arg7[%c0_13, %c0_14] : memref<128x1024xbf16, #tpu.memory_space<vmem>>, vector<128x1024xbf16>
    %cst_15 = arith.constant dense<0.000000e+00> : vector<256x1024xf32>
    %21 = tpu.matmul %19, %20, %cst_15 {dimension_numbers = #tpu.dot_dimension_numbers<[1], [0], [0], [1], [0, 0, 1, 1], [], []>} : vector<256x128xbf16>, vector<128x1024xbf16>, vector<256x1024xf32> -> vector<256x1024xf32>
    %22 = vector.shape_cast %21 : vector<256x1024xf32> to vector<2x128x1024xf32>
    %cst_16 = arith.constant dense<0xFF800000> : vector<2x1024xf32>
    %23 = vector.multi_reduction <maximumf>, %22, %cst_16 [1] : vector<2x128x1024xf32> to vector<2x1024xf32>
    %c0_i32 = arith.constant 0 : i32
    %24 = arith.cmpi eq, %arg1, %c0_i32 : i32
    %25 = arith.extui %24 : i1 to i32
    %c0_i32_17 = arith.constant 0 : i32
    %26 = arith.cmpi ne, %25, %c0_i32_17 : i32
    scf.if %26 {
      %c0_21 = arith.constant 0 : index
      %c0_22 = arith.constant 0 : index
      %33 = vector.load %arg16[%c0_21, %c0_22] : memref<2x1024xf32, #tpu.memory_space<vmem>>, vector<2x1024xf32>
      tpu.vector_store %arg16[%c0_21, %c0_22], %23 {strides = array<i32>} : memref<2x1024xf32, #tpu.memory_space<vmem>>, vector<2x1024xf32>,
    } else {
    }
    %c0_i32_18 = arith.constant 0 : i32
    %27 = arith.cmpi sgt, %arg1, %c0_i32_18 : i32
    %28 = arith.extui %27 : i1 to i32
    %c0_i32_19 = arith.constant 0 : i32
    %29 = arith.cmpi ne, %28, %c0_i32_19 : i32
    scf.if %29 {
      %c0_21 = arith.constant 0 : index
      %c0_22 = arith.constant 0 : index
      %33 = vector.load %arg16[%c0_21, %c0_22] : memref<2x1024xf32, #tpu.memory_space<vmem>>, vector<2x1024xf32>
      %34 = arith.maximumf %33, %23 : vector<2x1024xf32>
      %c0_23 = arith.constant 0 : index
      %c0_24 = arith.constant 0 : index
      %35 = vector.load %arg16[%c0_23, %c0_24] : memref<2x1024xf32, #tpu.memory_space<vmem>>, vector<2x1024xf32>
      tpu.vector_store %arg16[%c0_23, %c0_24], %34 {strides = array<i32>} : memref<2x1024xf32, #tpu.memory_space<vmem>>, vector<2x1024xf32>,
    } else {
    }
    %c1_i32 = arith.constant 1 : i32
    %30 = arith.cmpi eq, %arg1, %c1_i32 : i32
    %31 = arith.extui %30 : i1 to i32
    %c0_i32_20 = arith.constant 0 : i32
    %32 = arith.cmpi ne, %31, %c0_i32_20 : i32
    scf.if %32 {
      %c0_21 = arith.constant 0 : index
      %c0_22 = arith.constant 0 : index
      %33 = vector.load %arg16[%c0_21, %c0_22] : memref<2x1024xf32, #tpu.memory_space<vmem>>, vector<2x1024xf32>
      %c0_23 = arith.constant 0 : index
      %c0_24 = arith.constant 0 : index
      %34 = vector.load %arg8[%c0_23, %c0_24] : memref<1x1024xf32, #tpu.memory_space<vmem>>, vector<1x1024xf32>
      %35 = vector.broadcast %34 : vector<1x1024xf32> to vector<2x1024xf32>
      %36 = arith.addf %33, %35 : vector<2x1024xf32>
      %cst_25 = arith.constant 0.000000e+00 : f32
      %37 = vector.broadcast %cst_25 : f32 to vector<2x1024xf32>
      %38 = arith.maximumf %36, %37 : vector<2x1024xf32>
      %39 = arith.truncf %38 : vector<2x1024xf32> to vector<2x1024xbf16>
      %c0_26 = arith.constant 0 : index
      %c0_27 = arith.constant 0 : index
      %40 = vector.load %arg9[%c0_26, %c0_27] : memref<1024x512xbf16, #tpu.memory_space<vmem>>, vector<1024x512xbf16>
      %cst_28 = arith.constant dense<0.000000e+00> : vector<2x512xf32>
      %41 = tpu.matmul %39, %40, %cst_28 {dimension_numbers = #tpu.dot_dimension_numbers<[1], [0], [0], [1], [0, 0, 1, 1], [], []>} : vector<2x1024xbf16>, vector<1024x512xbf16>, vector<2x512xf32> -> vector<2x512xf32>
      %c0_29 = arith.constant 0 : index
      %c0_30 = arith.constant 0 : index
      %42 = vector.load %arg10[%c0_29, %c0_30] : memref<1x512xf32, #tpu.memory_space<vmem>>, vector<1x512xf32>
      %43 = vector.broadcast %42 : vector<1x512xf32> to vector<2x512xf32>
      %44 = arith.addf %41, %43 : vector<2x512xf32>
      %cst_31 = arith.constant 0.000000e+00 : f32
      %45 = vector.broadcast %cst_31 : f32 to vector<2x512xf32>
      %46 = arith.maximumf %44, %45 : vector<2x512xf32>
      %47 = arith.truncf %46 : vector<2x512xf32> to vector<2x512xbf16>
      %c0_32 = arith.constant 0 : index
      %c0_33 = arith.constant 0 : index
      %48 = vector.load %arg11[%c0_32, %c0_33] : memref<512x256xbf16, #tpu.memory_space<vmem>>, vector<512x256xbf16>
      %cst_34 = arith.constant dense<0.000000e+00> : vector<2x256xf32>
      %49 = tpu.matmul %47, %48, %cst_34 {dimension_numbers = #tpu.dot_dimension_numbers<[1], [0], [0], [1], [0, 0, 1, 1], [], []>} : vector<2x512xbf16>, vector<512x256xbf16>, vector<2x256xf32> -> vector<2x256xf32>
      %c0_35 = arith.constant 0 : index
      %c0_36 = arith.constant 0 : index
      %50 = vector.load %arg12[%c0_35, %c0_36] : memref<1x256xf32, #tpu.memory_space<vmem>>, vector<1x256xf32>
      %51 = vector.broadcast %50 : vector<1x256xf32> to vector<2x256xf32>
      %52 = arith.addf %49, %51 : vector<2x256xf32>
      %cst_37 = arith.constant 0.000000e+00 : f32
      %53 = vector.broadcast %cst_37 : f32 to vector<2x256xf32>
      %54 = arith.maximumf %52, %53 : vector<2x256xf32>
      %55 = arith.truncf %54 : vector<2x256xf32> to vector<2x256xbf16>
      %c0_38 = arith.constant 0 : index
      %c0_39 = arith.constant 0 : index
      %56 = vector.load %arg13[%c0_38, %c0_39] : memref<256x128xbf16, #tpu.memory_space<vmem>>, vector<256x128xbf16>
      %cst_40 = arith.constant dense<0.000000e+00> : vector<2x128xf32>
      %57 = tpu.matmul %55, %56, %cst_40 {dimension_numbers = #tpu.dot_dimension_numbers<[1], [0], [0], [1], [0, 0, 1, 1], [], []>} : vector<2x256xbf16>, vector<256x128xbf16>, vector<2x128xf32> -> vector<2x128xf32>
      %c0_41 = arith.constant 0 : index
      %c0_42 = arith.constant 0 : index
      %58 = vector.load %arg14[%c0_41, %c0_42] : memref<1x128xf32, #tpu.memory_space<vmem>>, vector<1x128xf32>
      %59 = vector.broadcast %58 : vector<1x128xf32> to vector<2x128xf32>
      %60 = arith.addf %57, %59 : vector<2x128xf32>
      %c0_43 = arith.constant 0 : index
      %c0_44 = arith.constant 0 : index
      %61 = vector.load %arg15[%c0_43, %c0_44] : memref<2x128xf32, #tpu.memory_space<vmem>>, vector<2x128xf32>
      tpu.vector_store %arg15[%c0_43, %c0_44], %60 {strides = array<i32>} : memref<2x128xf32, #tpu.memory_space<vmem>>, vector<2x128xf32>,
    } else {
    }
    return
  }
  func.func @transform_0(%arg0: i32, %arg1: i32) -> (i32, i32, i32) {
    %c0_i32 = arith.constant 0 : i32
    %c0_i32_0 = arith.constant 0 : i32
    return %arg0, %c0_i32, %arg1 : i32, i32, i32
  }
  func.func @transform_1(%arg0: i32, %arg1: i32) -> (i32, i32) {
    %c0_i32 = arith.constant 0 : i32
    %c0_i32_0 = arith.constant 0 : i32
    %c0_i32_1 = arith.constant 0 : i32
    return %c0_i32, %c0_i32_0 : i32, i32
  }
  func.func @transform_2(%arg0: i32, %arg1: i32) -> (i32, i32) {
    %c0_i32 = arith.constant 0 : i32
    %c0_i32_0 = arith.constant 0 : i32
    %c0_i32_1 = arith.constant 0 : i32
    return %c0_i32, %c0_i32_0 : i32, i32
  }
  func.func @transform_3(%arg0: i32, %arg1: i32) -> (i32, i32) {
    %c0_i32 = arith.constant 0 : i32
    %c0_i32_0 = arith.constant 0 : i32
    %c0_i32_1 = arith.constant 0 : i32
    return %c0_i32, %c0_i32_0 : i32, i32
  }
  func.func @transform_4(%arg0: i32, %arg1: i32) -> (i32, i32) {
    %c0_i32 = arith.constant 0 : i32
    %c0_i32_0 = arith.constant 0 : i32
    %c0_i32_1 = arith.constant 0 : i32
    return %c0_i32, %c0_i32_0 : i32, i32
  }
  func.func @transform_5(%arg0: i32, %arg1: i32) -> (i32, i32) {
    %c0_i32 = arith.constant 0 : i32
    %c0_i32_0 = arith.constant 0 : i32
    %c0_i32_1 = arith.constant 0 : i32
    return %c0_i32, %c0_i32_0 : i32, i32
  }
  func.func @transform_6(%arg0: i32, %arg1: i32) -> (i32, i32) {
    %c0_i32 = arith.constant 0 : i32
    %c0_i32_0 = arith.constant 0 : i32
    %c0_i32_1 = arith.constant 0 : i32
    return %c0_i32, %c0_i32_0 : i32, i32
  }
  func.func @transform_7(%arg0: i32, %arg1: i32) -> (i32, i32) {
    %c0_i32 = arith.constant 0 : i32
    %c0_i32_0 = arith.constant 0 : i32
    %c0_i32_1 = arith.constant 0 : i32
    return %c0_i32, %c0_i32_0 : i32, i32
  }
  func.func @transform_8(%arg0: i32, %arg1: i32) -> (i32, i32) {
    %c0_i32 = arith.constant 0 : i32
    %c0_i32_0 = arith.constant 0 : i32
    %c0_i32_1 = arith.constant 0 : i32
    return %c0_i32, %c0_i32_0 : i32, i32
  }
  func.func @transform_9(%arg0: i32, %arg1: i32) -> (i32, i32) {
    %c0_i32 = arith.constant 0 : i32
    %c0_i32_0 = arith.constant 0 : i32
    %c0_i32_1 = arith.constant 0 : i32
    return %c0_i32, %c0_i32_0 : i32, i32
  }
  func.func @transform_10(%arg0: i32, %arg1: i32) -> (i32, i32) {
    %c0_i32 = arith.constant 0 : i32
    %c0_i32_0 = arith.constant 0 : i32
    %c0_i32_1 = arith.constant 0 : i32
    return %c0_i32, %c0_i32_0 : i32, i32
  }
  func.func @transform_11(%arg0: i32, %arg1: i32) -> (i32, i32) {
    %c0_i32 = arith.constant 0 : i32
    %c0_i32_0 = arith.constant 0 : i32
    %c0_i32_1 = arith.constant 0 : i32
    return %c0_i32, %c0_i32_0 : i32, i32
  }
  func.func @transform_12(%arg0: i32, %arg1: i32) -> (i32, i32) {
    %c0_i32 = arith.constant 0 : i32
    %c0_i32_0 = arith.constant 0 : i32
    %c0_i32_1 = arith.constant 0 : i32
    return %c0_i32, %c0_i32_0 : i32, i32
  }
  func.func @transform_13(%arg0: i32, %arg1: i32) -> (i32, i32) {
    %c0_i32 = arith.constant 0 : i32
    %c0_i32_0 = arith.constant 0 : i32
    return %arg0, %c0_i32 : i32, i32
  }
}

</mosaic_0001>

<bundles_post_ra>
// kernel: tpu_custom_call.1
= control target key start
LH: loop header
LB: loop body
LE: loop exit
PB: predicated region body
PF: predicated region fallthrough
CT: control target
= control target key end

     0   :  { %s8714_s0 = inlined_call_operand.vmem [shape: f32[2,3,256], index: 0, kind: input, shape index: {}]   ;;  %s8715_s1 = inlined_call_operand.vmem [shape: bf16[3,64], index: 1, kind: input, shape index: {}]   ;;  %s8716_s2 = inlined_call_operand.vmem [shape: f32[1,64], index: 2, kind: input, shape index: {}]   ;;  %s8717_s3 = inlined_call_operand.hbm [shape: bf16[64,128], index: 3, kind: input, shape index: {}]   ;;  %s8718_s4 = inlined_call_operand.vmem [shape: f32[1,128], index: 4, kind: input, shape index: {}]   ;;  %s8719_s5 = inlined_call_operand.hbm [shape: bf16[128,1024], index: 5, kind: input, shape index: {}]   ;;  %s8720_s6 = inlined_call_operand.vmem [shape: f32[1,1024], index: 6, kind: input, shape index: {}]   ;;  %s8721_s7 = inlined_call_operand.hbm [shape: bf16[1024,512], index: 7, kind: input, shape index: {}]   ;;  %s8722_s8 = inlined_call_operand.vmem [shape: f32[1,512], index: 8, kind: input, shape index: {}]   ;;  %s8723_s9 = inlined_call_operand.hbm [shape: bf16[512,256], index: 9, kind: input, shape index: {}]   ;;  %s8724_s10 = inlined_call_operand.vmem [shape: f32[1,256], index: 10, kind: input, shape index: {}]   ;;  %s8725_s11 = inlined_call_operand.hbm [shape: bf16[256,128], index: 11, kind: input, shape index: {}]   ;;  %s8726_s12 = inlined_call_operand.vmem [shape: f32[1,128], index: 12, kind: input, shape index: {}]   ;;  %s8727_s13 = inlined_call_operand.hbm [shape: f32[2,128], index: 13, kind: output, shape index: {}]  }
   0x1   :  { %8731 = sst [smem:[#allocation20_spill]] %s8717_s3 }
   0x2   :  { %8732 = sst [smem:[#allocation21_spill]] %s8719_s5 }
   0x3   :  { %8733 = sst [smem:[#allocation22_spill]] %s8720_s6 }
   0x4   :  { %8734 = sst [smem:[#allocation23_spill]] %s8722_s8 }
   0x5   :  { %8735 = sst [smem:[#allocation24_spill]] %s8723_s9 }
   0x6   :  { %8736 = sst [smem:[#allocation25_spill]] %s8724_s10 }
   0x7   :  { %8737 = sst [smem:[#allocation26_spill]] %s8726_s12 }
   0x8   :  { %8738 = sst [smem:[#allocation27_spill]] %s8727_s13 }
   0x9   :  { %18 = vsyncpa [#allocation5], 0 }
   0xa   :  { %19 = vsyncpa [#allocation8], 0 }
   0xb   :  { %20 = vsyncpa [#allocation11], 0 }
   0xc   :  { %21 = vsyncpa [#allocation6], 0  ;;  %s8057_s25 = smov 0   ;;  %s8059_s26 = smov 0  }
   0xd   :  { %s8061_s27 = smov 0   ;;  %s8063_s28 = smov 0  }
   0xe   :  { %s8065_s29 = smov 0  }
   0xf LB: > { %s8728_s30 = sadd.s32 4294967295, %s7970_s29   ;;  %s36_s14 = sadd.s32 1, %s7966_s28  ;;  %s7970_s29 = sphi %s8065_s29, %s27_s29   ;;  %s7966_s28 = sphi %s8063_s28, %s8759_s28   ;;  %s7962_s27 = sphi %s8061_s27, %s8758_s27   ;;  %s7958_s26 = sphi %s8059_s26, %s8757_s26   ;;  %s7954_s25 = sphi %s8057_s25, %s8756_s25  }
  0x10   : > { %p37_p0 = scmp.ge.s32.totalorder %s36_s14, 2  ;;  %s48_s15 = sadd.s32 1, %s7958_s26 }
  0x11   : > { %p55_p1 = scmp.ne.s32.totalorder %s7958_s26, %s7954_s25  ;;  %p56_p2 = scmp.eq.s32.totalorder %s7970_s29, 0 }
  0x12   : > { %s8761_s14 = smov (%p37_p0, %s36_s14), 0  ;;  %p5521_p4 = scmp.ge.s32.totalorder %s7970_s29, 1 }
  0x13   : > { %8739 = sst [smem:[#allocation18_spill]] %s8761_s14  ;;  %p8090_p3 = por %p56_p2, %p55_p1 }
  0x14   : > { %s44_s17 = ssub.s32 %s7966_s28, %s8761_s14  ;;  %p350_p5 = scmp.lt.s32.totalorder %s7970_s29, 3 }
  0x15   : > { %p46_p6 = scmp.eq.s32.totalorder %s44_s17, 0  ;;  %p8104_p8 = scmp.eq.s32.totalorder %s8728_s30, 0 }
  0x16   : > { %p8098_p7 = pnand %p5521_p4, %p350_p5  ;;  %s8744_s5 = sld [smem:[#allocation21_spill]] }
  0x17   : > { %s8109_s20 = scalar_select %p46_p6, %s7958_s26, %s48_s15  }
  0x18   : > { %p7633_p9 = pneg %p8098_p7  ;;  %s7972_s17 = smov [#allocation7]  }
  0x19   : > { %8743 = sst [smem:[#allocation19_spill]] %s8109_s20  ;;  %s386_s30 = sshll.u32 %s7972_s17, 4  ;;  %s387_s30 = int_to_ptr.vmem [resolvable:$true] %s386_s30 }
  0x1a   : > { %p8118_p10 = pnand %p8104_p8, %p7633_p9  ;;  %s7973_s14 = smov 512  }
  0x1b   : > { %s7974_s15 = smov 32   ;;  %s8746_s9 = sld [smem:[#allocation24_spill]] }
  0x1c   : > { %s384_s23 = sshll.u32 %s8744_s5, 4  ;;  %s7975_s22 = smov [#allocation10]   ;;  %s385_s23 = int_to_ptr.hbm [resolvable:$true] %s384_s23 }
  0x1d   : > { %7639 = dma.hbm_to_vmem [thread:$0]  (!%p8118_p10), %s385_s23, 8192, %s387_s30, [#allocation8], %s7973_s14, %s7973_s14, %s7974_s15  }
  0x1e   : > { %s420_s5 = sshll.u32 %s7975_s22, 4  ;;  %s7976_s12 = smov 128   ;;  %s421_s5 = int_to_ptr.vmem [resolvable:$true] %s420_s5 }
  0x1f   : > { %s7977_s10 = smov 8   ;;  %s8747_s3 = sld [smem:[#allocation20_spill]] }
  0x20   : > { %s7978_s30 = smov [#allocation4]   ;;  %s7979_s13 = smov 64  }
  0x21   : > { %s418_s21 = sshll.u32 %s8746_s9, 4  ;;  %s369_s14 = sshll.u32 %s7978_s30, 4  ;;  %s419_s21 = int_to_ptr.hbm [resolvable:$true] %s418_s21  ;;  %s370_s14 = int_to_ptr.vmem [resolvable:$true] %s369_s14 }
  0x22   : > { %7645 = dma.hbm_to_vmem [thread:$0]  (!%p8118_p10), %s419_s21, 8192, %s421_s5, [#allocation11], %s7976_s12, %s7976_s12, %s7977_s10  }
  0x23   : > { %s7980_s20 = smov 4   ;;  %s401_s22 = sshll.u32 %s8721_s7, 4  ;;  %s402_s22 = int_to_ptr.hbm [resolvable:$true] %s401_s22 }
  0x24   : > { %s7981_s5 = smov [#allocation9]   ;;  %s435_s21 = sshll.u32 %s8725_s11, 4  ;;  %s436_s21 = int_to_ptr.hbm [resolvable:$true] %s435_s21 }
  0x25   : > { %s367_s6 = sshll.u32 %s8747_s3, 4  ;;  %s403_s10 = sshll.u32 %s7981_s5, 4  ;;  %s368_s6 = int_to_ptr.hbm [resolvable:$true] %s367_s6  ;;  %s404_s10 = int_to_ptr.vmem [resolvable:$true] %s403_s10 }
  0x26   : > { %7636 = dma.hbm_to_vmem [thread:$0]  (!%p8118_p10), %s368_s6, 512, %s370_s14, [#allocation5], %s7979_s13, %s7979_s13, %s7980_s20  }
  0x27   : > { %s7982_s17 = smov 256   ;;  %s7983_s30 = smov 16  }
  0x28   : > { %7642 = dma.hbm_to_vmem [thread:$0]  (!%p8118_p10), %s402_s22, 32768, %s404_s10, [#allocation8], %s7982_s17, %s7982_s17, %s7983_s30  }
  0x29   : > { %s7984_s3 = smov [#allocation12]   ;;  %p5527_p11 = scmp.ge.s32.totalorder %s7970_s29, 2 }
  0x2a   : > { %s437_s9 = sshll.u32 %s7984_s3, 4  ;;  %s438_s9 = int_to_ptr.vmem [resolvable:$true] %s437_s9 }
  0x2b   : > { %7648 = dma.hbm_to_vmem [thread:$0]  (!%p8118_p10), %s436_s21, 2048, %s438_s9, [#allocation11], %s7979_s13, %s7979_s13, %s7980_s20  }
  0x2c   : > { %450 = sbr.rel (%p5527_p11) target bundleno = 55 (0x37), region = 64 }
  0x31   : > { %453 = sbr.rel (!%p8090_p3) target bundleno = 55 (0x37), region = 68  ;;  %s455_s6 = sand.u32 (%p8090_p3), 1, %s7958_s26  }
  0x32   : > { %s5529_s14 = sshll.u32 (%p8090_p3), %s7966_s28, 2  ;;  %s5528_s23 = sshll.u32 (%p8090_p3), %s455_s6, 3 }
  0x33   : > { %s462_s22 = scalar_lea.vmem (%p8090_p3), %s8714_s0, %s5529_s14  ;;  %s457_s3 = scalar_lea.vmem (%p8090_p3), [#allocation3], %s5528_s23 }
  0x34   : > { %v479_v0 = vld [vmem:[%s462_s22] sm:$0xf] (%p8090_p3)  ;;  %v481_v1 = vld [vmem:[%s462_s22 + $0x8] sm:$0xf] (%p8090_p3) }
  0x35   : > { %480 = vst [vmem:[%s457_s3] sm:$0xf] (%p8090_p3), %v479_v0 }
  0x36   : > { %482 = vst [vmem:[%s457_s3 + $0x4] sm:$0xf] %v481_v1 }
  0x37 PF: > { %513 = sbr.rel (%p8098_p7) target bundleno = 1940 (0x794), region = 109  ;;  %s516_s9 = sand.u32 (!%p8098_p7), 1, %s7954_s25  }
  0x38   : > { %s5531_s16 = sshll.u32 (!%p8098_p7), %s516_s9, 3 }
  0x39   : > { %s518_s24 = scalar_lea.vmem (!%p8098_p7), [#allocation3], %s5531_s16 }
  0x3c   : > { %7937 = dma.done.wait (%p8104_p8), [#allocation5], 512  }
  0x3d   : > { %7939 = vsyncadd (%p8104_p8), [#allocation5], 4294966784 }
  0x3e   : > { %7941 = dma.done.wait (%p8104_p8), [#allocation8], 40960  }
  0x3f   : > { %7943 = vsyncadd (%p8104_p8), [#allocation8], 4294926336 }
  0x40   : > { %7945 = dma.done.wait (%p8104_p8), [#allocation11], 10240  }
  0x41   : > { %7947 = vsyncadd (%p8104_p8), [#allocation11], 4294957056  ;;  %vm671_vm0 = vcmask 1040384   ;;  %vm672_vm1 = vcmask 1041408   ;;  %v7985_v2 = vmov 65535   ;;  %vm622_vm2 = vcmask 23552  }
  0x42   : > { %v673_v3 = vsel %vm671_vm0, 4294967295, %v7985_v2  ;;  %v581_v5 = vld [vmem:[%s518_s24] sm:$0x7]  ;;  %v582_v6 = vld [vmem:[%s518_s24 + $0x4] sm:$0x7]  ;;  %v7193_v27 = vld [vmem:[#allocation4 + $0x8] sm:$0xff] }
  0x43   : > { %v674_v4 = vsel %vm672_vm1, %v673_v3, 0  ;;  %v585_v7 = vld [vmem:[%s8715_s1] sm:$0x3]  ;;  %v583_v8 = vpack.c.bf16 %v581_v5, %v581_v5  ;;  %v584_v9 = vpack.c.bf16 %v582_v6, %v582_v6  ;;  %v7194_v25 = vld [vmem:[#allocation4 + $0x10] sm:$0xff]  ;;  %v7192_v28 = vld [vmem:[#allocation4] sm:$0xff]  ;;  %vm947_vm3 = vcmask 523264  }
  0x44   : > { %v676_v10 = vand.u32 %v674_v4, %v585_v7  ;;  %v7195_v24 = vld [vmem:[#allocation4 + $0x18] sm:$0xff]  ;;  %v5819_v35 = vld [vmem:[#allocation7 + $0x1c8] sm:$0xf]  ;;  %v7252_v48 = vld [vmem:[#allocation7 + $0x1c4] sm:$0xf]  ;;  %p5841_p12 = scmp.ne.s32.totalorder %s7962_s27, 0 }
  0x45   : > { %7717 = vxpose.binary.xlu0.c.b16.start.end [1/2] (short) %v584_v9, %v583_v8, 128  ;;  %v8189_v31 = vld [vmem:[%s8716_s2] ss:$0 sm:$0xff]  ;;  %v7257_v36 = vld [vmem:[#allocation7 + $0x1e4] sm:$0xf0]  ;;  %v5813_v49 = vld [vmem:[#allocation7 + $0x1e0] sm:$0xf0] }
  0x46   : > { %685 = vmatpush.bf16.msra.mxu0 %v676_v10  ;;  %7596 = vmatpush.bf16.msra.mxu3 %v676_v10  ;;  %v5820_v38 = vor.u32 %v7257_v36, %v5819_v35  ;;  %v5816_v50 = vor.u32 %v7252_v48, %v5813_v49  ;;  %v7253_v52 = vld [vmem:[#allocation7 + $0x1cc] sm:$0xf]  ;;  %v5787_v60 = vld [vmem:[#allocation7 + $0x188] sm:$0xf]  ;;  %v7244_v2 = vld [vmem:[#allocation7 + $0x184] sm:$0xf] }
  0x47   : > { %1000 = vmatpush.bf16.msra.mxu1 %v7195_v24  ;;  %7597 = vmatpush.bf16.msra.mxu2 %v7195_v24  ;;  %v5821_v53 = vld [vmem:[#allocation7 + $0x1e8] sm:$0xf0]  ;;  %v7249_v61 = vld [vmem:[#allocation7 + $0x1a4] sm:$0xf0]  ;;  %v5781_v3 = vld [vmem:[#allocation7 + $0x1a0] sm:$0xf0] }
  0x48   : > { %v5824_v55 = vor.u32 %v7253_v52, %v5821_v53  ;;  %v5788_v63 = vor.u32 %v7249_v61, %v5787_v60  ;;  %v5784_v5 = vor.u32 %v7244_v2, %v5781_v3  ;;  %v5811_v10 = vld [vmem:[#allocation7 + $0x1c0] sm:$0xf]  ;;  %v7241_v35 = vld [vmem:[#allocation7 + $0x164] sm:$0xf0]  ;;  %v7236_v36 = vld [vmem:[#allocation7 + $0x144] sm:$0xf] }
  0x49   : > { %v5757_v52 = vld [vmem:[#allocation7 + $0x168] sm:$0xf0] }
  0x4a   : > { %1695 = vmatpush.bf16.msrb.mxu0 %v5820_v38  ;;  %1606 = vmatpush.bf16.msrb.mxu3 %v5816_v50 }
  0x4b   : > { %1001 = vmatpush.bf16.msra.mxu1 %v7194_v25  ;;  %7598 = vmatpush.bf16.msra.mxu2 %v7194_v25 }
  0x4e   : > { %1696 = vmatpush.bf16.msrb.mxu0 %v5788_v63  ;;  %1607 = vmatpush.bf16.msrb.mxu3 %v5784_v5  ;;  %v5717_v5 = vld [vmem:[#allocation7 + $0x120] sm:$0xf0] }
  0x4f   : > { %1002 = vmatpush.bf16.msra.mxu1 %v7193_v27  ;;  %7599 = vmatpush.bf16.msra.mxu2 %v7193_v27 }
  0x53   : > { %1003 = vmatpush.bf16.msra.mxu1 %v7192_v28  ;;  %7600 = vmatpush.bf16.msra.mxu2 %v7192_v28 }
  0x57   : > { %1784 = vmatpush.bf16.msrb.mxu1 %v5824_v55 }
  0xf1   : > { %v7718_v11 = vpop.trf.xlu0 }
  0xf2   : > { %5537 = vmatmul.msk.bf16.vlgmr.msra.gmra.mxu0 %vm622_vm2, %v7718_v11  ;;  %v7256_v11 = vld [vmem:[#allocation7 + $0x1dc] sm:$0xf0] }
  0xf9   : > { %v7719_v12 = vpop.trf.xlu0 }
 0x101   : > { %v7720_v13 = vpop.trf.xlu0 }
 0x102   : > { %5538 = vmatmul.msk.bf16.gmra.mxu0 %vm622_vm2, %v7720_v13  ;;  %v5812_v13 = vor.u32 %v7256_v11, %v5811_v10  ;;  %v5723_v10 = vld [vmem:[#allocation7 + $0x108] sm:$0xf] }
 0x103   : > { %v7233_v11 = vld [vmem:[#allocation7 + $0x124] sm:$0xf0] }
 0x104   : > { %1517 = vmatpush.bf16.msrb.mxu2 %v5812_v13 }
 0x109   : > { %v7721_v14 = vpop.trf.xlu0 }
 0x10a   : > { %5546 = vmatmul.msk.bf16.vlgmr.msra.gmra.mxu3 %vm622_vm2, %v7721_v14 }
 0x111   : > { %v7722_v15 = vpop.trf.xlu0 }
 0x112   : > { %5539 = vmatmul.msk.bf16.gmra.mxu0 %vm622_vm2, %v7722_v15 }
 0x119   : > { %v7723_v16 = vpop.trf.xlu0 }
 0x11a   : > { %5547 = vmatmul.msk.bf16.gmra.mxu3 %vm622_vm2, %v7723_v16  ;;  %v7245_v16 = vld [vmem:[#allocation7 + $0x18c] sm:$0xf] }
 0x121   : > { %v7724_v17 = vpop.trf.xlu0 }
 0x122   : > { %5540 = vmatmul.msk.bf16.gmra.mxu0 %vm622_vm2, %v7724_v17  ;;  %v5789_v17 = vld [vmem:[#allocation7 + $0x1a8] sm:$0xf0] }
 0x129   : > { %v7725_v18 = vpop.trf.xlu0 }
 0x12a   : > { %5548 = vmatmul.msk.bf16.gmra.mxu3 %vm622_vm2, %v7725_v18 }
 0x131   : > { %v7726_v19 = vpop.trf.xlu0 }
 0x132   : > { %5541 = vmatmul.msk.bf16.gmra.mxu0 %vm622_vm2, %v7726_v19  ;;  %v5792_v19 = vor.u32 %v7245_v16, %v5789_v17 }
 0x134   : > { %1785 = vmatpush.bf16.msrb.mxu1 %v5792_v19 }
 0x139   : > { %v7727_v20 = vpop.trf.xlu0 }
 0x13a   : > { %5549 = vmatmul.msk.bf16.gmra.mxu3 %vm622_vm2, %v7727_v20 }
 0x141   : > { %v7728_v21 = vpop.trf.xlu0 }
 0x142   : > { %5542 = vmatmul.msk.bf16.gmra.mxu0 %vm622_vm2, %v7728_v21 }
 0x149   : > { %v7729_v22 = vpop.trf.xlu0 }
 0x14a   : > { %5550 = vmatmul.msk.bf16.gmra.mxu3 %vm622_vm2, %v7729_v22 }
 0x151   : > { %v7730_v23 = vpop.trf.xlu0 }
 0x152   : > { %5543 = vmatmul.msk.bf16.gmra.mxu0 %vm622_vm2, %v7730_v23 }
 0x159   : > { %v7731_v26 = vpop.trf.xlu0 }
 0x15a   : > { %5551 = vmatmul.msk.bf16.gmra.mxu3 %vm622_vm2, %v7731_v26 }
 0x161   : > { %v7732_v29 = vpop.trf.xlu0 }
 0x162   : > { %5544 = vmatmul.msk.bf16.gmra.mxu0 %vm622_vm2, %v7732_v29 }
 0x169   : > { %v7733_v30 = vpop.trf.xlu0 }
 0x16a   : > { %5552 = vmatmul.msk.bf16.gmra.mxu3 %vm622_vm2, %v7733_v30 }
 0x16f   : > { %v687_v32 = vpop.f32.mrf.mxu0 }
 0x170   : > { %v688_v33 = vadd.f32 %v8189_v31, %v687_v32 }
 0x172   : > { %5545 = vmatmul.msk.bf16.gmra.mxu0 %vm622_vm2, %v7719_v12  ;;  %v767_v34 = vmax.f32 %v688_v33, 0.0 }
 0x174   : > { %v799_v40 = vpack.c.bf16 %v767_v34, %v767_v34  ;;  %v5755_v34 = vld [vmem:[#allocation7 + $0x148] sm:$0xf] }
 0x175   : > { %v5756_v38 = vor.u32 %v7241_v35, %v5755_v34  ;;  %v7229_v34 = vld [vmem:[#allocation7 + $0x10c] sm:$0xf] }
 0x176   : > { %v875_v43 = vunpack.c.l.b16 %v799_v40  ;;  %v5779_v40 = vld [vmem:[#allocation7 + $0x180] sm:$0xf] }
 0x177   : > { %v689_v37 = vpop.f32.mrf.mxu0  ;;  %1697 = vmatpush.bf16.msrb.mxu0 %v5756_v38 }
 0x178   : > { %v690_v39 = vadd.f32 %v8189_v31, %v689_v37 }
 0x17a   : > { %v768_v41 = vmax.f32 %v690_v39, 0.0  ;;  %v5749_v39 = vld [vmem:[#allocation7 + $0x160] sm:$0xf0] }
 0x17c   : > { %v800_v42 = vpack.c.bf16 %v768_v41, %v768_v41  ;;  %v7248_v41 = vld [vmem:[#allocation7 + $0x19c] sm:$0xf0] }
 0x17e   : > { %v876_v44 = vunpack.c.l.b16 %v800_v42 }
 0x17f   : > { %v692_v45 = vpop.f32.mrf.mxu0 }
 0x180   : > { %v907_v46 = vpack.c.b16 %v876_v44, %v875_v43  ;;  %v693_v47 = vadd.f32 %v8189_v31, %v692_v45  ;;  %v5752_v44 = vor.u32 %v7236_v36, %v5749_v39  ;;  %v5780_v45 = vor.u32 %v7248_v41, %v5779_v40 }
 0x182   : > { %5569 = vmatmul.msk.bf16.vlgmr.msra.gmra.mxu1 %vm947_vm3, %v907_v46  ;;  %v769_v51 = vmax.f32 %v693_v47, 0.0  ;;  %1608 = vmatpush.bf16.msrb.mxu3 %v5752_v44  ;;  %v5691_v44 = vld [vmem:[#allocation7 + $0xc8] sm:$0xf] }
 0x183   : > { %1518 = vmatpush.bf16.msrb.mxu2 %v5780_v45 }
 0x184   : > { %v801_v57 = vpack.c.bf16 %v769_v51, %v769_v51  ;;  %v7237_v51 = vld [vmem:[#allocation7 + $0x14c] sm:$0xf] }
 0x186   : > { %v877_v0 = vunpack.c.l.b16 %v801_v57 }
 0x187   : > { %v694_v54 = vpop.f32.mrf.mxu0 }
 0x188   : > { %v695_v56 = vadd.f32 %v8189_v31, %v694_v54  ;;  %v5760_v54 = vor.u32 %v7237_v51, %v5757_v52 }
 0x18a   : > { %v770_v58 = vmax.f32 %v695_v56, 0.0  ;;  %1786 = vmatpush.bf16.msrb.mxu1 %v5760_v54 }
 0x18c   : > { %v802_v59 = vpack.c.bf16 %v770_v58, %v770_v58 }
 0x18d   : > { %v732_v62 = vpop.f32.mrf.mxu3 }
 0x18e   : > { %v878_v1 = vunpack.c.l.b16 %v802_v59  ;;  %v733_v6 = vadd.f32 %v8189_v31, %v732_v62 }
 0x18f   : > { %v697_v4 = vpop.f32.mrf.mxu0 }
 0x190   : > { %v908_v7 = vpack.c.b16 %v878_v1, %v877_v0  ;;  %v698_v8 = vadd.f32 %v8189_v31, %v697_v4  ;;  %v785_v9 = vmax.f32 %v733_v6, 0.0  ;;  %v7228_v4 = vld [vmem:[#allocation7 + $0x104] sm:$0xf]  ;;  %v5747_v6 = vld [vmem:[#allocation7 + $0x140] sm:$0xf] }
 0x192   : > { %5570 = vmatmul.msk.bf16.gmra.mxu1 %vm947_vm3, %v908_v7  ;;  %v771_v14 = vmax.f32 %v698_v8, 0.0  ;;  %v817_v20 = vpack.c.bf16 %v785_v9, %v785_v9  ;;  %v5720_v8 = vor.u32 %v7228_v4, %v5717_v5  ;;  %v7240_v9 = vld [vmem:[#allocation7 + $0x15c] sm:$0xf0] }
 0x193   : > { %v5683_v5 = vld [vmem:[#allocation7 + $0xc0] sm:$0xf] }
 0x194   : > { %v803_v23 = vpack.c.bf16 %v771_v14, %v771_v14  ;;  %v893_v26 = vunpack.c.l.b16 %v817_v20  ;;  %v5748_v14 = vor.u32 %v7240_v9, %v5747_v6  ;;  %1609 = vmatpush.bf16.msrb.mxu3 %v5720_v8  ;;  %v7224_v6 = vld [vmem:[#allocation7 + $0xdc] sm:$0xf0] }
 0x195   : > { %v734_v12 = vpop.f32.mrf.mxu3  ;;  %v5684_v8 = vor.u32 %v7224_v6, %v5683_v5 }
 0x196   : > { %v735_v15 = vadd.f32 %v8189_v31, %v734_v12  ;;  %v879_v30 = vunpack.c.l.b16 %v803_v23  ;;  %1519 = vmatpush.bf16.msrb.mxu2 %v5748_v14 }
 0x197   : > { %v699_v18 = vpop.f32.mrf.mxu0 }
 0x198   : > { %v786_v21 = vmax.f32 %v735_v15, 0.0  ;;  %v700_v22 = vadd.f32 %v8189_v31, %v699_v18  ;;  %v5724_v15 = vor.u32 %v7233_v11, %v5723_v10 }
 0x19a   : > { %v818_v24 = vpack.c.bf16 %v786_v21, %v786_v21  ;;  %v772_v25 = vmax.f32 %v700_v22, 0.0  ;;  %1698 = vmatpush.bf16.msrb.mxu0 %v5724_v15 }
 0x19c   : > { %v894_v27 = vunpack.c.l.b16 %v818_v24  ;;  %v804_v28 = vpack.c.bf16 %v772_v25, %v772_v25 }
 0x19d   : > { %v737_v29 = vpop.f32.mrf.mxu3 }
 0x19e   : > { %v880_v32 = vunpack.c.l.b16 %v804_v28  ;;  %v916_v33 = vpack.c.b16 %v894_v27, %v893_v26  ;;  %v738_v42 = vadd.f32 %v8189_v31, %v737_v29 }
 0x19f   : > { %v702_v37 = vpop.f32.mrf.mxu0 }
 0x1a0   : > { %5578 = vmatmul.msk.bf16.vlgmr.msra.gmra.mxu2 %vm947_vm3, %v916_v33  ;;  %v909_v43 = vpack.c.b16 %v880_v32, %v879_v30  ;;  %v703_v46 = vadd.f32 %v8189_v31, %v702_v37  ;;  %v787_v47 = vmax.f32 %v738_v42, 0.0  ;;  %v7220_v32 = vld [vmem:[#allocation7 + $0xc4] sm:$0xf]  ;;  %v5725_v37 = vld [vmem:[#allocation7 + $0x128] sm:$0xf0] }
 0x1a1   : > { %v5685_v33 = vld [vmem:[#allocation7 + $0xe0] sm:$0xf0]  ;;  %v5728_v41 = vor.u32 %v7229_v34, %v5725_v37  ;;  %v5715_v42 = vld [vmem:[#allocation7 + $0x100] sm:$0xf] }
 0x1a2   : > { %5571 = vmatmul.msk.bf16.gmra.mxu1 %vm947_vm3, %v909_v43  ;;  %v773_v49 = vmax.f32 %v703_v46, 0.0  ;;  %v819_v55 = vpack.c.bf16 %v787_v47, %v787_v47  ;;  %v5688_v36 = vor.u32 %v7220_v32, %v5685_v33  ;;  %v7232_v43 = vld [vmem:[#allocation7 + $0x11c] sm:$0xf0]  ;;  %v7225_v47 = vld [vmem:[#allocation7 + $0xe4] sm:$0xf0] }
 0x1a3   : > { %v5716_v46 = vor.u32 %v7232_v43, %v5715_v42  ;;  %1787 = vmatpush.bf16.msrb.mxu1 %v5728_v41  ;;  %v7216_v32 = vld [vmem:[#allocation7 + $0x9c] sm:$0xf0] }
 0x1a4   : > { %v805_v58 = vpack.c.bf16 %v773_v49, %v773_v49  ;;  %v895_v61 = vunpack.c.l.b16 %v819_v55  ;;  %1610 = vmatpush.bf16.msrb.mxu3 %v5688_v36 }
 0x1a5   : > { %v739_v48 = vpop.f32.mrf.mxu3  ;;  %1520 = vmatpush.bf16.msrb.mxu2 %v5716_v46 }
 0x1a6   : > { %v740_v50 = vadd.f32 %v8189_v31, %v739_v48  ;;  %v881_v1 = vunpack.c.l.b16 %v805_v58 }
 0x1a7   : > { %v704_v53 = vpop.f32.mrf.mxu0 }
 0x1a8   : > { %v788_v56 = vmax.f32 %v740_v50, 0.0  ;;  %v705_v57 = vadd.f32 %v8189_v31, %v704_v53  ;;  %v5692_v50 = vor.u32 %v7225_v47, %v5691_v44  ;;  %v7213_v47 = vld [vmem:[#allocation7 + $0x8c] sm:$0xf] }
 0x1a9   : > { %1521 = vmatpush.bf16.msrb.mxu2 %v5684_v8  ;;  %v7201_v8 = vld [vmem:[#allocation7 + $0x24] sm:$0xf0] }
 0x1aa   : > { %v820_v59 = vpack.c.bf16 %v788_v56, %v788_v56  ;;  %v774_v60 = vmax.f32 %v705_v57, 0.0  ;;  %1699 = vmatpush.bf16.msrb.mxu0 %v5692_v50  ;;  %v7212_v56 = vld [vmem:[#allocation7 + $0x84] sm:$0xf] }
 0x1ab   : > { %v5653_v57 = vld [vmem:[#allocation7 + $0xa0] sm:$0xf0] }
 0x1ac   : > { %v896_v62 = vunpack.c.l.b16 %v820_v59  ;;  %v806_v63 = vpack.c.bf16 %v774_v60, %v774_v60  ;;  %v5656_v59 = vor.u32 %v7212_v56, %v5653_v57  ;;  %v5627_v57 = vld [vmem:[#allocation7 + $0x48] sm:$0xf] }
 0x1ad   : > { %v742_v0 = vpop.f32.mrf.mxu3 }
 0x1ae   : > { %v882_v2 = vunpack.c.l.b16 %v806_v63  ;;  %v917_v3 = vpack.c.b16 %v896_v62, %v895_v61  ;;  %v743_v12 = vadd.f32 %v8189_v31, %v742_v0  ;;  %1611 = vmatpush.bf16.msrb.mxu3 %v5656_v59  ;;  %v5619_v59 = vld [vmem:[#allocation7 + $0x40] sm:$0xf] }
 0x1af   : > { %v707_v7 = vpop.f32.mrf.mxu0 }
 0x1b0   : > { %5579 = vmatmul.msk.bf16.gmra.mxu2 %vm947_vm3, %v917_v3  ;;  %v910_v13 = vpack.c.b16 %v882_v2, %v881_v1  ;;  %v708_v16 = vadd.f32 %v8189_v31, %v707_v7  ;;  %v789_v17 = vmax.f32 %v743_v12, 0.0  ;;  %v7221_v12 = vld [vmem:[#allocation7 + $0xcc] sm:$0xf] }
 0x1b2   : > { %5572 = vmatmul.msk.bf16.gmra.mxu1 %vm947_vm3, %v910_v13  ;;  %v775_v19 = vmax.f32 %v708_v16, 0.0  ;;  %v821_v22 = vpack.c.bf16 %v789_v17, %v789_v17  ;;  %v5693_v13 = vld [vmem:[#allocation7 + $0xe8] sm:$0xf0] }
 0x1b3   : > { %v5696_v15 = vor.u32 %v7221_v12, %v5693_v13 }
 0x1b4   : > { %v807_v25 = vpack.c.bf16 %v775_v19, %v775_v19  ;;  %v897_v28 = vunpack.c.l.b16 %v821_v22 }
 0x1b5   : > { %v744_v18 = vpop.f32.mrf.mxu3  ;;  %1788 = vmatpush.bf16.msrb.mxu1 %v5696_v15 }
 0x1b6   : > { %v745_v20 = vadd.f32 %v8189_v31, %v744_v18  ;;  %v883_v38 = vunpack.c.l.b16 %v807_v25 }
 0x1b7   : > { %v709_v21 = vpop.f32.mrf.mxu0 }
 0x1b8   : > { %v790_v23 = vmax.f32 %v745_v20, 0.0  ;;  %v710_v24 = vadd.f32 %v8189_v31, %v709_v21  ;;  %v5659_v20 = vld [vmem:[#allocation7 + $0x88] sm:$0xf] }
 0x1b9   : > { %v7217_v21 = vld [vmem:[#allocation7 + $0xa4] sm:$0xf0] }
 0x1ba   : > { %v822_v26 = vpack.c.bf16 %v790_v23, %v790_v23  ;;  %v776_v27 = vmax.f32 %v710_v24, 0.0  ;;  %v5660_v24 = vor.u32 %v7217_v21, %v5659_v20 }
 0x1bc   : > { %v898_v29 = vunpack.c.l.b16 %v822_v26  ;;  %v808_v30 = vpack.c.bf16 %v776_v27, %v776_v27  ;;  %v7204_v26 = vld [vmem:[#allocation7 + $0x44] sm:$0xf]  ;;  %1700 = vmatpush.bf16.msrb.mxu0 %v5660_v24 }
 0x1bd   : > { %v747_v35 = vpop.f32.mrf.mxu3  ;;  %v5621_v27 = vld [vmem:[#allocation7 + $0x60] sm:$0xf0] }
 0x1be   : > { %v884_v39 = vunpack.c.l.b16 %v808_v30  ;;  %v918_v40 = vpack.c.b16 %v898_v29, %v897_v28  ;;  %v748_v48 = vadd.f32 %v8189_v31, %v747_v35  ;;  %v5651_v28 = vld [vmem:[#allocation7 + $0x80] sm:$0xf]  ;;  %v5624_v30 = vor.u32 %v7204_v26, %v5621_v27 }
 0x1bf   : > { %v712_v45 = vpop.f32.mrf.mxu0  ;;  %v5652_v36 = vor.u32 %v7216_v32, %v5651_v28  ;;  %v5829_v32 = vld [vmem:[#allocation7 + $0x1f0] sm:$0xf0] }
 0x1c0   : > { %5580 = vmatmul.msk.bf16.gmra.mxu2 %vm947_vm3, %v918_v40  ;;  %v911_v49 = vpack.c.b16 %v884_v39, %v883_v38  ;;  %v713_v51 = vadd.f32 %v8189_v31, %v712_v45  ;;  %v791_v52 = vmax.f32 %v748_v48, 0.0  ;;  %1612 = vmatpush.bf16.msrb.mxu3 %v5624_v30  ;;  %v5661_v48 = vld [vmem:[#allocation7 + $0xa8] sm:$0xf0]  ;;  %v7254_v30 = vld [vmem:[#allocation7 + $0x1d4] sm:$0xf] }
 0x1c1   : > { %1522 = vmatpush.bf16.msrb.mxu2 %v5652_v36  ;;  %v5664_v50 = vor.u32 %v7213_v47, %v5661_v48 }
 0x1c2   : > { %5573 = vmatmul.msk.bf16.gmra.mxu1 %vm947_vm3, %v911_v49  ;;  %v777_v54 = vmax.f32 %v713_v51, 0.0  ;;  %v823_v60 = vpack.c.bf16 %v791_v52, %v791_v52 }
 0x1c3   : > { %1789 = vmatpush.bf16.msrb.mxu1 %v5664_v50 }
 0x1c4   : > { %v809_v63 = vpack.c.bf16 %v777_v54, %v777_v54  ;;  %v899_v2 = vunpack.c.l.b16 %v823_v60  ;;  %v7196_v54 = vld [vmem:[#allocation7 + $0x4] sm:$0xf] }
 0x1c5   : > { %v749_v53 = vpop.f32.mrf.mxu3 }
 0x1c6   : > { %v750_v55 = vadd.f32 %v8189_v31, %v749_v53  ;;  %v885_v9 = vunpack.c.l.b16 %v809_v63 }
 0x1c7   : > { %v714_v58 = vpop.f32.mrf.mxu0 }
 0x1c8   : > { %v792_v61 = vmax.f32 %v750_v55, 0.0  ;;  %v715_v62 = vadd.f32 %v8189_v31, %v714_v58  ;;  %v5589_v55 = vld [vmem:[#allocation7 + $0x20] sm:$0xf0]  ;;  %v7209_v58 = vld [vmem:[#allocation7 + $0x64] sm:$0xf0] }
 0x1c9   : > { %v5592_v56 = vor.u32 %v7196_v54, %v5589_v55  ;;  %v5827_v54 = vld [vmem:[#allocation7 + $0x1d0] sm:$0xf] }
 0x1ca   : > { %v824_v0 = vpack.c.bf16 %v792_v61, %v792_v61  ;;  %v778_v1 = vmax.f32 %v715_v62, 0.0  ;;  %v5628_v61 = vor.u32 %v7209_v58, %v5627_v57  ;;  %v7208_v62 = vld [vmem:[#allocation7 + $0x5c] sm:$0xf0]  ;;  %v7258_v55 = vld [vmem:[#allocation7 + $0x1ec] sm:$0xf0] }
 0x1cb   : > { %1613 = vmatpush.bf16.msrb.mxu3 %v5592_v56  ;;  %v5828_v57 = vor.u32 %v7258_v55, %v5827_v54 }
 0x1cc   : > { %v900_v3 = vunpack.c.l.b16 %v824_v0  ;;  %v810_v4 = vpack.c.bf16 %v778_v1, %v778_v1  ;;  %v5620_v0 = vor.u32 %v7208_v62, %v5619_v59  ;;  %1701 = vmatpush.bf16.msrb.mxu0 %v5628_v61  ;;  %v7259_v61 = vld [vmem:[#allocation7 + $0x1f4] sm:$0xf0] }
 0x1cd   : > { %v752_v7 = vpop.f32.mrf.mxu3 }
 0x1ce   : > { %v886_v10 = vunpack.c.l.b16 %v810_v4  ;;  %v919_v11 = vpack.c.b16 %v900_v3, %v899_v2  ;;  %v753_v16 = vadd.f32 %v8189_v31, %v752_v7  ;;  %1523 = vmatpush.bf16.msrb.mxu2 %v5620_v0  ;;  %v5595_v7 = vld [vmem:[#allocation7 + $0x8] sm:$0xf] }
 0x1cf   : > { %v717_v14 = vpop.f32.mrf.mxu0 }
 0x1d0   : > { %5581 = vmatmul.msk.bf16.gmra.mxu2 %vm947_vm3, %v919_v11  ;;  %v912_v17 = vpack.c.b16 %v886_v10, %v885_v9  ;;  %v718_v18 = vadd.f32 %v8189_v31, %v717_v14  ;;  %v793_v19 = vmax.f32 %v753_v16, 0.0  ;;  %v5596_v9 = vor.u32 %v7201_v8, %v5595_v7  ;;  %v7205_v10 = vld [vmem:[#allocation7 + $0x4c] sm:$0xf]  ;;  %v5587_v16 = vld [vmem:[#allocation7] sm:$0xf] }
 0x1d1   : > { %v5629_v11 = vld [vmem:[#allocation7 + $0x68] sm:$0xf0]  ;;  %v7255_v8 = vld [vmem:[#allocation7 + $0x1dc] sm:$0xf] }
 0x1d2   : > { %5574 = vmatmul.msk.bf16.gmra.mxu1 %vm947_vm3, %v912_v17  ;;  %v779_v22 = vmax.f32 %v718_v18, 0.0  ;;  %v825_v33 = vpack.c.bf16 %v793_v19, %v793_v19  ;;  %v5632_v15 = vor.u32 %v7205_v10, %v5629_v11  ;;  %v7200_v17 = vld [vmem:[#allocation7 + $0x1c] sm:$0xf0]  ;;  %1702 = vmatpush.bf16.msrb.mxu0 %v5596_v9  ;;  %v5837_v9 = vld [vmem:[#allocation7 + $0x1f8] sm:$0xf0] }
 0x1d3   : > { %v5588_v18 = vor.u32 %v7200_v17, %v5587_v16  ;;  %v8253_v10 = vor.u32 %v7255_v8, %v5837_v9 }
 0x1d4   : > { %v811_v37 = vpack.c.bf16 %v779_v22, %v779_v22  ;;  %v901_v40 = vunpack.c.l.b16 %v825_v33  ;;  %1790 = vmatpush.bf16.msrb.mxu1 %v5632_v15  ;;  %v7197_v22 = vld [vmem:[#allocation7 + $0xc] sm:$0xf] }
 0x1d5   : > { %v754_v23 = vpop.f32.mrf.mxu3  ;;  %1524 = vmatpush.bf16.msrb.mxu2 %v5588_v18  ;;  %v5795_v18 = vld [vmem:[#allocation7 + $0x190] sm:$0xf] }
 0x1d6   : > { %v755_v25 = vadd.f32 %v8189_v31, %v754_v23  ;;  %v887_v44 = vunpack.c.l.b16 %v811_v37  ;;  %v5597_v23 = vld [vmem:[#allocation7 + $0x28] sm:$0xf0] }
 0x1d7   : > { %v719_v29 = vpop.f32.mrf.mxu0 }
 0x1d8   : > { %v794_v34 = vmax.f32 %v755_v25, 0.0  ;;  %v720_v35 = vadd.f32 %v8189_v31, %v719_v29  ;;  %v5600_v25 = vor.u32 %v7197_v22, %v5597_v23  ;;  %v5803_v23 = vld [vmem:[#allocation7 + $0x198] sm:$0xf] }
 0x1d9   : > { %1873 = vmatpush.bf16.msra.mxu2 %v5828_v57 }
 0x1da   : > { %v826_v38 = vpack.c.bf16 %v794_v34, %v794_v34  ;;  %v780_v39 = vmax.f32 %v720_v35, 0.0  ;;  %v5832_v34 = vor.u32 %v7254_v30, %v5829_v32  ;;  %1791 = vmatpush.bf16.msrb.mxu1 %v5600_v25 }
 0x1dc   : > { %v902_v41 = vunpack.c.l.b16 %v826_v38  ;;  %v812_v42 = vpack.c.bf16 %v780_v39, %v780_v39  ;;  %1962 = vmatpush.bf16.msra.mxu3 %v5832_v34 }
 0x1dd   : > { %v757_v43 = vpop.f32.mrf.mxu3 }
 0x1de   : > { %v888_v45 = vunpack.c.l.b16 %v812_v42  ;;  %v920_v46 = vpack.c.b16 %v902_v41, %v901_v40  ;;  %v758_v51 = vadd.f32 %v8189_v31, %v757_v43  ;;  %2140 = vmatpush.bf16.msra.mxu1 %v8253_v10 }
 0x1df   : > { %v722_v49 = vpop.f32.mrf.mxu0 }
 0x1e0   : > { %5582 = vmatmul.msk.bf16.gmra.mxu2 %vm947_vm3, %v920_v46  ;;  %v913_v52 = vpack.c.b16 %v888_v45, %v887_v44  ;;  %v723_v53 = vadd.f32 %v8189_v31, %v722_v49  ;;  %v795_v60 = vmax.f32 %v758_v51, 0.0 }
 0x1e2   : > { %5575 = vmatmul.msk.bf16.gmra.mxu1 %vm947_vm3, %v913_v52  ;;  %v781_v1 = vmax.f32 %v723_v53, 0.0  ;;  %v827_v4 = vpack.c.bf16 %v795_v60, %v795_v60  ;;  %v5835_v60 = vld [vmem:[#allocation7 + $0x1d8] sm:$0xf] }
 0x1e4   : > { %v813_v12 = vpack.c.bf16 %v781_v1, %v781_v1  ;;  %v903_v19 = vunpack.c.l.b16 %v827_v4 }
 0x1e5   : > { %v759_v63 = vpop.f32.mrf.mxu3 }
 0x1e6   : > { %v760_v2 = vadd.f32 %v8189_v31, %v759_v63  ;;  %v889_v26 = vunpack.c.l.b16 %v813_v12  ;;  %v5836_v63 = vor.u32 %v7259_v61, %v5835_v60  ;;  %v7242_v60 = vld [vmem:[#allocation7 + $0x16c] sm:$0xf0] }
 0x1e7   : > { %v724_v3 = vpop.f32.mrf.mxu0 }
 0x1e8   : > { %v796_v5 = vmax.f32 %v760_v2, 0.0  ;;  %v725_v6 = vadd.f32 %v8189_v31, %v724_v3  ;;  %2051 = vmatpush.bf16.msra.mxu0 %v5836_v63 }
 0x1ea   : > { %v828_v13 = vpack.c.bf16 %v796_v5, %v796_v5  ;;  %v782_v14 = vmax.f32 %v725_v6, 0.0  ;;  %v7246_v5 = vld [vmem:[#allocation7 + $0x194] sm:$0xf] }
 0x1eb   : > { %v5797_v6 = vld [vmem:[#allocation7 + $0x1b0] sm:$0xf0] }
 0x1ec   : > { %v904_v20 = vunpack.c.l.b16 %v828_v13  ;;  %v814_v21 = vpack.c.bf16 %v782_v14, %v782_v14  ;;  %v5800_v7 = vor.u32 %v7246_v5, %v5797_v6 }
 0x1ed   : > { %v762_v24 = vpop.f32.mrf.mxu3 }
 0x1ee   : > { %v890_v27 = vunpack.c.l.b16 %v814_v21  ;;  %v763_v28 = vadd.f32 %v8189_v31, %v762_v24  ;;  %v921_v29 = vpack.c.b16 %v904_v20, %v903_v19  ;;  %1963 = vmatpush.bf16.msra.mxu3 %v5800_v7  ;;  %v7250_v19 = vld [vmem:[#allocation7 + $0x1ac] sm:$0xf0]  ;;  %v7251_v24 = vld [vmem:[#allocation7 + $0x1b4] sm:$0xf0] }
 0x1ef   : > { %v727_v33 = vpop.f32.mrf.mxu0  ;;  %v5796_v20 = vor.u32 %v7250_v19, %v5795_v18  ;;  %v7230_v18 = vld [vmem:[#allocation7 + $0x114] sm:$0xf] }
 0x1f0   : > { %5583 = vmatmul.msk.bf16.gmra.mxu2 %vm947_vm3, %v921_v29  ;;  %v914_v35 = vpack.c.b16 %v890_v27, %v889_v26  ;;  %v797_v36 = vmax.f32 %v763_v28, 0.0  ;;  %v728_v37 = vadd.f32 %v8189_v31, %v727_v33  ;;  %v5804_v26 = vor.u32 %v7251_v24, %v5803_v23  ;;  %v5733_v19 = vld [vmem:[#allocation7 + $0x130] sm:$0xf0] }
 0x1f1   : > { %1874 = vmatpush.bf16.msra.mxu2 %v5796_v20  ;;  %v5736_v20 = vor.u32 %v7230_v18, %v5733_v19 }
 0x1f2   : > { %5576 = vmatmul.msk.bf16.gmra.mxu1 %vm947_vm3, %v914_v35  ;;  %v829_v39 = vpack.c.bf16 %v797_v36, %v797_v36  ;;  %v783_v40 = vmax.f32 %v728_v37, 0.0  ;;  %2052 = vmatpush.bf16.msra.mxu0 %v5804_v26 }
 0x1f4   : > { %v905_v45 = vunpack.c.l.b16 %v829_v39  ;;  %v815_v46 = vpack.c.bf16 %v783_v40, %v783_v40  ;;  %v7238_v39 = vld [vmem:[#allocation7 + $0x154] sm:$0xf] }
 0x1f5   : > { %v764_v38 = vpop.f32.mrf.mxu3  ;;  %v5765_v40 = vld [vmem:[#allocation7 + $0x170] sm:$0xf0] }
 0x1f6   : > { %v765_v41 = vadd.f32 %v8189_v31, %v764_v38  ;;  %v891_v51 = vunpack.c.l.b16 %v815_v46 }
 0x1f7   : > { %v729_v42 = vpop.f32.mrf.mxu0 }
 0x1f8   : > { %v798_v43 = vmax.f32 %v765_v41, 0.0  ;;  %v730_v44 = vadd.f32 %v8189_v31, %v729_v42  ;;  %v8242_v31 = vld [vmem:[%s8718_s4] ss:$0 sm:$0xff]  ;;  %v5768_v41 = vor.u32 %v7238_v39, %v5765_v40  ;;  %v7247_v42 = vld [vmem:[#allocation7 + $0x19c] sm:$0xf] }
 0x1fa   : > { %v830_v47 = vpack.c.bf16 %v798_v43, %v798_v43  ;;  %v784_v48 = vmax.f32 %v730_v44, 0.0  ;;  %v5805_v43 = vld [vmem:[#allocation7 + $0x1b8] sm:$0xf0]  ;;  %1964 = vmatpush.bf16.msra.mxu3 %v5768_v41  ;;  %v5731_v41 = vld [vmem:[#allocation7 + $0x110] sm:$0xf] }
 0x1fc   : > { %v906_v49 = vunpack.c.l.b16 %v830_v47  ;;  %v816_v50 = vpack.c.bf16 %v784_v48, %v784_v48 }
 0x1fe   : > { %v892_v52 = vunpack.c.l.b16 %v816_v50  ;;  %v922_v53 = vpack.c.b16 %v906_v49, %v905_v45  ;;  %v8276_v45 = vor.u32 %v7247_v42, %v5805_v43  ;;  %1965 = vmatpush.bf16.msra.mxu3 %v5736_v20  ;;  %v7234_v42 = vld [vmem:[#allocation7 + $0x12c] sm:$0xf0] }
 0x1ff   : > { %v1005_v56 = vpop.f32.mrf.mxu1  ;;  %v5732_v43 = vor.u32 %v7234_v42, %v5731_v41 }
 0x200   : > { %5584 = vmatmul.msk.bf16.gmra.mxu2 %vm947_vm3, %v922_v53  ;;  %v915_v58 = vpack.c.b16 %v892_v52, %v891_v51  ;;  %v1006_v59 = vadd.f32 %v8242_v31, %v1005_v56  ;;  %2141 = vmatpush.bf16.msra.mxu1 %v8276_v45 }
 0x202   : > { %5577 = vmatmul.msk.bf16.gmra.mxu1 %vm947_vm3, %v915_v58  ;;  %v1085_v1 = vmax.f32 %v1006_v59, 0.0  ;;  %v5763_v59 = vld [vmem:[#allocation7 + $0x150] sm:$0xf] }
 0x203   : > { %v5764_v61 = vor.u32 %v7242_v60, %v5763_v59 }
 0x205   : > { %1875 = vmatpush.bf16.msra.mxu2 %v5764_v61 }
 0x207   : > { %v1007_v62 = vpop.f32.mrf.mxu1 }
 0x208   : > { %v1008_v0 = vadd.f32 %v8242_v31, %v1007_v62 }
 0x209   : > { %1876 = vmatpush.bf16.msra.mxu2 %v5732_v43 }
 0x20a   : > { %v1086_v2 = vmax.f32 %v1008_v0, 0.0  ;;  %v5771_v0 = vld [vmem:[#allocation7 + $0x158] sm:$0xf] }
 0x20c   : > { %v8247_v3 = vpack.c.bf16 %v1086_v2, %v1085_v1  ;;  %v7243_v1 = vld [vmem:[#allocation7 + $0x174] sm:$0xf0] }
 0x20e   : > { %1614 = vmatmul.bf16.vlgmr.msrb.gmra.mxu3 %v8247_v3  ;;  %1703 = vmatmul.bf16.vlgmr.msrb.gmra.mxu0 %v8247_v3 }
 0x20f   : > { %v1010_v4 = vpop.f32.mrf.mxu1 }
 0x210   : > { %1525 = vmatmul.bf16.vlgmr.msrb.gmra.mxu2 %v8247_v3  ;;  %v1011_v11 = vadd.f32 %v8242_v31, %v1010_v4  ;;  %v5772_v4 = vor.u32 %v7243_v1, %v5771_v0  ;;  %v7222_v0 = vld [vmem:[#allocation7 + $0xd4] sm:$0xf] }
 0x211   : > { %v5701_v1 = vld [vmem:[#allocation7 + $0xf0] sm:$0xf0] }
 0x212   : > { %1792 = vmatmul.bf16.vlgmr.msrb.gmra.mxu1 %v8247_v3  ;;  %v1087_v14 = vmax.f32 %v1011_v11, 0.0  ;;  %2053 = vmatpush.bf16.msra.mxu0 %v5772_v4  ;;  %v5704_v4 = vor.u32 %v7222_v0, %v5701_v1 }
 0x214   : > { %1966 = vmatpush.bf16.msra.mxu3 %v5704_v4 }
 0x217   : > { %v1012_v12 = vpop.f32.mrf.mxu1 }
 0x218   : > { %v1013_v13 = vadd.f32 %v8242_v31, %v1012_v12 }
 0x21a   : > { %v1088_v15 = vmax.f32 %v1013_v13, 0.0 }
 0x21c   : > { %v8258_v16 = vpack.c.bf16 %v1088_v15, %v1087_v14 }
 0x21e   : > { %1619 = vmatmul.bf16.gmra.mxu3 %v8258_v16  ;;  %1708 = vmatmul.bf16.gmra.mxu0 %v8258_v16 }
 0x21f   : > { %v1015_v17 = vpop.f32.mrf.mxu1 }
 0x220   : > { %1530 = vmatmul.bf16.gmra.mxu2 %v8258_v16  ;;  %v1016_v22 = vadd.f32 %v8242_v31, %v1015_v17 }
 0x222   : > { %1797 = vmatmul.bf16.gmra.mxu1 %v8258_v16  ;;  %v1089_v28 = vmax.f32 %v1016_v22, 0.0  ;;  %v5773_v22 = vld [vmem:[#allocation7 + $0x178] sm:$0xf0] }
 0x223   : > { %v1050_v21 = vpop.f32.mrf.mxu2 }
 0x224   : > { %v1051_v29 = vadd.f32 %v8242_v31, %v1050_v21  ;;  %v7239_v21 = vld [vmem:[#allocation7 + $0x15c] sm:$0xf] }
 0x225   : > { %v8303_v24 = vor.u32 %v7239_v21, %v5773_v22 }
 0x226   : > { %v1103_v35 = vmax.f32 %v1051_v29, 0.0 }
 0x227   : > { %v1017_v25 = vpop.f32.mrf.mxu1  ;;  %2142 = vmatpush.bf16.msra.mxu1 %v8303_v24 }
 0x228   : > { %v1018_v27 = vadd.f32 %v8242_v31, %v1017_v25 }
 0x22a   : > { %v1090_v30 = vmax.f32 %v1018_v27, 0.0 }
 0x22b   : > { %v1052_v32 = vpop.f32.mrf.mxu2 }
 0x22c   : > { %v8267_v33 = vpack.c.bf16 %v1090_v30, %v1089_v28  ;;  %v1053_v34 = vadd.f32 %v8242_v31, %v1052_v32 }
 0x22e   : > { %v1104_v36 = vmax.f32 %v1053_v34, 0.0  ;;  %1624 = vmatmul.bf16.gmra.mxu3 %v8267_v33  ;;  %1713 = vmatmul.bf16.gmra.mxu0 %v8267_v33 }
 0x22f   : > { %v1020_v37 = vpop.f32.mrf.mxu1 }
 0x230   : > { %v8272_v38 = vpack.c.bf16 %v1104_v36, %v1103_v35  ;;  %1535 = vmatmul.bf16.gmra.mxu2 %v8267_v33  ;;  %v1021_v46 = vadd.f32 %v8242_v31, %v1020_v37 }
 0x232   : > { %1802 = vmatmul.bf16.gmra.mxu1 %v8267_v33  ;;  %v1091_v49 = vmax.f32 %v1021_v46, 0.0 }
 0x233   : > { %v1055_v44 = vpop.f32.mrf.mxu2 }
 0x234   : > { %v1056_v50 = vadd.f32 %v8242_v31, %v1055_v44 }
 0x236   : > { %v1105_v55 = vmax.f32 %v1056_v50, 0.0 }
 0x237   : > { %v1022_v47 = vpop.f32.mrf.mxu1 }
 0x238   : > { %v1023_v48 = vadd.f32 %v8242_v31, %v1022_v47  ;;  %v5739_v47 = vld [vmem:[#allocation7 + $0x118] sm:$0xf] }
 0x23a   : > { %v1092_v51 = vmax.f32 %v1023_v48, 0.0  ;;  %v7235_v48 = vld [vmem:[#allocation7 + $0x134] sm:$0xf0] }
 0x23b   : > { %v1057_v52 = vpop.f32.mrf.mxu2  ;;  %v5740_v50 = vor.u32 %v7235_v48, %v5739_v47 }
 0x23c   : > { %v8282_v53 = vpack.c.bf16 %v1092_v51, %v1091_v49  ;;  %v1058_v54 = vadd.f32 %v8242_v31, %v1057_v52 }
 0x23d   : > { %2054 = vmatpush.bf16.msra.mxu0 %v5740_v50 }
 0x23e   : > { %v1106_v56 = vmax.f32 %v1058_v54, 0.0  ;;  %1629 = vmatmul.bf16.gmra.mxu3 %v8282_v53  ;;  %1718 = vmatmul.bf16.gmra.mxu0 %v8282_v53 }
 0x23f   : > { %v1025_v57 = vpop.f32.mrf.mxu1 }
 0x240   : > { %v8287_v58 = vpack.c.bf16 %v1106_v56, %v1105_v55  ;;  %1540 = vmatmul.bf16.gmra.mxu2 %v8282_v53  ;;  %v1026_v63 = vadd.f32 %v8242_v31, %v1025_v57 }
 0x242   : > { %1807 = vmatmul.bf16.gmra.mxu1 %v8282_v53  ;;  %v1093_v6 = vmax.f32 %v1026_v63, 0.0 }
 0x243   : > { %v1060_v62 = vpop.f32.mrf.mxu2 }
 0x244   : > { %v1061_v7 = vadd.f32 %v8242_v31, %v1060_v62 }
 0x246   : > { %v1107_v13 = vmax.f32 %v1061_v7, 0.0 }
 0x247   : > { %v1027_v2 = vpop.f32.mrf.mxu1 }
 0x248   : > { %v1028_v5 = vadd.f32 %v8242_v31, %v1027_v2  ;;  %v7231_v2 = vld [vmem:[#allocation7 + $0x11c] sm:$0xf] }
 0x24a   : > { %v1094_v8 = vmax.f32 %v1028_v5, 0.0  ;;  %v5741_v5 = vld [vmem:[#allocation7 + $0x138] sm:$0xf0] }
 0x24b   : > { %v1062_v9 = vpop.f32.mrf.mxu2 }
 0x24c   : > { %v8294_v11 = vpack.c.bf16 %v1094_v8, %v1093_v6  ;;  %v1063_v12 = vadd.f32 %v8242_v31, %v1062_v9  ;;  %v8330_v6 = vor.u32 %v7231_v2, %v5741_v5 }
 0x24e   : > { %v1108_v14 = vmax.f32 %v1063_v12, 0.0  ;;  %1634 = vmatmul.bf16.gmra.mxu3 %v8294_v11  ;;  %1723 = vmatmul.bf16.gmra.mxu0 %v8294_v11 }
 0x24f   : > { %v1030_v15 = vpop.f32.mrf.mxu1  ;;  %2143 = vmatpush.bf16.msra.mxu1 %v8330_v6 }
 0x250   : > { %v8299_v17 = vpack.c.bf16 %v1108_v14, %v1107_v13  ;;  %1545 = vmatmul.bf16.gmra.mxu2 %v8294_v11  ;;  %v1031_v25 = vadd.f32 %v8242_v31, %v1030_v15 }
 0x252   : > { %1812 = vmatmul.bf16.gmra.mxu1 %v8294_v11  ;;  %v1095_v28 = vmax.f32 %v1031_v25, 0.0  ;;  %v7226_v25 = vld [vmem:[#allocation7 + $0xec] sm:$0xf0] }
 0x253   : > { %v1065_v23 = vpop.f32.mrf.mxu2 }
 0x254   : > { %v1066_v29 = vadd.f32 %v8242_v31, %v1065_v23  ;;  %v5699_v23 = vld [vmem:[#allocation7 + $0xd0] sm:$0xf] }
 0x256   : > { %v1109_v36 = vmax.f32 %v1066_v29, 0.0 }
 0x257   : > { %v1032_v26 = vpop.f32.mrf.mxu1 }
 0x258   : > { %v1033_v27 = vadd.f32 %v8242_v31, %v1032_v26 }
 0x25a   : > { %v1096_v30 = vmax.f32 %v1033_v27, 0.0  ;;  %v5700_v27 = vor.u32 %v7226_v25, %v5699_v23 }
 0x25b   : > { %v1067_v32 = vpop.f32.mrf.mxu2 }
 0x25c   : > { %v8309_v34 = vpack.c.bf16 %v1096_v30, %v1095_v28  ;;  %v1068_v35 = vadd.f32 %v8242_v31, %v1067_v32  ;;  %1877 = vmatpush.bf16.msra.mxu2 %v5700_v27  ;;  %v5707_v30 = vld [vmem:[#allocation7 + $0xd8] sm:$0xf] }
 0x25d   : > { %v7227_v32 = vld [vmem:[#allocation7 + $0xf4] sm:$0xf0] }
 0x25e   : > { %v1110_v37 = vmax.f32 %v1068_v35, 0.0  ;;  %1639 = vmatmul.bf16.gmra.mxu3 %v8309_v34  ;;  %1728 = vmatmul.bf16.gmra.mxu0 %v8309_v34  ;;  %v5708_v35 = vor.u32 %v7227_v32, %v5707_v30  ;;  %v5675_v30 = vld [vmem:[#allocation7 + $0x98] sm:$0xf] }
 0x25f   : > { %v1035_v39 = vpop.f32.mrf.mxu1  ;;  %v7219_v32 = vld [vmem:[#allocation7 + $0xb4] sm:$0xf0] }
 0x260   : > { %v8314_v40 = vpack.c.bf16 %v1110_v37, %v1109_v36  ;;  %1550 = vmatmul.bf16.gmra.mxu2 %v8309_v34  ;;  %v1036_v46 = vadd.f32 %v8242_v31, %v1035_v39  ;;  %2055 = vmatpush.bf16.msra.mxu0 %v5708_v35  ;;  %v5676_v35 = vor.u32 %v7219_v32, %v5675_v30  ;;  %v5643_v32 = vld [vmem:[#allocation7 + $0x58] sm:$0xf] }
 0x262   : > { %1817 = vmatmul.bf16.gmra.mxu1 %v8309_v34  ;;  %v1097_v52 = vmax.f32 %v1036_v46, 0.0 }
 0x263   : > { %v1070_v44 = vpop.f32.mrf.mxu2 }
 0x264   : > { %v1071_v54 = vadd.f32 %v8242_v31, %v1070_v44  ;;  %2056 = vmatpush.bf16.msra.mxu0 %v5676_v35  ;;  %v7211_v35 = vld [vmem:[#allocation7 + $0x74] sm:$0xf0] }
 0x266   : > { %v1111_v60 = vmax.f32 %v1071_v54, 0.0 }
 0x267   : > { %v1037_v49 = vpop.f32.mrf.mxu1 }
 0x268   : > { %v1038_v51 = vadd.f32 %v8242_v31, %v1037_v49 }
 0x26a   : > { %v1098_v55 = vmax.f32 %v1038_v51, 0.0  ;;  %v7214_v51 = vld [vmem:[#allocation7 + $0x94] sm:$0xf] }
 0x26b   : > { %v1072_v56 = vpop.f32.mrf.mxu2 }
 0x26c   : > { %v8321_v57 = vpack.c.bf16 %v1098_v55, %v1097_v52  ;;  %v1073_v59 = vadd.f32 %v8242_v31, %v1072_v56  ;;  %v5669_v52 = vld [vmem:[#allocation7 + $0xb0] sm:$0xf0] }
 0x26d   : > { %v5672_v55 = vor.u32 %v7214_v51, %v5669_v52 }
 0x26e   : > { %v1112_v61 = vmax.f32 %v1073_v59, 0.0  ;;  %1644 = vmatmul.bf16.gmra.mxu3 %v8321_v57  ;;  %1733 = vmatmul.bf16.gmra.mxu0 %v8321_v57  ;;  %v7223_v59 = vld [vmem:[#allocation7 + $0xdc] sm:$0xf] }
 0x26f   : > { %v1040_v62 = vpop.f32.mrf.mxu1  ;;  %1967 = vmatpush.bf16.msra.mxu3 %v5672_v55  ;;  %v5677_v55 = vld [vmem:[#allocation7 + $0xb8] sm:$0xf0] }
 0x270   : > { %v8326_v63 = vpack.c.bf16 %v1112_v61, %v1111_v60  ;;  %1555 = vmatmul.bf16.gmra.mxu2 %v8321_v57  ;;  %v1041_v8 = vadd.f32 %v8242_v31, %v1040_v62  ;;  %v5709_v60 = vld [vmem:[#allocation7 + $0xf8] sm:$0xf0] }
 0x271   : > { %v8356_v62 = vor.u32 %v7223_v59, %v5709_v60 }
 0x272   : > { %1822 = vmatmul.bf16.gmra.mxu1 %v8321_v57  ;;  %v1099_v13 = vmax.f32 %v1041_v8, 0.0 }
 0x273   : > { %v1075_v7 = vpop.f32.mrf.mxu2  ;;  %2144 = vmatpush.bf16.msra.mxu1 %v8356_v62 }
 0x274   : > { %v1076_v14 = vadd.f32 %v8242_v31, %v1075_v7 }
 0x276   : > { %v1113_v21 = vmax.f32 %v1076_v14, 0.0  ;;  %v5667_v14 = vld [vmem:[#allocation7 + $0x90] sm:$0xf] }
 0x277   : > { %v1042_v9 = vpop.f32.mrf.mxu1 }
 0x278   : > { %v1043_v12 = vadd.f32 %v8242_v31, %v1042_v9 }
 0x27a   : > { %v1100_v15 = vmax.f32 %v1043_v12, 0.0 }
 0x27b   : > { %v1077_v18 = vpop.f32.mrf.mxu2 }
 0x27c   : > { %v8336_v19 = vpack.c.bf16 %v1100_v15, %v1099_v13  ;;  %v1078_v20 = vadd.f32 %v8242_v31, %v1077_v18  ;;  %v7218_v15 = vld [vmem:[#allocation7 + $0xac] sm:$0xf0] }
 0x27e   : > { %v1114_v22 = vmax.f32 %v1078_v20, 0.0  ;;  %1649 = vmatmul.bf16.gmra.mxu3 %v8336_v19  ;;  %1738 = vmatmul.bf16.gmra.mxu0 %v8336_v19  ;;  %v5668_v20 = vor.u32 %v7218_v15, %v5667_v14  ;;  %v5635_v15 = vld [vmem:[#allocation7 + $0x50] sm:$0xf] }
 0x27f   : > { %v1045_v26 = vpop.f32.mrf.mxu1 }
 0x280   : > { %v8341_v28 = vpack.c.bf16 %v1114_v22, %v1113_v21  ;;  %1560 = vmatmul.bf16.gmra.mxu2 %v8336_v19  ;;  %v1046_v36 = vadd.f32 %v8242_v31, %v1045_v26 }
 0x281   : > { %1878 = vmatpush.bf16.msra.mxu2 %v5668_v20 }
 0x282   : > { %1827 = vmatmul.bf16.gmra.mxu1 %v8336_v19  ;;  %v1101_v41 = vmax.f32 %v1046_v36, 0.0 }
 0x283   : > { %v1080_v29 = vpop.f32.mrf.mxu2 }
 0x284   : > { %v1081_v42 = vadd.f32 %v8242_v31, %v1080_v29 }
 0x286   : > { %v1115_v49 = vmax.f32 %v1081_v42, 0.0 }
 0x287   : > { %v1047_v37 = vpop.f32.mrf.mxu1 }
 0x288   : > { %v1048_v39 = vadd.f32 %v8242_v31, %v1047_v37 }
 0x28a   : > { %v1102_v43 = vmax.f32 %v1048_v39, 0.0 }
 0x28b   : > { %v1082_v44 = vpop.f32.mrf.mxu2  ;;  %v1704_v46 = vpop.f32.mrf.mxu0 }
 0x28c   : > { %v8348_v47 = vpack.c.bf16 %v1102_v43, %v1101_v41  ;;  %v1083_v48 = vadd.f32 %v8242_v31, %v1082_v44 }
 0x28e   : > { %v1116_v50 = vmax.f32 %v1083_v48, 0.0  ;;  %1654 = vmatmul.bf16.gmra.mxu3 %v8348_v47  ;;  %1743 = vmatmul.bf16.gmra.mxu0 %v8348_v47  ;;  %v7206_v48 = vld [vmem:[#allocation7 + $0x54] sm:$0xf] }
 0x28f   : > { %v1793_v54 = vpop.f32.mrf.mxu1 }
 0x290   : > { %v8353_v56 = vpack.c.bf16 %v1116_v50, %v1115_v49  ;;  %1565 = vmatmul.bf16.gmra.mxu2 %v8348_v47  ;;  %v5637_v49 = vld [vmem:[#allocation7 + $0x70] sm:$0xf0] }
 0x291   : > { %v1615_v61 = vpop.f32.mrf.mxu3  ;;  %v5640_v51 = vor.u32 %v7206_v48, %v5637_v49  ;;  %v7198_v49 = vld [vmem:[#allocation7 + $0x14] sm:$0xf] }
 0x292   : > { %1832 = vmatmul.bf16.gmra.mxu1 %v8348_v47 }
 0x293   : > { %v1526_v31 = vpop.f32.mrf.mxu2  ;;  %v1706_v0 = vpop.f32.mrf.mxu0  ;;  %1968 = vmatpush.bf16.msra.mxu3 %v5640_v51 }
 0x294   : > { %v2271_v1 = vmax.f32 %v1704_v46, %v1706_v0 }
 0x297   : > { %v1795_v2 = vpop.f32.mrf.mxu1 }
 0x298   : > { %v2292_v4 = vmax.f32 %v1793_v54, %v1795_v2  ;;  %v7215_v54 = vld [vmem:[#allocation7 + $0x9c] sm:$0xf] }
 0x299   : > { %v1617_v5 = vpop.f32.mrf.mxu3  ;;  %v8367_v60 = vor.u32 %v7215_v54, %v5677_v55  ;;  %v7207_v55 = vld [vmem:[#allocation7 + $0x5c] sm:$0xf] }
 0x29a   : > { %v2250_v7 = vmax.f32 %v1615_v61, %v1617_v5 }
 0x29b   : > { %v1528_v8 = vpop.f32.mrf.mxu2  ;;  %v1709_v9 = vpop.f32.mrf.mxu0  ;;  %2145 = vmatpush.bf16.msra.mxu1 %v8367_v60 }
 0x29c   : > { %v2229_v12 = vmax.f32 %v1526_v31, %v1528_v8  ;;  %v2272_v13 = vmax.f32 %v2271_v1, %v1709_v9 }
 0x29e   : > { %1659 = vmatmul.bf16.gmra.mxu3 %v8272_v38  ;;  %1748 = vmatmul.bf16.gmra.mxu0 %v8272_v38 }
 0x29f   : > { %v1798_v18 = vpop.f32.mrf.mxu1 }
 0x2a0   : > { %v2293_v21 = vmax.f32 %v2292_v4, %v1798_v18  ;;  %1570 = vmatmul.bf16.gmra.mxu2 %v8272_v38  ;;  %v7210_v18 = vld [vmem:[#allocation7 + $0x6c] sm:$0xf0] }
 0x2a1   : > { %v1620_v22 = vpop.f32.mrf.mxu3 }
 0x2a2   : > { %v2251_v23 = vmax.f32 %v2250_v7, %v1620_v22  ;;  %1837 = vmatmul.bf16.gmra.mxu1 %v8272_v38 }
 0x2a3   : > { %v1531_v25 = vpop.f32.mrf.mxu2  ;;  %v1711_v26 = vpop.f32.mrf.mxu0 }
 0x2a4   : > { %v2230_v27 = vmax.f32 %v2229_v12, %v1531_v25  ;;  %v2273_v29 = vmax.f32 %v2272_v13, %v1711_v26 }
 0x2a7   : > { %v1800_v36 = vpop.f32.mrf.mxu1 }
 0x2a8   : > { %v2294_v37 = vmax.f32 %v2293_v21, %v1800_v36  ;;  %v5636_v21 = vor.u32 %v7210_v18, %v5635_v15  ;;  %v5644_v36 = vor.u32 %v7211_v35, %v5643_v32  ;;  %v5611_v35 = vld [vmem:[#allocation7 + $0x18] sm:$0xf] }
 0x2a9   : > { %v1622_v39 = vpop.f32.mrf.mxu3 }
 0x2aa   : > { %v2252_v41 = vmax.f32 %v2251_v23, %v1622_v39  ;;  %1879 = vmatpush.bf16.msra.mxu2 %v5636_v21  ;;  %2057 = vmatpush.bf16.msra.mxu0 %v5644_v36 }
 0x2ab   : > { %v1533_v42 = vpop.f32.mrf.mxu2  ;;  %v1714_v43 = vpop.f32.mrf.mxu0 }
 0x2ac   : > { %v2231_v44 = vmax.f32 %v2230_v27, %v1533_v42  ;;  %v2274_v46 = vmax.f32 %v2273_v29, %v1714_v43 }
 0x2ae   : > { %1664 = vmatmul.bf16.gmra.mxu3 %v8287_v58  ;;  %1753 = vmatmul.bf16.gmra.mxu0 %v8287_v58 }
 0x2af   : > { %v1803_v50 = vpop.f32.mrf.mxu1 }
 0x2b0   : > { %v2295_v52 = vmax.f32 %v2294_v37, %v1803_v50  ;;  %1575 = vmatmul.bf16.gmra.mxu2 %v8287_v58  ;;  %v5605_v50 = vld [vmem:[#allocation7 + $0x30] sm:$0xf0] }
 0x2b1   : > { %v1625_v59 = vpop.f32.mrf.mxu3 }
 0x2b2   : > { %v2253_v61 = vmax.f32 %v2252_v41, %v1625_v59  ;;  %1842 = vmatmul.bf16.gmra.mxu1 %v8287_v58  ;;  %v5645_v59 = vld [vmem:[#allocation7 + $0x78] sm:$0xf0] }
 0x2b3   : > { %v1536_v31 = vpop.f32.mrf.mxu2  ;;  %v1716_v0 = vpop.f32.mrf.mxu0 }
 0x2b4   : > { %v2232_v1 = vmax.f32 %v2231_v44, %v1536_v31  ;;  %v2275_v2 = vmax.f32 %v2274_v46, %v1716_v0  ;;  %v5648_v31 = vor.u32 %v7207_v55, %v5645_v59 }
 0x2b6   : > { %2146 = vmatpush.bf16.msra.mxu1 %v5648_v31 }
 0x2b7   : > { %v1805_v4 = vpop.f32.mrf.mxu1 }
 0x2b8   : > { %v2296_v5 = vmax.f32 %v2295_v52, %v1805_v4  ;;  %v5608_v52 = vor.u32 %v7198_v49, %v5605_v50 }
 0x2b9   : > { %v1627_v7 = vpop.f32.mrf.mxu3 }
 0x2ba   : > { %v2254_v8 = vmax.f32 %v2253_v61, %v1627_v7  ;;  %1969 = vmatpush.bf16.msra.mxu3 %v5608_v52 }
 0x2bb   : > { %v1538_v9 = vpop.f32.mrf.mxu2  ;;  %v1719_v12 = vpop.f32.mrf.mxu0 }
 0x2bc   : > { %v2233_v13 = vmax.f32 %v2232_v1, %v1538_v9  ;;  %v2276_v14 = vmax.f32 %v2275_v2, %v1719_v12 }
 0x2be   : > { %1669 = vmatmul.bf16.gmra.mxu3 %v8299_v17  ;;  %1758 = vmatmul.bf16.gmra.mxu0 %v8299_v17 }
 0x2bf   : > { %v1808_v20 = vpop.f32.mrf.mxu1  ;;  %7601 = vmatpush.bf16.msrb.mxu3 %v8253_v10  ;;  %v5603_v10 = vld [vmem:[#allocation7 + $0x10] sm:$0xf] }
 0x2c0   : > { %v2297_v22 = vmax.f32 %v2296_v5, %v1808_v20  ;;  %1580 = vmatmul.bf16.gmra.mxu2 %v8299_v17  ;;  %v7202_v20 = vld [vmem:[#allocation7 + $0x2c] sm:$0xf0] }
 0x2c1   : > { %v1630_v23 = vpop.f32.mrf.mxu3 }
 0x2c2   : > { %v2255_v25 = vmax.f32 %v2254_v8, %v1630_v23  ;;  %1847 = vmatmul.bf16.gmra.mxu1 %v8299_v17 }
 0x2c3   : > { %v1541_v26 = vpop.f32.mrf.mxu2  ;;  %v1721_v27 = vpop.f32.mrf.mxu0  ;;  %7602 = vmatpush.bf16.msrb.mxu3 %v8276_v45 }
 0x2c4   : > { %v2234_v29 = vmax.f32 %v2233_v13, %v1541_v26  ;;  %v2277_v30 = vmax.f32 %v2276_v14, %v1721_v27 }
 0x2c7   : > { %v1810_v37 = vpop.f32.mrf.mxu1  ;;  %7603 = vmatpush.bf16.msrb.mxu3 %v8303_v24 }
 0x2c8   : > { %v2298_v39 = vmax.f32 %v2297_v22, %v1810_v37  ;;  %v5604_v22 = vor.u32 %v7202_v20, %v5603_v10 }
 0x2c9   : > { %v1632_v41 = vpop.f32.mrf.mxu3 }
 0x2ca   : > { %v2256_v42 = vmax.f32 %v2255_v25, %v1632_v41  ;;  %1880 = vmatpush.bf16.msra.mxu2 %v5604_v22 }
 0x2cb   : > { %v1543_v43 = vpop.f32.mrf.mxu2  ;;  %v1724_v44 = vpop.f32.mrf.mxu0  ;;  %7604 = vmatpush.bf16.msrb.mxu3 %v8330_v6  ;;  %v7203_v6 = vld [vmem:[#allocation7 + $0x34] sm:$0xf0] }
 0x2cc   : > { %v2235_v46 = vmax.f32 %v2234_v29, %v1543_v43  ;;  %v2278_v48 = vmax.f32 %v2277_v30, %v1724_v44  ;;  %v5612_v37 = vor.u32 %v7203_v6, %v5611_v35 }
 0x2ce   : > { %1674 = vmatmul.bf16.gmra.mxu3 %v8314_v40  ;;  %1763 = vmatmul.bf16.gmra.mxu0 %v8314_v40 }
 0x2cf   : > { %v1813_v51 = vpop.f32.mrf.mxu1  ;;  %7605 = vmatpush.bf16.msrb.mxu3 %v8356_v62  ;;  %2058 = vmatpush.bf16.msra.mxu0 %v5612_v37 }
 0x2d0   : > { %v2299_v54 = vmax.f32 %v2298_v39, %v1813_v51  ;;  %1585 = vmatmul.bf16.gmra.mxu2 %v8314_v40 }
 0x2d1   : > { %v1635_v61 = vpop.f32.mrf.mxu3 }
 0x2d2   : > { %v2257_v0 = vmax.f32 %v2256_v42, %v1635_v61  ;;  %1852 = vmatmul.bf16.gmra.mxu1 %v8314_v40 }
 0x2d3   : > { %v1546_v1 = vpop.f32.mrf.mxu2  ;;  %v1726_v2 = vpop.f32.mrf.mxu0  ;;  %7606 = vmatpush.bf16.msrb.mxu3 %v8367_v60 }
 0x2d4   : > { %v2236_v4 = vmax.f32 %v2235_v46, %v1546_v1  ;;  %v2279_v5 = vmax.f32 %v2278_v48, %v1726_v2  ;;  %v7199_v46 = vld [vmem:[#allocation7 + $0x1c] sm:$0xf] }
 0x2d5   : > { %v5613_v48 = vld [vmem:[#allocation7 + $0x38] sm:$0xf0] }
 0x2d6   : > { %v5616_v62 = vor.u32 %v7199_v46, %v5613_v48 }
 0x2d7   : > { %v1815_v7 = vpop.f32.mrf.mxu1  ;;  %7607 = vmatpush.bf16.msrb.mxu3 %v5648_v31 }
 0x2d8   : > { %v2300_v8 = vmax.f32 %v2299_v54, %v1815_v7  ;;  %2147 = vmatpush.bf16.msra.mxu1 %v5616_v62 }
 0x2d9   : > { %v1637_v9 = vpop.f32.mrf.mxu3 }
 0x2da   : > { %v2258_v12 = vmax.f32 %v2257_v0, %v1637_v9 }
 0x2db   : > { %v1548_v13 = vpop.f32.mrf.mxu2  ;;  %v1729_v14 = vpop.f32.mrf.mxu0  ;;  %7608 = vmatpush.bf16.msrb.mxu3 %v5616_v62 }
 0x2dc   : > { %v2237_v15 = vmax.f32 %v2236_v4, %v1548_v13  ;;  %v2280_v18 = vmax.f32 %v2279_v5, %v1729_v14 }
 0x2de   : > { %1679 = vmatmul.bf16.gmra.mxu3 %v8326_v63  ;;  %1768 = vmatmul.bf16.gmra.mxu0 %v8326_v63 }
 0x2df   : > { %v1818_v21 = vpop.f32.mrf.mxu1 }
 0x2e0   : > { %v2301_v45 = vmax.f32 %v2300_v8, %v1818_v21  ;;  %1590 = vmatmul.bf16.gmra.mxu2 %v8326_v63 }
 0x2e1   : > { %v1640_v23 = vpop.f32.mrf.mxu3 }
 0x2e2   : > { %v2259_v24 = vmax.f32 %v2258_v12, %v1640_v23  ;;  %1857 = vmatmul.bf16.gmra.mxu1 %v8326_v63 }
 0x2e3   : > { %v1551_v25 = vpop.f32.mrf.mxu2  ;;  %v1731_v26 = vpop.f32.mrf.mxu0 }
 0x2e4   : > { %v2238_v27 = vmax.f32 %v2237_v15, %v1551_v25  ;;  %v2281_v29 = vmax.f32 %v2280_v18, %v1731_v26 }
 0x2e7   : > { %v1820_v30 = vpop.f32.mrf.mxu1 }
 0x2e8   : > { %v2302_v32 = vmax.f32 %v2301_v45, %v1820_v30 }
 0x2e9   : > { %v1642_v36 = vpop.f32.mrf.mxu3 }
 0x2ea   : > { %v2260_v39 = vmax.f32 %v2259_v24, %v1642_v36 }
 0x2eb   : > { %v1553_v41 = vpop.f32.mrf.mxu2  ;;  %v1734_v42 = vpop.f32.mrf.mxu0 }
 0x2ec   : > { %v2239_v43 = vmax.f32 %v2238_v27, %v1553_v41  ;;  %v2282_v44 = vmax.f32 %v2281_v29, %v1734_v42 }
 0x2ee   : > { %1684 = vmatmul.bf16.gmra.mxu3 %v8341_v28  ;;  %1773 = vmatmul.bf16.gmra.mxu0 %v8341_v28 }
 0x2ef   : > { %v1823_v60 = vpop.f32.mrf.mxu1 }
 0x2f0   : > { %v2303_v49 = vmax.f32 %v2302_v32, %v1823_v60  ;;  %1595 = vmatmul.bf16.gmra.mxu2 %v8341_v28 }
 0x2f1   : > { %v1645_v50 = vpop.f32.mrf.mxu3 }
 0x2f2   : > { %v2261_v51 = vmax.f32 %v2260_v39, %v1645_v50  ;;  %1862 = vmatmul.bf16.gmra.mxu1 %v8341_v28 }
 0x2f3   : > { %v1556_v52 = vpop.f32.mrf.mxu2  ;;  %v1736_v54 = vpop.f32.mrf.mxu0 }
 0x2f4   : > { %v2240_v55 = vmax.f32 %v2239_v43, %v1556_v52  ;;  %v2283_v59 = vmax.f32 %v2282_v44, %v1736_v54 }
 0x2f7   : > { %v1825_v61 = vpop.f32.mrf.mxu1 }
 0x2f8   : > { %v2304_v31 = vmax.f32 %v2303_v49, %v1825_v61 }
 0x2f9   : > { %v1647_v0 = vpop.f32.mrf.mxu3 }
 0x2fa   : > { %v2262_v1 = vmax.f32 %v2261_v51, %v1647_v0 }
 0x2fb   : > { %v1558_v2 = vpop.f32.mrf.mxu2  ;;  %v1739_v4 = vpop.f32.mrf.mxu0 }
 0x2fc   : > { %v2241_v5 = vmax.f32 %v2240_v55, %v1558_v2  ;;  %v2284_v7 = vmax.f32 %v2283_v59, %v1739_v4 }
 0x2fe   : > { %1689 = vmatmul.bf16.gmra.mxu3 %v8353_v56  ;;  %1778 = vmatmul.bf16.gmra.mxu0 %v8353_v56 }
 0x2ff   : > { %v1828_v8 = vpop.f32.mrf.mxu1 }
 0x300   : > { %v2305_v9 = vmax.f32 %v2304_v31, %v1828_v8  ;;  %1600 = vmatmul.bf16.gmra.mxu2 %v8353_v56 }
 0x301   : > { %v1650_v12 = vpop.f32.mrf.mxu3 }
 0x302   : > { %v2263_v13 = vmax.f32 %v2262_v1, %v1650_v12  ;;  %1867 = vmatmul.bf16.gmra.mxu1 %v8353_v56 }
 0x303   : > { %v1561_v14 = vpop.f32.mrf.mxu2  ;;  %v1741_v15 = vpop.f32.mrf.mxu0 }
 0x304   : > { %v2242_v18 = vmax.f32 %v2241_v5, %v1561_v14  ;;  %v2285_v10 = vmax.f32 %v2284_v7, %v1741_v15 }
 0x306   : > { %v2286_v20 = vrot.slane %v2285_v10, 4 }
 0x307   : > { %v1830_v21 = vpop.f32.mrf.mxu1 }
 0x308   : > { %v2287_v22 = vmax.f32 %v2285_v10, %v2286_v20  ;;  %v2306_v45 = vmax.f32 %v2305_v9, %v1830_v21 }
 0x309   : > { %v1652_v23 = vpop.f32.mrf.mxu3 }
 0x30a   : > { %v2288_v24 = vrot.slane %v2287_v22, 2  ;;  %v2307_v25 = vrot.slane %v2306_v45, 4  ;;  %v2264_v26 = vmax.f32 %v2263_v13, %v1652_v23 }
 0x30b   : > { %v1563_v27 = vpop.f32.mrf.mxu2  ;;  %v1744_v29 = vpop.f32.mrf.mxu0 }
 0x30c   : > { %v2289_v30 = vmax.f32 %v2287_v22, %v2288_v24  ;;  %v2308_v32 = vmax.f32 %v2306_v45, %v2307_v25  ;;  %v2265_v35 = vrot.slane %v2264_v26, 4  ;;  %v2243_v6 = vmax.f32 %v2242_v18, %v1563_v27 }
 0x30e   : > { %v2290_v36 = vrot.slane %v2289_v30, 1  ;;  %v2309_v37 = vrot.slane %v2308_v32, 2  ;;  %v2266_v39 = vmax.f32 %v2264_v26, %v2265_v35  ;;  %v2244_v41 = vrot.slane %v2243_v6, 4  ;;  %1970 = vmatmul.bf16.vlgmr.msra.gmra.mxu3 %v8247_v3  ;;  %2059 = vmatmul.bf16.vlgmr.msra.gmra.mxu0 %v8247_v3 }
 0x30f   : > { %v1833_v42 = vpop.f32.mrf.mxu1 }
 0x310   : > { %v8399_v43 = vmax.f32 %v2289_v30, %v2290_v36  ;;  %v2310_v44 = vmax.f32 %v2308_v32, %v2309_v37  ;;  %v2267_v46 = vrot.slane %v2266_v39, 2  ;;  %v2245_v48 = vmax.f32 %v2243_v6, %v2244_v41  ;;  %1881 = vmatmul.bf16.vlgmr.msra.gmra.mxu2 %v8247_v3 }
 0x311   : > { %v1655_v62 = vpop.f32.mrf.mxu3 }
 0x312   : > { %v2311_v60 = vrot.slane %v2310_v44, 1  ;;  %v2268_v49 = vmax.f32 %v2266_v39, %v2267_v46  ;;  %v2246_v50 = vrot.slane %v2245_v48, 2  ;;  %2148 = vmatmul.bf16.vlgmr.msra.gmra.mxu1 %v8247_v3 }
 0x313   : > { %v1566_v51 = vpop.f32.mrf.mxu2  ;;  %v1746_v52 = vpop.f32.mrf.mxu0 }
 0x314   : > { %v8403_v54 = vmax.f32 %v2310_v44, %v2311_v60  ;;  %v2269_v55 = vrot.slane %v2268_v49, 1  ;;  %v2247_v59 = vmax.f32 %v2245_v48, %v2246_v50  ;;  %v2439_v61 = vmax.f32 %v1744_v29, %v1746_v52 }
 0x316   : > { %v8405_v31 = vmax.f32 %v2268_v49, %v2269_v55  ;;  %v2248_v0 = vrot.slane %v2247_v59, 1 }
 0x317   : > { %v1835_v1 = vpop.f32.mrf.mxu1 }
 0x318   : > { %v8407_v2 = vmax.f32 %v2247_v59, %v2248_v0  ;;  %v2460_v4 = vmax.f32 %v1833_v42, %v1835_v1 }
 0x319   : > { %v1657_v5 = vpop.f32.mrf.mxu3 }
 0x31a   : > { %v2418_v7 = vmax.f32 %v1655_v62, %v1657_v5 }
 0x31b   : > { %v1568_v8 = vpop.f32.mrf.mxu2  ;;  %v1749_v9 = vpop.f32.mrf.mxu0 }
 0x31c   : > { %v2397_v12 = vmax.f32 %v1566_v51, %v1568_v8  ;;  %v2440_v3 = vmax.f32 %v2439_v61, %v1749_v9 }
 0x31e   : > { %1975 = vmatmul.bf16.gmra.mxu3 %v8258_v16  ;;  %2064 = vmatmul.bf16.gmra.mxu0 %v8258_v16 }
 0x31f   : > { %v1838_v13 = vpop.f32.mrf.mxu1 }
 0x320   : > { %v2461_v14 = vmax.f32 %v2460_v4, %v1838_v13  ;;  %1886 = vmatmul.bf16.gmra.mxu2 %v8258_v16 }
 0x321   : > { %v1660_v15 = vpop.f32.mrf.mxu3 }
 0x322   : > { %v2419_v18 = vmax.f32 %v2418_v7, %v1660_v15  ;;  %2153 = vmatmul.bf16.gmra.mxu1 %v8258_v16 }
 0x323   : > { %v1571_v10 = vpop.f32.mrf.mxu2  ;;  %v1751_v20 = vpop.f32.mrf.mxu0 }
 0x324   : > { %v2398_v21 = vmax.f32 %v2397_v12, %v1571_v10  ;;  %v2441_v22 = vmax.f32 %v2440_v3, %v1751_v20 }
 0x327   : > { %v1840_v45 = vpop.f32.mrf.mxu1 }
 0x328   : > { %v2462_v23 = vmax.f32 %v2461_v14, %v1840_v45 }
 0x329   : > { %v1662_v24 = vpop.f32.mrf.mxu3 }
 0x32a   : > { %v2420_v25 = vmax.f32 %v2419_v18, %v1662_v24 }
 0x32b   : > { %v1573_v26 = vpop.f32.mrf.mxu2  ;;  %v1754_v27 = vpop.f32.mrf.mxu0 }
 0x32c   : > { %v2399_v29 = vmax.f32 %v2398_v21, %v1573_v26  ;;  %v2442_v30 = vmax.f32 %v2441_v22, %v1754_v27 }
 0x32e   : > { %1980 = vmatmul.bf16.gmra.mxu3 %v8267_v33  ;;  %2069 = vmatmul.bf16.gmra.mxu0 %v8267_v33 }
 0x32f   : > { %v1843_v32 = vpop.f32.mrf.mxu1 }
 0x330   : > { %v2463_v35 = vmax.f32 %v2462_v23, %v1843_v32  ;;  %1891 = vmatmul.bf16.gmra.mxu2 %v8267_v33 }
 0x331   : > { %v1665_v16 = vpop.f32.mrf.mxu3 }
 0x332   : > { %v2421_v6 = vmax.f32 %v2420_v25, %v1665_v16  ;;  %2158 = vmatmul.bf16.gmra.mxu1 %v8267_v33 }
 0x333   : > { %v1576_v36 = vpop.f32.mrf.mxu2  ;;  %v1756_v37 = vpop.f32.mrf.mxu0 }
 0x334   : > { %v2400_v39 = vmax.f32 %v2399_v29, %v1576_v36  ;;  %v2443_v41 = vmax.f32 %v2442_v30, %v1756_v37 }
 0x337   : > { %v1845_v42 = vpop.f32.mrf.mxu1 }
 0x338   : > { %v2464_v44 = vmax.f32 %v2463_v35, %v1845_v42 }
 0x339   : > { %v1667_v46 = vpop.f32.mrf.mxu3 }
 0x33a   : > { %v2422_v48 = vmax.f32 %v2421_v6, %v1667_v46 }
 0x33b   : > { %v1578_v62 = vpop.f32.mrf.mxu2  ;;  %v1759_v60 = vpop.f32.mrf.mxu0 }
 0x33c   : > { %v2401_v49 = vmax.f32 %v2400_v39, %v1578_v62  ;;  %v2444_v50 = vmax.f32 %v2443_v41, %v1759_v60 }
 0x33e   : > { %1985 = vmatmul.bf16.gmra.mxu3 %v8282_v53  ;;  %2074 = vmatmul.bf16.gmra.mxu0 %v8282_v53 }
 0x33f   : > { %v1848_v51 = vpop.f32.mrf.mxu1 }
 0x340   : > { %v2465_v52 = vmax.f32 %v2464_v44, %v1848_v51  ;;  %1896 = vmatmul.bf16.gmra.mxu2 %v8282_v53 }
 0x341   : > { %v1670_v33 = vpop.f32.mrf.mxu3 }
 0x342   : > { %v2423_v55 = vmax.f32 %v2422_v48, %v1670_v33  ;;  %2163 = vmatmul.bf16.gmra.mxu1 %v8282_v53 }
 0x343   : > { %v1581_v59 = vpop.f32.mrf.mxu2  ;;  %v1761_v61 = vpop.f32.mrf.mxu0 }
 0x344   : > { %v2402_v0 = vmax.f32 %v2401_v49, %v1581_v59  ;;  %v2445_v1 = vmax.f32 %v2444_v50, %v1761_v61 }
 0x347   : > { %v1850_v4 = vpop.f32.mrf.mxu1 }
 0x348   : > { %v2466_v5 = vmax.f32 %v2465_v52, %v1850_v4 }
 0x349   : > { %v1672_v7 = vpop.f32.mrf.mxu3 }
 0x34a   : > { %v2424_v8 = vmax.f32 %v2423_v55, %v1672_v7 }
 0x34b   : > { %v1583_v9 = vpop.f32.mrf.mxu2  ;;  %v1764_v12 = vpop.f32.mrf.mxu0 }
 0x34c   : > { %v2403_v3 = vmax.f32 %v2402_v0, %v1583_v9  ;;  %v2446_v13 = vmax.f32 %v2445_v1, %v1764_v12 }
 0x34e   : > { %1990 = vmatmul.bf16.gmra.mxu3 %v8294_v11  ;;  %2079 = vmatmul.bf16.gmra.mxu0 %v8294_v11 }
 0x34f   : > { %v1853_v14 = vpop.f32.mrf.mxu1 }
 0x350   : > { %v2467_v15 = vmax.f32 %v2466_v5, %v1853_v14  ;;  %1901 = vmatmul.bf16.gmra.mxu2 %v8294_v11 }
 0x351   : > { %v1675_v53 = vpop.f32.mrf.mxu3 }
 0x352   : > { %v2425_v18 = vmax.f32 %v2424_v8, %v1675_v53  ;;  %2168 = vmatmul.bf16.gmra.mxu1 %v8294_v11 }
 0x353   : > { %v1586_v10 = vpop.f32.mrf.mxu2  ;;  %v1766_v20 = vpop.f32.mrf.mxu0 }
 0x354   : > { %v2404_v21 = vmax.f32 %v2403_v3, %v1586_v10  ;;  %v2447_v22 = vmax.f32 %v2446_v13, %v1766_v20 }
 0x357   : > { %v1855_v45 = vpop.f32.mrf.mxu1 }
 0x358   : > { %v2468_v23 = vmax.f32 %v2467_v15, %v1855_v45 }
 0x359   : > { %v1677_v24 = vpop.f32.mrf.mxu3 }
 0x35a   : > { %v2426_v25 = vmax.f32 %v2425_v18, %v1677_v24 }
 0x35b   : > { %v1588_v26 = vpop.f32.mrf.mxu2  ;;  %v1769_v27 = vpop.f32.mrf.mxu0 }
 0x35c   : > { %v2405_v29 = vmax.f32 %v2404_v21, %v1588_v26  ;;  %v2448_v30 = vmax.f32 %v2447_v22, %v1769_v27 }
 0x35e   : > { %1995 = vmatmul.bf16.gmra.mxu3 %v8309_v34  ;;  %2084 = vmatmul.bf16.gmra.mxu0 %v8309_v34 }
 0x35f   : > { %v1858_v32 = vpop.f32.mrf.mxu1 }
 0x360   : > { %v2469_v35 = vmax.f32 %v2468_v23, %v1858_v32  ;;  %1906 = vmatmul.bf16.gmra.mxu2 %v8309_v34 }
 0x361   : > { %v1680_v11 = vpop.f32.mrf.mxu3 }
 0x362   : > { %v2427_v16 = vmax.f32 %v2426_v25, %v1680_v11  ;;  %2173 = vmatmul.bf16.gmra.mxu1 %v8309_v34 }
 0x363   : > { %v1591_v6 = vpop.f32.mrf.mxu2  ;;  %v1771_v36 = vpop.f32.mrf.mxu0 }
 0x364   : > { %v2406_v37 = vmax.f32 %v2405_v29, %v1591_v6  ;;  %v2449_v39 = vmax.f32 %v2448_v30, %v1771_v36 }
 0x367   : > { %v1860_v41 = vpop.f32.mrf.mxu1 }
 0x368   : > { %v2470_v42 = vmax.f32 %v2469_v35, %v1860_v41 }
 0x369   : > { %v1682_v44 = vpop.f32.mrf.mxu3 }
 0x36a   : > { %v2428_v46 = vmax.f32 %v2427_v16, %v1682_v44 }
 0x36b   : > { %v1593_v48 = vpop.f32.mrf.mxu2  ;;  %v1774_v62 = vpop.f32.mrf.mxu0 }
 0x36c   : > { %v2407_v60 = vmax.f32 %v2406_v37, %v1593_v48  ;;  %v2450_v49 = vmax.f32 %v2449_v39, %v1774_v62 }
 0x36e   : > { %2000 = vmatmul.bf16.gmra.mxu3 %v8321_v57  ;;  %2089 = vmatmul.bf16.gmra.mxu0 %v8321_v57 }
 0x36f   : > { %v1863_v50 = vpop.f32.mrf.mxu1 }
 0x370   : > { %v2471_v51 = vmax.f32 %v2470_v42, %v1863_v50  ;;  %1911 = vmatmul.bf16.gmra.mxu2 %v8321_v57 }
 0x371   : > { %v1685_v34 = vpop.f32.mrf.mxu3 }
 0x372   : > { %v2429_v52 = vmax.f32 %v2428_v46, %v1685_v34  ;;  %2178 = vmatmul.bf16.gmra.mxu1 %v8321_v57 }
 0x373   : > { %v1596_v33 = vpop.f32.mrf.mxu2  ;;  %v1776_v55 = vpop.f32.mrf.mxu0 }
 0x374   : > { %v2408_v59 = vmax.f32 %v2407_v60, %v1596_v33  ;;  %v2451_v61 = vmax.f32 %v2450_v49, %v1776_v55 }
 0x377   : > { %v1865_v0 = vpop.f32.mrf.mxu1 }
 0x378   : > { %v2472_v1 = vmax.f32 %v2471_v51, %v1865_v0 }
 0x379   : > { %v1687_v4 = vpop.f32.mrf.mxu3 }
 0x37a   : > { %v2430_v5 = vmax.f32 %v2429_v52, %v1687_v4 }
 0x37b   : > { %v1598_v7 = vpop.f32.mrf.mxu2  ;;  %v1779_v8 = vpop.f32.mrf.mxu0 }
 0x37c   : > { %v2409_v9 = vmax.f32 %v2408_v59, %v1598_v7  ;;  %v2452_v12 = vmax.f32 %v2451_v61, %v1779_v8 }
 0x37e   : > { %2005 = vmatmul.bf16.gmra.mxu3 %v8336_v19  ;;  %2094 = vmatmul.bf16.gmra.mxu0 %v8336_v19 }
 0x37f   : > { %v1868_v3 = vpop.f32.mrf.mxu1 }
 0x380   : > { %v2473_v13 = vmax.f32 %v2472_v1, %v1868_v3  ;;  %1916 = vmatmul.bf16.gmra.mxu2 %v8336_v19 }
 0x381   : > { %v1690_v57 = vpop.f32.mrf.mxu3 }
 0x382   : > { %v2431_v14 = vmax.f32 %v2430_v5, %v1690_v57  ;;  %2183 = vmatmul.bf16.gmra.mxu1 %v8336_v19 }
 0x383   : > { %v1601_v15 = vpop.f32.mrf.mxu2  ;;  %v1781_v53 = vpop.f32.mrf.mxu0 }
 0x384   : > { %v2410_v18 = vmax.f32 %v2409_v9, %v1601_v15  ;;  %v2453_v10 = vmax.f32 %v2452_v12, %v1781_v53 }
 0x386   : > { %v2454_v20 = vrot.slane %v2453_v10, 4 }
 0x387   : > { %v1870_v21 = vpop.f32.mrf.mxu1 }
 0x388   : > { %v2455_v22 = vmax.f32 %v2453_v10, %v2454_v20  ;;  %v2474_v45 = vmax.f32 %v2473_v13, %v1870_v21 }
 0x389   : > { %v1692_v23 = vpop.f32.mrf.mxu3 }
 0x38a   : > { %v2456_v24 = vrot.slane %v2455_v22, 2  ;;  %v2475_v25 = vrot.slane %v2474_v45, 4  ;;  %v2432_v26 = vmax.f32 %v2431_v14, %v1692_v23 }
 0x38b   : > { %v1603_v27 = vpop.f32.mrf.mxu2  ;;  %v2060_v29 = vpop.f32.mrf.mxu0 }
 0x38c   : > { %v2457_v30 = vmax.f32 %v2455_v22, %v2456_v24  ;;  %v2476_v32 = vmax.f32 %v2474_v45, %v2475_v25  ;;  %v2433_v35 = vrot.slane %v2432_v26, 4  ;;  %v2411_v11 = vmax.f32 %v2410_v18, %v1603_v27 }
 0x38e   : > { %v2458_v16 = vrot.slane %v2457_v30, 1  ;;  %v2477_v19 = vrot.slane %v2476_v32, 2  ;;  %v2434_v6 = vmax.f32 %v2432_v26, %v2433_v35  ;;  %v2412_v36 = vrot.slane %v2411_v11, 4  ;;  %2010 = vmatmul.bf16.gmra.mxu3 %v8348_v47  ;;  %2099 = vmatmul.bf16.gmra.mxu0 %v8348_v47 }
 0x38f   : > { %v2149_v37 = vpop.f32.mrf.mxu1 }
 0x390   : > { %v8439_v39 = vmax.f32 %v2457_v30, %v2458_v16  ;;  %v2478_v41 = vmax.f32 %v2476_v32, %v2477_v19  ;;  %v2435_v42 = vrot.slane %v2434_v6, 2  ;;  %v2413_v44 = vmax.f32 %v2411_v11, %v2412_v36  ;;  %1921 = vmatmul.bf16.gmra.mxu2 %v8348_v47 }
 0x391   : > { %v1971_v46 = vpop.f32.mrf.mxu3 }
 0x392   : > { %v2479_v48 = vrot.slane %v2478_v41, 1  ;;  %v2436_v62 = vmax.f32 %v2434_v6, %v2435_v42  ;;  %v2414_v60 = vrot.slane %v2413_v44, 2  ;;  %2188 = vmatmul.bf16.gmra.mxu1 %v8348_v47 }
 0x393   : > { %v1882_v49 = vpop.f32.mrf.mxu2  ;;  %v2062_v50 = vpop.f32.mrf.mxu0 }
 0x394   : > { %v8443_v51 = vmax.f32 %v2478_v41, %v2479_v48  ;;  %v2437_v34 = vrot.slane %v2436_v62, 1  ;;  %v2415_v52 = vmax.f32 %v2413_v44, %v2414_v60  ;;  %v2355_v33 = vmax.f32 %v2060_v29, %v2062_v50 }
 0x396   : > { %v8445_v55 = vmax.f32 %v2436_v62, %v2437_v34  ;;  %v2416_v59 = vrot.slane %v2415_v52, 1 }
 0x397   : > { %v2151_v61 = vpop.f32.mrf.mxu1 }
 0x398   : > { %v8447_v0 = vmax.f32 %v2415_v52, %v2416_v59  ;;  %v2376_v1 = vmax.f32 %v2149_v37, %v2151_v61 }
 0x399   : > { %v1973_v4 = vpop.f32.mrf.mxu3 }
 0x39a   : > { %v2334_v5 = vmax.f32 %v1971_v46, %v1973_v4 }
 0x39b   : > { %v1884_v7 = vpop.f32.mrf.mxu2  ;;  %v2065_v8 = vpop.f32.mrf.mxu0 }
 0x39c   : > { %v2313_v9 = vmax.f32 %v1882_v49, %v1884_v7  ;;  %v2356_v47 = vmax.f32 %v2355_v33, %v2065_v8 }
 0x39e   : > { %2015 = vmatmul.bf16.gmra.mxu3 %v8272_v38  ;;  %2104 = vmatmul.bf16.gmra.mxu0 %v8272_v38 }
 0x39f   : > { %v2154_v12 = vpop.f32.mrf.mxu1 }
 0x3a0   : > { %v2377_v3 = vmax.f32 %v2376_v1, %v2154_v12  ;;  %1926 = vmatmul.bf16.gmra.mxu2 %v8272_v38 }
 0x3a1   : > { %v1976_v13 = vpop.f32.mrf.mxu3 }
 0x3a2   : > { %v2335_v57 = vmax.f32 %v2334_v5, %v1976_v13  ;;  %2193 = vmatmul.bf16.gmra.mxu1 %v8272_v38 }
 0x3a3   : > { %v1887_v14 = vpop.f32.mrf.mxu2  ;;  %v2067_v15 = vpop.f32.mrf.mxu0 }
 0x3a4   : > { %v2314_v53 = vmax.f32 %v2313_v9, %v1887_v14  ;;  %v2357_v18 = vmax.f32 %v2356_v47, %v2067_v15 }
 0x3a7   : > { %v2156_v10 = vpop.f32.mrf.mxu1 }
 0x3a8   : > { %v2378_v20 = vmax.f32 %v2377_v3, %v2156_v10 }
 0x3a9   : > { %v1978_v21 = vpop.f32.mrf.mxu3 }
 0x3aa   : > { %v2336_v22 = vmax.f32 %v2335_v57, %v1978_v21 }
 0x3ab   : > { %v1889_v45 = vpop.f32.mrf.mxu2  ;;  %v2070_v23 = vpop.f32.mrf.mxu0 }
 0x3ac   : > { %v2315_v24 = vmax.f32 %v2314_v53, %v1889_v45  ;;  %v2358_v25 = vmax.f32 %v2357_v18, %v2070_v23 }
 0x3ae   : > { %2020 = vmatmul.bf16.gmra.mxu3 %v8287_v58  ;;  %2109 = vmatmul.bf16.gmra.mxu0 %v8287_v58 }
 0x3af   : > { %v2159_v26 = vpop.f32.mrf.mxu1 }
 0x3b0   : > { %v2379_v27 = vmax.f32 %v2378_v20, %v2159_v26  ;;  %1931 = vmatmul.bf16.gmra.mxu2 %v8287_v58 }
 0x3b1   : > { %v1981_v38 = vpop.f32.mrf.mxu3 }
 0x3b2   : > { %v2337_v29 = vmax.f32 %v2336_v22, %v1981_v38  ;;  %2198 = vmatmul.bf16.gmra.mxu1 %v8287_v58 }
 0x3b3   : > { %v1892_v30 = vpop.f32.mrf.mxu2  ;;  %v2072_v32 = vpop.f32.mrf.mxu0 }
 0x3b4   : > { %v2316_v35 = vmax.f32 %v2315_v24, %v1892_v30  ;;  %v2359_v11 = vmax.f32 %v2358_v25, %v2072_v32 }
 0x3b7   : > { %v2161_v16 = vpop.f32.mrf.mxu1 }
 0x3b8   : > { %v2380_v19 = vmax.f32 %v2379_v27, %v2161_v16 }
 0x3b9   : > { %v1983_v6 = vpop.f32.mrf.mxu3 }
 0x3ba   : > { %v2338_v36 = vmax.f32 %v2337_v29, %v1983_v6 }
 0x3bb   : > { %v1894_v37 = vpop.f32.mrf.mxu2  ;;  %v2075_v41 = vpop.f32.mrf.mxu0 }
 0x3bc   : > { %v2317_v42 = vmax.f32 %v2316_v35, %v1894_v37  ;;  %v2360_v44 = vmax.f32 %v2359_v11, %v2075_v41 }
 0x3be   : > { %2025 = vmatmul.bf16.gmra.mxu3 %v8299_v17  ;;  %2114 = vmatmul.bf16.gmra.mxu0 %v8299_v17 }
 0x3bf   : > { %v2164_v46 = vpop.f32.mrf.mxu1 }
 0x3c0   : > { %v2381_v48 = vmax.f32 %v2380_v19, %v2164_v46  ;;  %1936 = vmatmul.bf16.gmra.mxu2 %v8299_v17 }
 0x3c1   : > { %v1986_v58 = vpop.f32.mrf.mxu3 }
 0x3c2   : > { %v2339_v62 = vmax.f32 %v2338_v36, %v1986_v58  ;;  %2203 = vmatmul.bf16.gmra.mxu1 %v8299_v17 }
 0x3c3   : > { %v1897_v60 = vpop.f32.mrf.mxu2  ;;  %v2077_v49 = vpop.f32.mrf.mxu0 }
 0x3c4   : > { %v2318_v50 = vmax.f32 %v2317_v42, %v1897_v60  ;;  %v2361_v34 = vmax.f32 %v2360_v44, %v2077_v49 }
 0x3c7   : > { %v2166_v52 = vpop.f32.mrf.mxu1 }
 0x3c8   : > { %v2382_v33 = vmax.f32 %v2381_v48, %v2166_v52 }
 0x3c9   : > { %v1988_v59 = vpop.f32.mrf.mxu3 }
 0x3ca   : > { %v2340_v61 = vmax.f32 %v2339_v62, %v1988_v59 }
 0x3cb   : > { %v1899_v1 = vpop.f32.mrf.mxu2  ;;  %v2080_v4 = vpop.f32.mrf.mxu0 }
 0x3cc   : > { %v2319_v5 = vmax.f32 %v2318_v50, %v1899_v1  ;;  %v2362_v7 = vmax.f32 %v2361_v34, %v2080_v4 }
 0x3ce   : > { %2030 = vmatmul.bf16.gmra.mxu3 %v8314_v40  ;;  %2119 = vmatmul.bf16.gmra.mxu0 %v8314_v40 }
 0x3cf   : > { %v2169_v8 = vpop.f32.mrf.mxu1 }
 0x3d0   : > { %v2383_v9 = vmax.f32 %v2382_v33, %v2169_v8  ;;  %1941 = vmatmul.bf16.gmra.mxu2 %v8314_v40 }
 0x3d1   : > { %v1991_v17 = vpop.f32.mrf.mxu3 }
 0x3d2   : > { %v2341_v47 = vmax.f32 %v2340_v61, %v1991_v17  ;;  %2208 = vmatmul.bf16.gmra.mxu1 %v8314_v40 }
 0x3d3   : > { %v1902_v12 = vpop.f32.mrf.mxu2  ;;  %v2082_v3 = vpop.f32.mrf.mxu0 }
 0x3d4   : > { %v2320_v13 = vmax.f32 %v2319_v5, %v1902_v12  ;;  %v2363_v57 = vmax.f32 %v2362_v7, %v2082_v3 }
 0x3d7   : > { %v2171_v14 = vpop.f32.mrf.mxu1 }
 0x3d8   : > { %v2384_v15 = vmax.f32 %v2383_v9, %v2171_v14 }
 0x3d9   : > { %v1993_v53 = vpop.f32.mrf.mxu3 }
 0x3da   : > { %v2342_v18 = vmax.f32 %v2341_v47, %v1993_v53 }
 0x3db   : > { %v1904_v10 = vpop.f32.mrf.mxu2  ;;  %v2085_v20 = vpop.f32.mrf.mxu0 }
 0x3dc   : > { %v2321_v21 = vmax.f32 %v2320_v13, %v1904_v10  ;;  %v2364_v22 = vmax.f32 %v2363_v57, %v2085_v20 }
 0x3de   : > { %2035 = vmatmul.bf16.gmra.mxu3 %v8326_v63  ;;  %2124 = vmatmul.bf16.gmra.mxu0 %v8326_v63 }
 0x3df   : > { %v2174_v45 = vpop.f32.mrf.mxu1 }
 0x3e0   : > { %v2385_v23 = vmax.f32 %v2384_v15, %v2174_v45  ;;  %1946 = vmatmul.bf16.gmra.mxu2 %v8326_v63 }
 0x3e1   : > { %v1996_v40 = vpop.f32.mrf.mxu3 }
 0x3e2   : > { %v2343_v24 = vmax.f32 %v2342_v18, %v1996_v40  ;;  %2213 = vmatmul.bf16.gmra.mxu1 %v8326_v63 }
 0x3e3   : > { %v1907_v25 = vpop.f32.mrf.mxu2  ;;  %v2087_v26 = vpop.f32.mrf.mxu0 }
 0x3e4   : > { %v2322_v27 = vmax.f32 %v2321_v21, %v1907_v25  ;;  %v2365_v38 = vmax.f32 %v2364_v22, %v2087_v26 }
 0x3e7   : > { %v2176_v29 = vpop.f32.mrf.mxu1 }
 0x3e8   : > { %v2386_v30 = vmax.f32 %v2385_v23, %v2176_v29 }
 0x3e9   : > { %v1998_v32 = vpop.f32.mrf.mxu3 }
 0x3ea   : > { %v2344_v35 = vmax.f32 %v2343_v24, %v1998_v32 }
 0x3eb   : > { %v1909_v11 = vpop.f32.mrf.mxu2  ;;  %v2090_v16 = vpop.f32.mrf.mxu0 }
 0x3ec   : > { %v2323_v19 = vmax.f32 %v2322_v27, %v1909_v11  ;;  %v2366_v6 = vmax.f32 %v2365_v38, %v2090_v16 }
 0x3ee   : > { %2040 = vmatmul.bf16.gmra.mxu3 %v8341_v28  ;;  %2129 = vmatmul.bf16.gmra.mxu0 %v8341_v28 }
 0x3ef   : > { %v2179_v36 = vpop.f32.mrf.mxu1 }
 0x3f0   : > { %v2387_v37 = vmax.f32 %v2386_v30, %v2179_v36  ;;  %1951 = vmatmul.bf16.gmra.mxu2 %v8341_v28 }
 0x3f1   : > { %v2001_v63 = vpop.f32.mrf.mxu3 }
 0x3f2   : > { %v2345_v41 = vmax.f32 %v2344_v35, %v2001_v63  ;;  %2218 = vmatmul.bf16.gmra.mxu1 %v8341_v28 }
 0x3f3   : > { %v1912_v42 = vpop.f32.mrf.mxu2  ;;  %v2092_v44 = vpop.f32.mrf.mxu0 }
 0x3f4   : > { %v2324_v46 = vmax.f32 %v2323_v19, %v1912_v42  ;;  %v2367_v48 = vmax.f32 %v2366_v6, %v2092_v44 }
 0x3f7   : > { %v2181_v58 = vpop.f32.mrf.mxu1 }
 0x3f8   : > { %v2388_v62 = vmax.f32 %v2387_v37, %v2181_v58 }
 0x3f9   : > { %v2003_v60 = vpop.f32.mrf.mxu3 }
 0x3fa   : > { %v2346_v49 = vmax.f32 %v2345_v41, %v2003_v60 }
 0x3fb   : > { %v1914_v50 = vpop.f32.mrf.mxu2  ;;  %v2095_v34 = vpop.f32.mrf.mxu0 }
 0x3fc   : > { %v2325_v52 = vmax.f32 %v2324_v46, %v1914_v50  ;;  %v2368_v33 = vmax.f32 %v2367_v48, %v2095_v34 }
 0x3fe   : > { %2045 = vmatmul.bf16.gmra.mxu3 %v8353_v56  ;;  %2134 = vmatmul.bf16.gmra.mxu0 %v8353_v56 }
 0x3ff   : > { %v2184_v59 = vpop.f32.mrf.mxu1 }
 0x400   : > { %v2389_v61 = vmax.f32 %v2388_v62, %v2184_v59  ;;  %1956 = vmatmul.bf16.gmra.mxu2 %v8353_v56 }
 0x401   : > { %v2006_v28 = vpop.f32.mrf.mxu3 }
 0x402   : > { %v2347_v1 = vmax.f32 %v2346_v49, %v2006_v28 }
 0x403   : > { %v1917_v4 = vpop.f32.mrf.mxu2  ;;  %v2097_v5 = vpop.f32.mrf.mxu0 }
 0x404   : > { %v2326_v7 = vmax.f32 %v2325_v52, %v1917_v4  ;;  %v2369_v8 = vmax.f32 %v2368_v33, %v2097_v5 }
 0x406   : > { %v2370_v9 = vrot.slane %v2369_v8, 4 }
 0x407   : > { %v2186_v17 = vpop.f32.mrf.mxu1 }
 0x408   : > { %v2371_v47 = vmax.f32 %v2369_v8, %v2370_v9  ;;  %v2390_v12 = vmax.f32 %v2389_v61, %v2186_v17 }
 0x409   : > { %v2008_v3 = vpop.f32.mrf.mxu3 }
 0x40a   : > { %v2372_v13 = vrot.slane %v2371_v47, 2  ;;  %v2391_v57 = vrot.slane %v2390_v12, 4  ;;  %v2348_v14 = vmax.f32 %v2347_v1, %v2008_v3 }
 0x40b   : > { %v1919_v15 = vpop.f32.mrf.mxu2  ;;  %v2100_v53 = vpop.f32.mrf.mxu0 }
 0x40c   : > { %v2373_v18 = vmax.f32 %v2371_v47, %v2372_v13  ;;  %v2392_v10 = vmax.f32 %v2390_v12, %v2391_v57  ;;  %v2349_v20 = vrot.slane %v2348_v14, 4  ;;  %v2327_v21 = vmax.f32 %v2326_v7, %v1919_v15 }
 0x40e   : > { %v2374_v22 = vrot.slane %v2373_v18, 1  ;;  %v2393_v45 = vrot.slane %v2392_v10, 2  ;;  %v2350_v23 = vmax.f32 %v2348_v14, %v2349_v20  ;;  %v2328_v40 = vrot.slane %v2327_v21, 4  ;;  %2223 = vmatmul.bf16.vlgmr.msrb.gmra.mxu3 %v8353_v56 }
 0x40f   : > { %v2189_v24 = vpop.f32.mrf.mxu1 }
 0x410   : > { %v8477_v25 = vmax.f32 %v2373_v18, %v2374_v22  ;;  %v2394_v26 = vmax.f32 %v2392_v10, %v2393_v45  ;;  %v2351_v27 = vrot.slane %v2350_v23, 2  ;;  %v2329_v38 = vmax.f32 %v2327_v21, %v2328_v40 }
 0x411   : > { %v2011_v29 = vpop.f32.mrf.mxu3 }
 0x412   : > { %v2395_v30 = vrot.slane %v2394_v26, 1  ;;  %v2352_v32 = vmax.f32 %v2350_v23, %v2351_v27  ;;  %v2330_v35 = vrot.slane %v2329_v38, 2 }
 0x413   : > { %v1922_v11 = vpop.f32.mrf.mxu2  ;;  %v2102_v16 = vpop.f32.mrf.mxu0 }
 0x414   : > { %v8479_v19 = vmax.f32 %v2394_v26, %v2395_v30  ;;  %v2353_v6 = vrot.slane %v2352_v32, 1  ;;  %v2331_v36 = vmax.f32 %v2329_v38, %v2330_v35  ;;  %v2523_v37 = vmax.f32 %v2100_v53, %v2102_v16 }
 0x416   : > { %v8481_v63 = vmax.f32 %v2352_v32, %v2353_v6  ;;  %v2332_v56 = vrot.slane %v2331_v36, 1 }
 0x417   : > { %v2191_v41 = vpop.f32.mrf.mxu1 }
 0x418   : > { %v8483_v42 = vmax.f32 %v2331_v36, %v2332_v56  ;;  %v2544_v44 = vmax.f32 %v2189_v24, %v2191_v41 }
 0x419   : > { %v2013_v46 = vpop.f32.mrf.mxu3 }
 0x41a   : > { %v2502_v48 = vmax.f32 %v2011_v29, %v2013_v46 }
 0x41b   : > { %v1924_v58 = vpop.f32.mrf.mxu2  ;;  %v2105_v62 = vpop.f32.mrf.mxu0 }
 0x41c   : > { %v2481_v60 = vmax.f32 %v1922_v11, %v1924_v58  ;;  %v2524_v49 = vmax.f32 %v2523_v37, %v2105_v62 }
 0x41f   : > { %v2194_v50 = vpop.f32.mrf.mxu1 }
 0x420   : > { %v8485_v34 = vmax.f32 %v2544_v44, %v2194_v50 }
 0x421   : > { %v2016_v52 = vpop.f32.mrf.mxu3 }
 0x422   : > { %v2503_v33 = vmax.f32 %v2502_v48, %v2016_v52 }
 0x423   : > { %v1927_v59 = vpop.f32.mrf.mxu2  ;;  %v2107_v61 = vpop.f32.mrf.mxu0 }
 0x424   : > { %v2482_v28 = vmax.f32 %v2481_v60, %v1927_v59  ;;  %v2525_v1 = vmax.f32 %v2524_v49, %v2107_v61 }
 0x427   : > { %v8487_v47 = vpop.f32.mrf.mxu1 }
 0x429   : > { %v2018_v4 = vpop.f32.mrf.mxu3 }
 0x42a   : > { %v2504_v5 = vmax.f32 %v2503_v33, %v2018_v4 }
 0x42b   : > { %v1929_v7 = vpop.f32.mrf.mxu2  ;;  %v2110_v8 = vpop.f32.mrf.mxu0 }
 0x42c   : > { %v2483_v9 = vmax.f32 %v2482_v28, %v1929_v7  ;;  %v2526_v17 = vmax.f32 %v2525_v1, %v2110_v8 }
 0x42f   : > { %v2199_v15 = vpop.f32.mrf.mxu1 }
 0x431   : > { %v2021_v12 = vpop.f32.mrf.mxu3 }
 0x432   : > { %v2505_v3 = vmax.f32 %v2504_v5, %v2021_v12 }
 0x433   : > { %v1932_v13 = vpop.f32.mrf.mxu2  ;;  %v2112_v57 = vpop.f32.mrf.mxu0 }
 0x434   : > { %v2484_v14 = vmax.f32 %v2483_v9, %v1932_v13  ;;  %v2527_v60 = vmax.f32 %v2526_v17, %v2112_v57 }
 0x437   : > { %v8489_v22 = vpop.f32.mrf.mxu1 }
 0x439   : > { %v2023_v53 = vpop.f32.mrf.mxu3 }
 0x43a   : > { %v2506_v18 = vmax.f32 %v2505_v3, %v2023_v53 }
 0x43b   : > { %v1934_v10 = vpop.f32.mrf.mxu2  ;;  %v2115_v20 = vpop.f32.mrf.mxu0 }
 0x43c   : > { %v2528_v50 = vmax.f32 %v2527_v60, %v2115_v20  ;;  %v2485_v1 = vmax.f32 %v2484_v14, %v1934_v10  ;;  %v2546_v14 = vmax.f32 %v8485_v34, %v8487_v47 }
 0x43e   : > { %v2547_v60 = vmax.f32 %v2546_v14, %v2199_v15 }
 0x43f   : > { %v2204_v29 = vpop.f32.mrf.mxu1 }
 0x441   : > { %v2026_v21 = vpop.f32.mrf.mxu3 }
 0x442   : > { %v2507_v45 = vmax.f32 %v2506_v18, %v2026_v21 }
 0x443   : > { %v1937_v23 = vpop.f32.mrf.mxu2  ;;  %v2117_v40 = vpop.f32.mrf.mxu0 }
 0x444   : > { %v2529_v59 = vmax.f32 %v2528_v50, %v2117_v40  ;;  %v2486_v7 = vmax.f32 %v2485_v1, %v1937_v23 }
 0x447   : > { %v8491_v11 = vpop.f32.mrf.mxu1 }
 0x449   : > { %v2028_v24 = vpop.f32.mrf.mxu3 }
 0x44a   : > { %v2508_v26 = vmax.f32 %v2507_v45, %v2028_v24 }
 0x44b   : > { %v1939_v27 = vpop.f32.mrf.mxu2  ;;  %v2120_v38 = vpop.f32.mrf.mxu0 }
 0x44c   : > { %v2530_v28 = vmax.f32 %v2529_v59, %v2120_v38  ;;  %v2487_v3 = vmax.f32 %v2486_v7, %v1939_v27 }
 0x44f   : > { %v2209_v37 = vpop.f32.mrf.mxu1 }
 0x451   : > { %v2031_v30 = vpop.f32.mrf.mxu3 }
 0x452   : > { %v2509_v13 = vmax.f32 %v2508_v26, %v2031_v30 }
 0x453   : > { %v1942_v32 = vpop.f32.mrf.mxu2  ;;  %v2122_v35 = vpop.f32.mrf.mxu0 }
 0x454   : > { %v2531_v4 = vmax.f32 %v2530_v28, %v2122_v35  ;;  %v2488_v18 = vmax.f32 %v2487_v3, %v1942_v32  ;;  %v2548_v32 = vmax.f32 %v2547_v60, %v8489_v22 }
 0x457   : > { %v8493_v48 = vpop.f32.mrf.mxu1 }
 0x459   : > { %v2033_v16 = vpop.f32.mrf.mxu3 }
 0x45a   : > { %v2510_v21 = vmax.f32 %v2509_v13, %v2033_v16 }
 0x45b   : > { %v1944_v6 = vpop.f32.mrf.mxu2  ;;  %v2125_v36 = vpop.f32.mrf.mxu0 }
 0x45c   : > { %v2532_v8 = vmax.f32 %v2531_v4, %v2125_v36  ;;  %v2489_v20 = vmax.f32 %v2488_v18, %v1944_v6 }
 0x45f   : > { %v2214_v61 = vpop.f32.mrf.mxu1 }
 0x461   : > { %v2036_v56 = vpop.f32.mrf.mxu3 }
 0x462   : > { %v2511_v45 = vmax.f32 %v2510_v21, %v2036_v56  ;;  %v2549_v56 = vmax.f32 %v2548_v32, %v2204_v29 }
 0x463   : > { %v1947_v41 = vpop.f32.mrf.mxu2  ;;  %v2127_v44 = vpop.f32.mrf.mxu0 }
 0x464   : > { %v2533_v53 = vmax.f32 %v2532_v8, %v2127_v44  ;;  %v2490_v10 = vmax.f32 %v2489_v20, %v1947_v41  ;;  %v2550_v47 = vmax.f32 %v2549_v56, %v8491_v11 }
 0x467   : > { %v2216_v57 = vpop.f32.mrf.mxu1 }
 0x469   : > { %v2038_v46 = vpop.f32.mrf.mxu3 }
 0x46a   : > { %v2512_v38 = vmax.f32 %v2511_v45, %v2038_v46 }
 0x46b   : > { %v1949_v58 = vpop.f32.mrf.mxu2  ;;  %v2130_v62 = vpop.f32.mrf.mxu0 }
 0x46c   : > { %v2534_v17 = vmax.f32 %v2533_v53, %v2130_v62  ;;  %v2491_v27 = vmax.f32 %v2490_v10, %v1949_v58  ;;  %v2551_v58 = vmax.f32 %v2550_v47, %v2209_v37 }
 0x46e   : > { %v2552_v22 = vmax.f32 %v2551_v58, %v8493_v48 }
 0x46f   : > { %v2219_v59 = vpop.f32.mrf.mxu1 }
 0x470   : > { %v2553_v7 = vmax.f32 %v2552_v22, %v2214_v61 }
 0x471   : > { %v2041_v49 = vpop.f32.mrf.mxu3 }
 0x472   : > { %v2513_v26 = vmax.f32 %v2512_v38, %v2041_v49  ;;  %v2554_v11 = vmax.f32 %v2553_v7, %v2216_v57 }
 0x473   : > { %v1952_v52 = vpop.f32.mrf.mxu2  ;;  %v2132_v33 = vpop.f32.mrf.mxu0 }
 0x474   : > { %v2535_v24 = vmax.f32 %v2534_v17, %v2132_v33  ;;  %v2492_v16 = vmax.f32 %v2491_v27, %v1952_v52  ;;  %v2555_v21 = vmax.f32 %v2554_v11, %v2219_v59 }
 0x477   : > { %v2221_v18 = vpop.f32.mrf.mxu1 }
 0x478   : > { %v2556_v20 = vmax.f32 %v2555_v21, %v2221_v18 }
 0x479   : > { %v2043_v5 = vpop.f32.mrf.mxu3 }
 0x47a   : > { %v2514_v44 = vmax.f32 %v2513_v26, %v2043_v5 }
 0x47b   : > { %v1954_v9 = vpop.f32.mrf.mxu2  ;;  %v2135_v12 = vpop.f32.mrf.mxu0 }
 0x47c   : > { %v2536_v23 = vmax.f32 %v2535_v24, %v2135_v12  ;;  %v2493_v62 = vmax.f32 %v2492_v16, %v1954_v9 }
 0x481   : > { %v2046_v40 = vpop.f32.mrf.mxu3 }
 0x482   : > { %v2515_v50 = vmax.f32 %v2514_v44, %v2046_v40 }
 0x483   : > { %v1957_v35 = vpop.f32.mrf.mxu2  ;;  %v2137_v36 = vpop.f32.mrf.mxu0 }
 0x484   : > { %v2537_v30 = vmax.f32 %v2536_v23, %v2137_v36  ;;  %v2494_v41 = vmax.f32 %v2493_v62, %v1957_v35 }
 0x486   : > { %v2538_v6 = vrot.slane %v2537_v30, 4 }
 0x488   : > { %v2539_v33 = vmax.f32 %v2537_v30, %v2538_v6 }
 0x489   : > { %v2048_v34 = vpop.f32.mrf.mxu3 }
 0x48a   : > { %v2540_v46 = vrot.slane %v2539_v33, 2  ;;  %v2516_v28 = vmax.f32 %v2515_v50, %v2048_v34 }
 0x48b   : > { %v1959_v15 = vpop.f32.mrf.mxu2 }
 0x48c   : > { %v2541_v49 = vmax.f32 %v2539_v33, %v2540_v46  ;;  %v2517_v1 = vrot.slane %v2516_v28, 4  ;;  %v2495_v4 = vmax.f32 %v2494_v41, %v1959_v15 }
 0x48e   : > { %v2542_v52 = vrot.slane %v2541_v49, 1  ;;  %v2518_v5 = vmax.f32 %v2516_v28, %v2517_v1  ;;  %v2496_v29 = vrot.slane %v2495_v4, 4 }
 0x490   : > { %v8500_v8 = vmax.f32 %v2541_v49, %v2542_v52  ;;  %v2519_v9 = vrot.slane %v2518_v5, 2  ;;  %v2497_v12 = vmax.f32 %v2495_v4, %v2496_v29 }
 0x491   : > { %v2224_v3 = vpop.f32.mrf.mxu3 }
 0x492   : > { %v2520_v13 = vmax.f32 %v2518_v5, %v2519_v9  ;;  %v2498_v53 = vrot.slane %v2497_v12, 2  ;;  %v2557_v40 = vmax.f32 %v2556_v20, %v2224_v3 }
 0x494   : > { %v2521_v37 = vrot.slane %v2520_v13, 1  ;;  %v2499_v17 = vmax.f32 %v2497_v12, %v2498_v53 }
 0x496   : > { %v8502_v45 = vmax.f32 %v2520_v13, %v2521_v37  ;;  %v2500_v48 = vrot.slane %v2499_v17, 1 }
 0x498   : > { %v8504_v24 = vmax.f32 %v2499_v17, %v2500_v48 }
 0x499   : > { %v2226_v61 = vpop.f32.mrf.mxu3 }
 0x49a   : > { %v2558_v14 = vmax.f32 %v2557_v40, %v2226_v61 }
 0x49c   : > { %v2559_v10 = vrot.slane %v2558_v14, 4 }
 0x49e   : > { %v2560_v38 = vmax.f32 %v2558_v14, %v2559_v10 }
 0x4a0   : > { %v2561_v23 = vrot.slane %v2560_v38, 2 }
 0x4a2   : > { %v2562_v35 = vmax.f32 %v2560_v38, %v2561_v23  ;;  %2568 = sbr.rel (%p5841_p12) target bundleno = 1207 (0x4b7), region = 137 }
 0x4a4   : > { %v2563_v57 = vrot.slane %v2562_v35, 1 }
 0x4a6   : > { %v8506_v36 = vmax.f32 %v2562_v35, %v2563_v57 }
 0x4a7   : > { %v2585_v60 = vrot.slane %v8405_v31, 6  ;;  %v2586_v27 = vrot.slane %v8399_v43, 4  ;;  %v2587_v26 = vrot.slane %v8403_v54, 2  ;;  %v2591_v30 = vrot.slane %v8445_v55, 6 }
 0x4a8   : > { %v2592_v32 = vrot.slane %v8439_v39, 4  ;;  %v2593_v16 = vrot.slane %v8443_v51, 2  ;;  %vm2598_vm4 = vcmask 1045508   ;;  %vm2600_vm5 = vcmask 1043456  }
 0x4a9   : > { %v2597_v44 = vsel %vm672_vm1, %v8407_v2, %v2585_v60  ;;  %v2599_v6 = vsel %vm2598_vm4, %v2586_v27, %v2587_v26  ;;  %v2605_v56 = vsel %vm672_vm1, %v8447_v0, %v2591_v30  ;;  %vm2616_vm6 = vcmask 1041409  }
 0x4aa   : > { %v2601_v62 = vsel %vm2600_vm5, %v2597_v44, %v2599_v6  ;;  %v2606_v50 = vsel %vm2598_vm4, %v2592_v32, %v2593_v16  ;;  %vm2618_vm7 = vcmask 1043459   ;;  %v2588_v59 = vrot.slane %v8481_v63, 6 }
 0x4ab   : > { %v2607_v33 = vsel %vm2600_vm5, %v2605_v56, %v2606_v50  ;;  %v2589_v34 = vrot.slane %v8477_v25, 4  ;;  %v2590_v41 = vrot.slane %v8479_v19, 2  ;;  %v2594_v46 = vrot.slane %v8502_v45, 6 }
 0x4ac   : > { %v2615_v47 = vrot.slane %v2607_v33, 7  ;;  %v2595_v28 = vrot.slane %v8500_v8, 4  ;;  %vm2620_vm8 = vcmask 1045509   ;;  %v2596_v15 = vrot.slane %v8506_v36, 2 }
 0x4ad   : > { %v2602_v58 = vsel %vm672_vm1, %v8483_v42, %v2588_v59  ;;  %vm2622_vm9 = vcmask 1047559   ;;  %v2603_v1 = vsel %vm2598_vm4, %v2589_v34, %v2590_v41  ;;  %v2608_v4 = vsel %vm672_vm1, %v8504_v24, %v2594_v46 }
 0x4ae   : > { %v2617_v49 = vsel %vm2616_vm6, %v2615_v47, %v2601_v62  ;;  %v2609_v52 = vsel %vm2598_vm4, %v2595_v28, %v2596_v15  ;;  %v2604_v29 = vsel %vm2600_vm5, %v2602_v58, %v2603_v1 }
 0x4af   : > { %v2619_v22 = vsel %vm2618_vm7, %v2615_v47, %v2617_v49  ;;  %v2610_v7 = vsel %vm2600_vm5, %v2608_v4, %v2609_v52 }
 0x4b0   : > { %v2621_v5 = vsel %vm2620_vm8, %v2615_v47, %v2619_v22  ;;  %v2626_v12 = vrot.slane %v2610_v7, 7 }
 0x4b1   : > { %v2623_v9 = vsel %vm2622_vm9, %v2615_v47, %v2621_v5 }
 0x4b2   : > { %2633 = vst [vmem:[#allocation2] sm:$0xff] %v2623_v9  ;;  %v2627_v3 = vsel %vm2616_vm6, %v2626_v12, %v2604_v29 }
 0x4b3   : > { %v2628_v11 = vsel %vm2618_vm7, %v2626_v12, %v2627_v3 }
 0x4b4   : > { %v2629_v13 = vsel %vm2620_vm8, %v2626_v12, %v2628_v11 }
 0x4b5   : > { %v2630_v53 = vsel %vm2622_vm9, %v2626_v12, %v2629_v13 }
 0x4b6   : > { %2634 = vst [vmem:[#allocation2 + $0x8] sm:$0xff] %v2630_v53 }
 0x4b7 PF: > { %p5842_p13 = scmp.le.s32.totalorder %s7962_s27, 0 }
 0x4b9   : > { %2638 = sbr.rel (%p5842_p13) target bundleno = 1232 (0x4d0), region = 141 }
 0x4be   : > { %v2657_v18 = vrot.slane %v8405_v31, 6  ;;  %v2658_v21 = vrot.slane %v8399_v43, 4  ;;  %v2659_v37 = vrot.slane %v8403_v54, 2  ;;  %v2663_v17 = vrot.slane %v8445_v55, 6  ;;  %v2639_v57 = vld [vmem:[#allocation2] sm:$0xff]  ;;  %v2640_v32 = vld [vmem:[#allocation2 + $0x8] sm:$0xff] }
 0x4bf   : > { %v2664_v20 = vrot.slane %v8439_v39, 4  ;;  %v2665_v48 = vrot.slane %v8443_v51, 2  ;;  %vm2670_vm10 = vcmask 1045508   ;;  %vm2672_vm11 = vcmask 1043456  }
 0x4c0   : > { %v2669_v40 = vsel %vm672_vm1, %v8407_v2, %v2657_v18  ;;  %v2671_v61 = vsel %vm2670_vm10, %v2658_v21, %v2659_v37  ;;  %v2677_v31 = vsel %vm672_vm1, %v8447_v0, %v2663_v17  ;;  %vm2688_vm12 = vcmask 1041409  }
 0x4c1   : > { %v2673_v43 = vsel %vm2672_vm11, %v2669_v40, %v2671_v61  ;;  %v2678_v54 = vsel %vm2670_vm10, %v2664_v20, %v2665_v48  ;;  %vm2690_vm13 = vcmask 1043459   ;;  %v2660_v39 = vrot.slane %v8481_v63, 6 }
 0x4c2   : > { %v2679_v55 = vsel %vm2672_vm11, %v2677_v31, %v2678_v54  ;;  %v2661_v51 = vrot.slane %v8477_v25, 4  ;;  %v2662_v2 = vrot.slane %v8479_v19, 2  ;;  %v2666_v10 = vrot.slane %v8502_v45, 6 }
 0x4c3   : > { %v2687_v14 = vrot.slane %v2679_v55, 7  ;;  %v2667_v38 = vrot.slane %v8500_v8, 4  ;;  %vm2692_vm14 = vcmask 1045509   ;;  %v2668_v0 = vrot.slane %v8506_v36, 2 }
 0x4c4   : > { %v2674_v23 = vsel %vm672_vm1, %v8483_v42, %v2660_v39  ;;  %vm2694_vm15 = vcmask 1047559   ;;  %v2675_v63 = vsel %vm2670_vm10, %v2661_v51, %v2662_v2  ;;  %v2680_v25 = vsel %vm672_vm1, %v8504_v24, %v2666_v10 }
 0x4c5   : > { %v2689_v35 = vsel %vm2688_vm12, %v2687_v14, %v2673_v43  ;;  %v2681_v45 = vsel %vm2670_vm10, %v2667_v38, %v2668_v0  ;;  %v2676_v36 = vsel %vm2672_vm11, %v2674_v23, %v2675_v63 }
 0x4c6   : > { %v2691_v19 = vsel %vm2690_vm13, %v2687_v14, %v2689_v35  ;;  %v2682_v60 = vsel %vm2672_vm11, %v2680_v25, %v2681_v45 }
 0x4c7   : > { %v2693_v8 = vsel %vm2692_vm14, %v2687_v14, %v2691_v19  ;;  %v2698_v27 = vrot.slane %v2682_v60, 7 }
 0x4c8   : > { %v2695_v42 = vsel %vm2694_vm15, %v2687_v14, %v2693_v8 }
 0x4c9   : > { %v2705_v26 = vmax.f32 %v2639_v57, %v2695_v42  ;;  %v2699_v30 = vsel %vm2688_vm12, %v2698_v27, %v2676_v36 }
 0x4ca   : > { %v2700_v24 = vsel %vm2690_vm13, %v2698_v27, %v2699_v30 }
 0x4cb   : > { %2707 = vst [vmem:[#allocation2] sm:$0xff] %v2705_v26  ;;  %v2701_v16 = vsel %vm2692_vm14, %v2698_v27, %v2700_v24 }
 0x4cc   : > { %v2702_v44 = vsel %vm2694_vm15, %v2698_v27, %v2701_v16 }
 0x4cd   : > { %v2706_v6 = vmax.f32 %v2640_v32, %v2702_v44 }
 0x4cf   : > { %2708 = vst [vmem:[#allocation2 + $0x8] sm:$0xff] %v2706_v6 }
 0x4d0 PF: > { %p5843_p0 = scmp.ne.s32.totalorder %s7962_s27, 1 }
 0x4d1   : > { %s8748_s12 = sld [smem:[#allocation22_spill]] (!%p5843_p0) }
 0x4d2   : > { %2712 = sbr.rel (%p5843_p0) target bundleno = 1930 (0x78a), region = 145  ;;  %s8749_s30 = sld [smem:[#allocation23_spill]] (!%p5843_p0) }
 0x4d3   : > { %s8750_s5 = sld [smem:[#allocation25_spill]] (!%p5843_p0) }
 0x4d4   : > { %s8751_s9 = sld [smem:[#allocation26_spill]] (!%p5843_p0) }
 0x4d7   : > { %v5958_v56 = vld [vmem:[#allocation9 + $0xe0] sm:$0xf]  ;;  %v7290_v62 = vld [vmem:[#allocation9 + $0xec] sm:$0xf0]  ;;  %vm2732_vm0 = vcmask 1045508   ;;  %vm2734_vm2 = vcmask 1043456  }
 0x4d8   : > { %v6086_v50 = vld [vmem:[#allocation9 + $0x1e0] sm:$0xf]  ;;  %v5959_v33 = vor.u32 %v7290_v62, %v5958_v56  ;;  %v7322_v59 = vld [vmem:[#allocation9 + $0x1ec] sm:$0xf0] }
 0x4d9   : > { %v6214_v34 = vld [vmem:[#allocation9 + $0x2e0] sm:$0xf]  ;;  %v7354_v47 = vld [vmem:[#allocation9 + $0x2ec] sm:$0xf0]  ;;  %v6087_v41 = vor.u32 %v7322_v59, %v6086_v50 }
 0x4da   : > { %v6215_v46 = vor.u32 %v7354_v47, %v6214_v34  ;;  %v6342_v28 = vld [vmem:[#allocation9 + $0x3e0] sm:$0xf]  ;;  %v7386_v15 = vld [vmem:[#allocation9 + $0x3ec] sm:$0xf0]  ;;  %4320 = vmatpush.bf16.msra.mxu0 %v5959_v33 }
 0x4db   : > { %v5942_v58 = vld [vmem:[#allocation9 + $0xc0] sm:$0xf]  ;;  %v6343_v49 = vor.u32 %v7386_v15, %v6342_v28  ;;  %v7286_v1 = vld [vmem:[#allocation9 + $0xcc] sm:$0xf0]  ;;  %4333 = vmatpush.bf16.msra.mxu1 %v6087_v41 }
 0x4dc   : > { %v6070_v4 = vld [vmem:[#allocation9 + $0x1c0] sm:$0xf]  ;;  %v7318_v22 = vld [vmem:[#allocation9 + $0x1cc] sm:$0xf0]  ;;  %4346 = vmatpush.bf16.msra.mxu2 %v6215_v46  ;;  %v5943_v52 = vor.u32 %v7286_v1, %v5942_v58 }
 0x4dd   : > { %v6071_v5 = vor.u32 %v7318_v22, %v6070_v4  ;;  %v6198_v29 = vld [vmem:[#allocation9 + $0x2c0] sm:$0xf]  ;;  %v7350_v7 = vld [vmem:[#allocation9 + $0x2cc] sm:$0xf0]  ;;  %4359 = vmatpush.bf16.msra.mxu3 %v6343_v49 }
 0x4de   : > { %v6326_v9 = vld [vmem:[#allocation9 + $0x3c0] sm:$0xf]  ;;  %v6199_v12 = vor.u32 %v7350_v7, %v6198_v29  ;;  %v7382_v3 = vld [vmem:[#allocation9 + $0x3cc] sm:$0xf0]  ;;  %4321 = vmatpush.bf16.msra.mxu0 %v5943_v52 }
 0x4df   : > { %v5926_v11 = vld [vmem:[#allocation9 + $0xa0] sm:$0xf]  ;;  %v7282_v13 = vld [vmem:[#allocation9 + $0xac] sm:$0xf0]  ;;  %v6327_v53 = vor.u32 %v7382_v3, %v6326_v9  ;;  %4334 = vmatpush.bf16.msra.mxu1 %v6071_v5 }
 0x4e0   : > { %v6054_v18 = vld [vmem:[#allocation9 + $0x1a0] sm:$0xf]  ;;  %v7314_v21 = vld [vmem:[#allocation9 + $0x1ac] sm:$0xf0]  ;;  %v5927_v17 = vor.u32 %v7282_v13, %v5926_v11  ;;  %4347 = vmatpush.bf16.msra.mxu2 %v6199_v12 }
 0x4e1   : > { %v6182_v37 = vld [vmem:[#allocation9 + $0x2a0] sm:$0xf]  ;;  %v7346_v20 = vld [vmem:[#allocation9 + $0x2ac] sm:$0xf0]  ;;  %v6055_v61 = vor.u32 %v7314_v21, %v6054_v18  ;;  %4360 = vmatpush.bf16.msra.mxu3 %v6327_v53 }
 0x4e2   : > { %v6310_v48 = vld [vmem:[#allocation9 + $0x3a0] sm:$0xf]  ;;  %v7378_v40 = vld [vmem:[#allocation9 + $0x3ac] sm:$0xf0]  ;;  %v6183_v31 = vor.u32 %v7346_v20, %v6182_v37  ;;  %4322 = vmatpush.bf16.msra.mxu0 %v5927_v17 }
 0x4e3   : > { %v5910_v43 = vld [vmem:[#allocation9 + $0x80] sm:$0xf]  ;;  %v7278_v54 = vld [vmem:[#allocation9 + $0x8c] sm:$0xf0]  ;;  %v6311_v39 = vor.u32 %v7378_v40, %v6310_v48  ;;  %4335 = vmatpush.bf16.msra.mxu1 %v6055_v61 }
 0x4e4   : > { %v6038_v55 = vld [vmem:[#allocation9 + $0x180] sm:$0xf]  ;;  %v7310_v51 = vld [vmem:[#allocation9 + $0x18c] sm:$0xf0]  ;;  %v5911_v0 = vor.u32 %v7278_v54, %v5910_v43  ;;  %4348 = vmatpush.bf16.msra.mxu2 %v6183_v31 }
 0x4e5   : > { %v6166_v14 = vld [vmem:[#allocation9 + $0x280] sm:$0xf]  ;;  %v7342_v2 = vld [vmem:[#allocation9 + $0x28c] sm:$0xf0]  ;;  %v6039_v23 = vor.u32 %v7310_v51, %v6038_v55  ;;  %4361 = vmatpush.bf16.msra.mxu3 %v6311_v39 }
 0x4e6   : > { %v6294_v10 = vld [vmem:[#allocation9 + $0x380] sm:$0xf]  ;;  %v7374_v38 = vld [vmem:[#allocation9 + $0x38c] sm:$0xf0]  ;;  %v6167_v35 = vor.u32 %v7342_v2, %v6166_v14  ;;  %4323 = vmatpush.bf16.msra.mxu0 %v5911_v0 }
 0x4e7   : > { %v5894_v63 = vld [vmem:[#allocation9 + $0x60] sm:$0xf]  ;;  %v7274_v25 = vld [vmem:[#allocation9 + $0x6c] sm:$0xf0]  ;;  %v6295_v19 = vor.u32 %v7374_v38, %v6294_v10  ;;  %4336 = vmatpush.bf16.msra.mxu1 %v6039_v23 }
 0x4e8   : > { %v6022_v57 = vld [vmem:[#allocation9 + $0x160] sm:$0xf]  ;;  %v7306_v45 = vld [vmem:[#allocation9 + $0x16c] sm:$0xf0]  ;;  %v5895_v27 = vor.u32 %v7274_v25, %v5894_v63  ;;  %4349 = vmatpush.bf16.msra.mxu2 %v6167_v35 }
 0x4e9   : > { %v6150_v8 = vld [vmem:[#allocation9 + $0x260] sm:$0xf]  ;;  %v7338_v36 = vld [vmem:[#allocation9 + $0x26c] sm:$0xf0]  ;;  %v6023_v26 = vor.u32 %v7306_v45, %v6022_v57  ;;  %4362 = vmatpush.bf16.msra.mxu3 %v6295_v19 }
 0x4ea   : > { %v6278_v60 = vld [vmem:[#allocation9 + $0x360] sm:$0xf]  ;;  %v7370_v42 = vld [vmem:[#allocation9 + $0x36c] sm:$0xf0]  ;;  %v6151_v30 = vor.u32 %v7338_v36, %v6150_v8  ;;  %4324 = vmatpush.bf16.msra.mxu0 %v5895_v27 }
 0x4eb   : > { %v5878_v32 = vld [vmem:[#allocation9 + $0x40] sm:$0xf]  ;;  %v7270_v24 = vld [vmem:[#allocation9 + $0x4c] sm:$0xf0]  ;;  %v6279_v44 = vor.u32 %v7370_v42, %v6278_v60  ;;  %4337 = vmatpush.bf16.msra.mxu1 %v6023_v26 }
 0x4ec   : > { %v6006_v16 = vld [vmem:[#allocation9 + $0x140] sm:$0xf]  ;;  %v7302_v6 = vld [vmem:[#allocation9 + $0x14c] sm:$0xf0]  ;;  %v5879_v59 = vor.u32 %v7270_v24, %v5878_v32  ;;  %4350 = vmatpush.bf16.msra.mxu2 %v6151_v30 }
 0x4ed   : > { %v6134_v56 = vld [vmem:[#allocation9 + $0x240] sm:$0xf]  ;;  %v7334_v62 = vld [vmem:[#allocation9 + $0x24c] sm:$0xf0]  ;;  %v6007_v34 = vor.u32 %v7302_v6, %v6006_v16  ;;  %4363 = vmatpush.bf16.msra.mxu3 %v6279_v44 }
 0x4ee   : > { %v6262_v50 = vld [vmem:[#allocation9 + $0x340] sm:$0xf]  ;;  %v7366_v33 = vld [vmem:[#allocation9 + $0x34c] sm:$0xf0]  ;;  %v6135_v47 = vor.u32 %v7334_v62, %v6134_v56  ;;  %4325 = vmatpush.bf16.msra.mxu0 %v5879_v59 }
 0x4ef   : > { %v5862_v41 = vld [vmem:[#allocation9 + $0x20] sm:$0xf]  ;;  %v7266_v46 = vld [vmem:[#allocation9 + $0x2c] sm:$0xf0]  ;;  %v6263_v15 = vor.u32 %v7366_v33, %v6262_v50  ;;  %4338 = vmatpush.bf16.msra.mxu1 %v6007_v34 }
 0x4f0   : > { %v5990_v28 = vld [vmem:[#allocation9 + $0x120] sm:$0xf]  ;;  %v7298_v58 = vld [vmem:[#allocation9 + $0x12c] sm:$0xf0]  ;;  %v5863_v52 = vor.u32 %v7266_v46, %v5862_v41  ;;  %4351 = vmatpush.bf16.msra.mxu2 %v6135_v47  ;;  %v8584_v47 = vld [vmem:[%s8748_s12] sm:$0xff] }
 0x4f1   : > { %v6118_v49 = vld [vmem:[#allocation9 + $0x220] sm:$0xf]  ;;  %v7330_v1 = vld [vmem:[#allocation9 + $0x22c] sm:$0xf0]  ;;  %v5991_v7 = vor.u32 %v7298_v58, %v5990_v28  ;;  %4364 = vmatpush.bf16.msra.mxu3 %v6263_v15  ;;  %v2717_v28 = vperm.slane %v8584_v47, 0  ;;  %v2718_v15 = vperm.slane %v8584_v47, 1 }
 0x4f2   : > { %v6246_v4 = vld [vmem:[#allocation9 + $0x320] sm:$0xf]  ;;  %v7362_v22 = vld [vmem:[#allocation9 + $0x32c] sm:$0xf0]  ;;  %v6119_v9 = vor.u32 %v7330_v1, %v6118_v49  ;;  %4326 = vmatpush.bf16.msra.mxu0 %v5863_v52  ;;  %v2719_v58 = vperm.slane %v8584_v47, 2 }
 0x4f3   : > { %v5846_v5 = vld [vmem:[#allocation9] sm:$0xf]  ;;  %v7262_v29 = vld [vmem:[#allocation9 + $0xc] sm:$0xf0]  ;;  %v6247_v13 = vor.u32 %v7362_v22, %v6246_v4  ;;  %4339 = vmatpush.bf16.msra.mxu1 %v5991_v7  ;;  %v2720_v22 = vperm.slane %v8584_v47, 3 }
 0x4f4   : > { %v5974_v12 = vld [vmem:[#allocation9 + $0x100] sm:$0xf]  ;;  %v7294_v3 = vld [vmem:[#allocation9 + $0x10c] sm:$0xf0]  ;;  %v5847_v48 = vor.u32 %v7262_v29, %v5846_v5  ;;  %4352 = vmatpush.bf16.msra.mxu2 %v6119_v9  ;;  %v2725_v5 = vrot.slane %v2718_v15, 6  ;;  %v2726_v29 = vrot.slane %v2719_v58, 4 }
 0x4f5   : > { %v6102_v11 = vld [vmem:[#allocation9 + $0x200] sm:$0xf]  ;;  %v7326_v53 = vld [vmem:[#allocation9 + $0x20c] sm:$0xf0]  ;;  %v5975_v43 = vor.u32 %v7294_v3, %v5974_v12  ;;  %4365 = vmatpush.bf16.msra.mxu3 %v6247_v13  ;;  %v2727_v12 = vrot.slane %v2720_v22, 2 }
 0x4f6   : > { %v6230_v18 = vld [vmem:[#allocation9 + $0x300] sm:$0xf]  ;;  %v7358_v21 = vld [vmem:[#allocation9 + $0x30c] sm:$0xf0]  ;;  %v6103_v54 = vor.u32 %v7326_v53, %v6102_v11  ;;  %4327 = vmatpush.bf16.msra.mxu0 %v5847_v48 }
 0x4f7   : > { %v6470_v37 = vld [vmem:[#allocation9 + $0x4e0] sm:$0xf]  ;;  %v7418_v17 = vld [vmem:[#allocation9 + $0x4ec] sm:$0xf0]  ;;  %v6231_v51 = vor.u32 %v7358_v21, %v6230_v18  ;;  %4340 = vmatpush.bf16.msra.mxu1 %v5975_v43  ;;  %v2731_v21 = vsel %vm672_vm1, %v2717_v28, %v2725_v5  ;;  %v7288_v5 = vld [vmem:[#allocation9 + $0xe4] sm:$0xf] }
 0x4f8   : > { %v6598_v20 = vld [vmem:[#allocation9 + $0x5e0] sm:$0xf]  ;;  %v7450_v40 = vld [vmem:[#allocation9 + $0x5ec] sm:$0xf0]  ;;  %v6471_v14 = vor.u32 %v7418_v17, %v6470_v37  ;;  %4353 = vmatpush.bf16.msra.mxu2 %v6103_v54 }
 0x4f9   : > { %v6726_v61 = vld [vmem:[#allocation9 + $0x6e0] sm:$0xf]  ;;  %v7482_v31 = vld [vmem:[#allocation9 + $0x6ec] sm:$0xf0]  ;;  %v6599_v2 = vor.u32 %v7450_v40, %v6598_v20  ;;  %4366 = vmatpush.bf16.msra.mxu3 %v6231_v51  ;;  %v2733_v40 = vsel %vm2732_vm0, %v2726_v29, %v2727_v12  ;;  %v5960_v29 = vld [vmem:[#allocation9 + $0xf0] sm:$0xf0] }
 0x4fa   : > { %v6854_v55 = vld [vmem:[#allocation9 + $0x7e0] sm:$0xf]  ;;  %v7514_v39 = vld [vmem:[#allocation9 + $0x7ec] sm:$0xf0]  ;;  %v6727_v10 = vor.u32 %v7482_v31, %v6726_v61  ;;  %4372 = vmatpush.bf16.msrb.mxu0 %v6471_v14  ;;  %v2735_v43 = vsel %vm2734_vm2, %v2731_v21, %v2733_v40  ;;  %v6216_v12 = vld [vmem:[#allocation9 + $0x2f0] sm:$0xf0] }
 0x4fb   : > { %v6454_v38 = vld [vmem:[#allocation9 + $0x4c0] sm:$0xf]  ;;  %v7414_v0 = vld [vmem:[#allocation9 + $0x4cc] sm:$0xf0]  ;;  %v6855_v35 = vor.u32 %v7514_v39, %v6854_v55  ;;  %4385 = vmatpush.bf16.msrb.mxu1 %v6599_v2 }
 0x4fc   : > { %v6582_v23 = vld [vmem:[#allocation9 + $0x5c0] sm:$0xf]  ;;  %v7446_v63 = vld [vmem:[#allocation9 + $0x5cc] sm:$0xf0]  ;;  %v6455_v8 = vor.u32 %v7414_v0, %v6454_v38  ;;  %4398 = vmatpush.bf16.msrb.mxu2 %v6727_v10 }
 0x4fd   : > { %v6710_v25 = vld [vmem:[#allocation9 + $0x6c0] sm:$0xf]  ;;  %v7478_v57 = vld [vmem:[#allocation9 + $0x6cc] sm:$0xf0]  ;;  %v6583_v60 = vor.u32 %v7446_v63, %v6582_v23  ;;  %4411 = vmatpush.bf16.msrb.mxu3 %v6855_v35 }
 0x4fe   : > { %v6838_v19 = vld [vmem:[#allocation9 + $0x7c0] sm:$0xf]  ;;  %v7510_v45 = vld [vmem:[#allocation9 + $0x7cc] sm:$0xf0]  ;;  %v6711_v42 = vor.u32 %v7478_v57, %v6710_v25  ;;  %4373 = vmatpush.bf16.msrb.mxu0 %v6455_v8 }
 0x4ff   : > { %v6438_v36 = vld [vmem:[#allocation9 + $0x4a0] sm:$0xf]  ;;  %v7410_v27 = vld [vmem:[#allocation9 + $0x4ac] sm:$0xf0]  ;;  %v6839_v32 = vor.u32 %v7510_v45, %v6838_v19  ;;  %4386 = vmatpush.bf16.msrb.mxu1 %v6583_v60  ;;  %v2722_v19 = vperm.slane %v8584_v47, 5 }
 0x500   : > { %v6566_v26 = vld [vmem:[#allocation9 + $0x5a0] sm:$0xf]  ;;  %v7442_v30 = vld [vmem:[#allocation9 + $0x5ac] sm:$0xf0]  ;;  %v6439_v50 = vor.u32 %v7410_v27, %v6438_v36  ;;  %4399 = vmatpush.bf16.msrb.mxu2 %v6711_v42  ;;  %v2723_v36 = vperm.slane %v8584_v47, 6  ;;  %v2721_v27 = vperm.slane %v8584_v47, 4 }
 0x501   : > { %v6694_v24 = vld [vmem:[#allocation9 + $0x6a0] sm:$0xf]  ;;  %v7474_v16 = vld [vmem:[#allocation9 + $0x6ac] sm:$0xf0]  ;;  %v6567_v33 = vor.u32 %v7442_v30, %v6566_v26  ;;  %4412 = vmatpush.bf16.msrb.mxu3 %v6839_v32 }
 0x502   : > { %v6822_v44 = vld [vmem:[#allocation9 + $0x7a0] sm:$0xf]  ;;  %v7506_v6 = vld [vmem:[#allocation9 + $0x7ac] sm:$0xf0]  ;;  %v6695_v41 = vor.u32 %v7474_v16, %v6694_v24  ;;  %4374 = vmatpush.bf16.msrb.mxu0 %v6439_v50 }
 0x503   : > { %v6422_v56 = vld [vmem:[#allocation9 + $0x480] sm:$0xf]  ;;  %v7406_v62 = vld [vmem:[#allocation9 + $0x48c] sm:$0xf0]  ;;  %v6823_v49 = vor.u32 %v7506_v6, %v6822_v44  ;;  %4387 = vmatpush.bf16.msrb.mxu1 %v6567_v33  ;;  %v2724_v33 = vperm.slane %v8584_v47, 7 }
 0x504   : > { %v6550_v59 = vld [vmem:[#allocation9 + $0x580] sm:$0xf]  ;;  %v7438_v34 = vld [vmem:[#allocation9 + $0x58c] sm:$0xf0]  ;;  %v6423_v7 = vor.u32 %v7406_v62, %v6422_v56  ;;  %4400 = vmatpush.bf16.msrb.mxu2 %v6695_v41  ;;  %v6088_v47 = vld [vmem:[#allocation9 + $0x1f0] sm:$0xf0] }
 0x505   : > { %v6678_v46 = vld [vmem:[#allocation9 + $0x680] sm:$0xf]  ;;  %v7470_v1 = vld [vmem:[#allocation9 + $0x68c] sm:$0xf0]  ;;  %v6551_v3 = vor.u32 %v7438_v34, %v6550_v59  ;;  %4413 = vmatpush.bf16.msrb.mxu3 %v6823_v49  ;;  %v2728_v59 = vrot.slane %v2722_v19, 6  ;;  %v2714_v49 = vld [vmem:[#allocation2 + $0x8] sm:$0xff] }
 0x506   : > { %v6806_v4 = vld [vmem:[#allocation9 + $0x780] sm:$0xf]  ;;  %v7502_v52 = vld [vmem:[#allocation9 + $0x78c] sm:$0xf0]  ;;  %v6679_v11 = vor.u32 %v7470_v1, %v6678_v46  ;;  %4375 = vmatpush.bf16.msrb.mxu0 %v6423_v7  ;;  %v2729_v46 = vrot.slane %v2723_v36, 4  ;;  %v2730_v1 = vrot.slane %v2724_v33, 2 }
 0x507   : > { %v6406_v9 = vld [vmem:[#allocation9 + $0x460] sm:$0xf]  ;;  %v7402_v13 = vld [vmem:[#allocation9 + $0x46c] sm:$0xf0]  ;;  %v6807_v37 = vor.u32 %v7502_v52, %v6806_v4  ;;  %4388 = vmatpush.bf16.msrb.mxu1 %v6551_v3  ;;  %v2736_v4 = vsel %vm672_vm1, %v2721_v27, %v2728_v59  ;;  %v7320_v7 = vld [vmem:[#allocation9 + $0x1e4] sm:$0xf] }
 0x508   : > { %v6534_v53 = vld [vmem:[#allocation9 + $0x560] sm:$0xf]  ;;  %v7434_v17 = vld [vmem:[#allocation9 + $0x56c] sm:$0xf0]  ;;  %v6407_v54 = vor.u32 %v7402_v13, %v6406_v9  ;;  %4401 = vmatpush.bf16.msrb.mxu2 %v6679_v11  ;;  %v7352_v9 = vld [vmem:[#allocation9 + $0x2e4] sm:$0xf]  ;;  %v2737_v3 = vsel %vm2732_vm0, %v2729_v46, %v2730_v1 }
 0x509   : > { %v2713_v18 = vld [vmem:[#allocation2] sm:$0xff]  ;;  %v7466_v48 = vld [vmem:[#allocation9 + $0x66c] sm:$0xf0]  ;;  %v6535_v2 = vor.u32 %v7434_v17, %v6534_v53  ;;  %4414 = vmatpush.bf16.msrb.mxu3 %v6807_v37  ;;  %v2738_v21 = vsel %vm2734_vm2, %v2736_v4, %v2737_v3  ;;  %v6328_v27 = vld [vmem:[#allocation9 + $0x3d0] sm:$0xf0] }
 0x50a   : > { %v6662_v20 = vld [vmem:[#allocation9 + $0x660] sm:$0xf]  ;;  %v7498_v31 = vld [vmem:[#allocation9 + $0x76c] sm:$0xf0]  ;;  %v2741_v14 = vadd.f32 %v2735_v43, %v2713_v18  ;;  %4376 = vmatpush.bf16.msrb.mxu0 %v6407_v54  ;;  %v7348_v19 = vld [vmem:[#allocation9 + $0x2c4] sm:$0xf] }
 0x50b   : > { %v6790_v61 = vld [vmem:[#allocation9 + $0x760] sm:$0xf]  ;;  %v7398_v39 = vld [vmem:[#allocation9 + $0x44c] sm:$0xf0]  ;;  %v6663_v10 = vor.u32 %v7466_v48, %v6662_v20  ;;  %4389 = vmatpush.bf16.msrb.mxu1 %v6535_v2  ;;  %v6091_v2 = vor.u32 %v7320_v7, %v6088_v47  ;;  %v7376_v33 = vld [vmem:[#allocation9 + $0x3a4] sm:$0xf] }
 0x50c   : > { %v6390_v55 = vld [vmem:[#allocation9 + $0x440] sm:$0xf]  ;;  %v7430_v38 = vld [vmem:[#allocation9 + $0x54c] sm:$0xf0]  ;;  %v6791_v35 = vor.u32 %v7498_v31, %v6790_v61  ;;  %v2743_v57 = vmax.f32 %v2741_v14, 0.0  ;;  %v2742_v61 = vadd.f32 %v2738_v21, %v2714_v49  ;;  %v5963_v14 = vor.u32 %v7288_v5, %v5960_v29 }
 0x50d   : > { %v6518_v51 = vld [vmem:[#allocation9 + $0x540] sm:$0xf]  ;;  %v7462_v23 = vld [vmem:[#allocation9 + $0x64c] sm:$0xf0]  ;;  %v6391_v60 = vor.u32 %v7398_v39, %v6390_v55  ;;  %4402 = vmatpush.bf16.msrb.mxu2 %v6663_v10  ;;  %v6344_v10 = vld [vmem:[#allocation9 + $0x3f0] sm:$0xf0] }
 0x50e   : > { %v6646_v0 = vld [vmem:[#allocation9 + $0x640] sm:$0xf]  ;;  %v7494_v25 = vld [vmem:[#allocation9 + $0x74c] sm:$0xf0]  ;;  %2747 = vst [vmem:[#allocation1] ss:$4 sm:$0xff] %v2743_v57  ;;  %v6519_v26 = vor.u32 %v7430_v38, %v6518_v51  ;;  %4415 = vmatpush.bf16.msrb.mxu3 %v6791_v35 }
 0x50f   : > { %v6774_v63 = vld [vmem:[#allocation9 + $0x740] sm:$0xf]  ;;  %v7394_v8 = vld [vmem:[#allocation9 + $0x42c] sm:$0xf0]  ;;  %v6647_v30 = vor.u32 %v7462_v23, %v6646_v0  ;;  %4377 = vmatpush.bf16.msrb.mxu0 %v6391_v60  ;;  %v7384_v51 = vld [vmem:[#allocation9 + $0x3e4] sm:$0xf]  ;;  %v6219_v23 = vor.u32 %v7352_v9, %v6216_v12 }
 0x510   : > { %v6374_v45 = vld [vmem:[#allocation9 + $0x420] sm:$0xf]  ;;  %v7426_v32 = vld [vmem:[#allocation9 + $0x52c] sm:$0xf0]  ;;  %v6775_v44 = vor.u32 %v7494_v25, %v6774_v63  ;;  %4390 = vmatpush.bf16.msrb.mxu1 %v6519_v26  ;;  %v7284_v38 = vld [vmem:[#allocation9 + $0xc4] sm:$0xf] }
 0x511   : > { %v6502_v42 = vld [vmem:[#allocation9 + $0x520] sm:$0xf]  ;;  %v7458_v16 = vld [vmem:[#allocation9 + $0x62c] sm:$0xf0]  ;;  %v6375_v28 = vor.u32 %v7394_v8, %v6374_v45  ;;  %4403 = vmatpush.bf16.msrb.mxu2 %v6647_v30  ;;  %v2744_v0 = vmax.f32 %v2742_v61, 0.0  ;;  %v6347_v8 = vor.u32 %v7384_v51, %v6344_v10 }
 0x512   : > { %v6630_v24 = vld [vmem:[#allocation9 + $0x620] sm:$0xf]  ;;  %v7490_v56 = vld [vmem:[#allocation9 + $0x72c] sm:$0xf0]  ;;  %v6503_v22 = vor.u32 %v7426_v32, %v6502_v42  ;;  %4416 = vmatpush.bf16.msrb.mxu3 %v6775_v44  ;;  %v5944_v35 = vld [vmem:[#allocation9 + $0xd0] sm:$0xf0] }
 0x513   : > { %v6758_v6 = vld [vmem:[#allocation9 + $0x720] sm:$0xf]  ;;  %v7390_v50 = vld [vmem:[#allocation9 + $0x40c] sm:$0xf0]  ;;  %v6631_v52 = vor.u32 %v7458_v16, %v6630_v24  ;;  %4378 = vmatpush.bf16.msrb.mxu0 %v6375_v28  ;;  %v7316_v63 = vld [vmem:[#allocation9 + $0x1c4] sm:$0xf]  ;;  %v5947_v36 = vor.u32 %v7284_v38, %v5944_v35 }
 0x514   : > { %v6358_v62 = vld [vmem:[#allocation9 + $0x400] sm:$0xf]  ;;  %v7422_v41 = vld [vmem:[#allocation9 + $0x50c] sm:$0xf0]  ;;  %v6759_v53 = vor.u32 %v7490_v56, %v6758_v6  ;;  %4391 = vmatpush.bf16.msrb.mxu1 %v6503_v22  ;;  %v6072_v25 = vld [vmem:[#allocation9 + $0x1d0] sm:$0xf0] }
 0x515   : > { %v6486_v34 = vld [vmem:[#allocation9 + $0x500] sm:$0xf]  ;;  %v7454_v58 = vld [vmem:[#allocation9 + $0x60c] sm:$0xf0]  ;;  %v6359_v18 = vor.u32 %v7390_v50, %v6358_v62  ;;  %4404 = vmatpush.bf16.msrb.mxu2 %v6631_v52  ;;  %v6200_v45 = vld [vmem:[#allocation9 + $0x2d0] sm:$0xf0]  ;;  %v6075_v60 = vor.u32 %v7316_v63, %v6072_v25 }
 0x516   : > { %v6614_v15 = vld [vmem:[#allocation9 + $0x600] sm:$0xf]  ;;  %v2752_v11 = vld.sshfl [vmem:[#allocation1 + $0x10] sm:$0xff pattern:$0x73625140]  ;;  %v6487_v40 = vor.u32 %v7422_v41, %v6486_v34  ;;  %4417 = vmatpush.bf16.msrb.mxu3 %v6759_v53  ;;  %v6203_v30 = vor.u32 %v7348_v19, %v6200_v45 }
 0x517   : > { %v2750_v13 = vld.sshfl [vmem:[#allocation1] sm:$0xff pattern:$0x73625140]  ;;  %v8600_v37 = vpack.c.bf16 %v2752_v11, %v2752_v11  ;;  %v2753_v20 = vld.sshfl [vmem:[#allocation1 + $0x18] sm:$0xff pattern:$0x73625140]  ;;  %v6615_v54 = vor.u32 %v7454_v58, %v6614_v15  ;;  %4379 = vmatpush.bf16.msrb.mxu0 %v6359_v18 }
 0x518   : > { %v8602_v17 = vpack.c.bf16 %v2750_v13, %v2750_v13  ;;  %v2751_v48 = vld.sshfl [vmem:[#allocation1 + $0x8] sm:$0xff pattern:$0x73625140]  ;;  %v8604_v31 = vpack.c.bf16 %v2753_v20, %v2753_v20  ;;  %v7486_v39 = vld [vmem:[#allocation9 + $0x70c] sm:$0xf0]  ;;  %4392 = vmatpush.bf16.msrb.mxu1 %v6487_v40 }
 0x519   : > { %v8606_v43 = vpack.c.bf16 %v2751_v48, %v2751_v48  ;;  %v6742_v55 = vld [vmem:[#allocation9 + $0x700] sm:$0xf]  ;;  %4354 = vmatmul.bf16.vlgmr.msra.gmra.mxu2 %v8600_v37  ;;  %2749 = vst [vmem:[#allocation1 + $0x20] ss:$4 sm:$0xff] %v2744_v0  ;;  %v7380_v42 = vld [vmem:[#allocation9 + $0x3c4] sm:$0xf] }
 0x51a   : > { %4328 = vmatmul.bf16.vlgmr.msra.gmra.mxu0 %v8602_v17  ;;  %4367 = vmatmul.bf16.vlgmr.msra.gmra.mxu3 %v8604_v31  ;;  %v6743_v57 = vor.u32 %v7486_v39, %v6742_v55  ;;  %v7280_v26 = vld [vmem:[#allocation9 + $0xa4] sm:$0xf]  ;;  %v5928_v32 = vld [vmem:[#allocation9 + $0xb0] sm:$0xf0]  ;;  %v6331_v56 = vor.u32 %v7380_v42, %v6328_v27 }
 0x51b   : > { %4341 = vmatmul.bf16.vlgmr.msra.gmra.mxu1 %v8606_v43  ;;  %4405 = vmatpush.bf16.msrb.mxu2 %v6615_v54  ;;  %v7312_v24 = vld [vmem:[#allocation9 + $0x1a4] sm:$0xf]  ;;  %v6056_v16 = vld [vmem:[#allocation9 + $0x1b0] sm:$0xf0]  ;;  %v5931_v62 = vor.u32 %v7280_v26, %v5928_v32 }
 0x51c   : > { %4424 = vmatpush.bf16.msra.mxu0 %v5963_v14  ;;  %4437 = vmatpush.bf16.msra.mxu1 %v6091_v2  ;;  %v7344_v44 = vld [vmem:[#allocation9 + $0x2a4] sm:$0xf]  ;;  %v6184_v6 = vld [vmem:[#allocation9 + $0x2b0] sm:$0xf0]  ;;  %v6059_v50 = vor.u32 %v7312_v24, %v6056_v16 }
 0x51d   : > { %4418 = vmatpush.bf16.msrb.mxu3 %v6743_v57  ;;  %v6312_v59 = vld [vmem:[#allocation9 + $0x3b0] sm:$0xf0]  ;;  %v6187_v41 = vor.u32 %v7344_v44, %v6184_v6  ;;  %v7276_v28 = vld [vmem:[#allocation9 + $0x84] sm:$0xf] }
 0x51e   : > { %v5912_v15 = vld [vmem:[#allocation9 + $0x90] sm:$0xf0]  ;;  %v6315_v1 = vor.u32 %v7376_v33, %v6312_v59  ;;  %v7308_v4 = vld [vmem:[#allocation9 + $0x184] sm:$0xf] }
 0x51f   : > { %4450 = vmatpush.bf16.msra.mxu2 %v6219_v23  ;;  %v6040_v22 = vld [vmem:[#allocation9 + $0x190] sm:$0xf0]  ;;  %v7340_v52 = vld [vmem:[#allocation9 + $0x284] sm:$0xf]  ;;  %v5915_v11 = vor.u32 %v7276_v28, %v5912_v15 }
 0x520   : > { %4425 = vmatpush.bf16.msra.mxu0 %v5947_v36  ;;  %4438 = vmatpush.bf16.msra.mxu1 %v6075_v60  ;;  %v2756_v34 = vld.sshfl [vmem:[#allocation1 + $0x30] sm:$0xff pattern:$0x73625140]  ;;  %v2754_v46 = vld.sshfl [vmem:[#allocation1 + $0x20] sm:$0xff pattern:$0x73625140]  ;;  %v6043_v13 = vor.u32 %v7308_v4, %v6040_v22 }
 0x521   : > { %4463 = vmatpush.bf16.msra.mxu3 %v6347_v8  ;;  %v2757_v58 = vld.sshfl [vmem:[#allocation1 + $0x38] sm:$0xff pattern:$0x73625140]  ;;  %v2755_v49 = vld.sshfl [vmem:[#allocation1 + $0x28] sm:$0xff pattern:$0x73625140]  ;;  %v8612_v5 = vpack.c.bf16 %v2756_v34, %v2756_v34  ;;  %v8614_v29 = vpack.c.bf16 %v2754_v46, %v2754_v46 }
 0x522   : > { %v6168_v7 = vld [vmem:[#allocation9 + $0x290] sm:$0xf0]  ;;  %v7372_v47 = vld [vmem:[#allocation9 + $0x384] sm:$0xf]  ;;  %v8616_v12 = vpack.c.bf16 %v2757_v58, %v2757_v58  ;;  %v8618_v3 = vpack.c.bf16 %v2755_v49, %v2755_v49 }
 0x523   : > { %4451 = vmatpush.bf16.msra.mxu2 %v6203_v30  ;;  %v6296_v9 = vld [vmem:[#allocation9 + $0x390] sm:$0xf0]  ;;  %v7272_v53 = vld [vmem:[#allocation9 + $0x64] sm:$0xf]  ;;  %v6171_v21 = vor.u32 %v7340_v52, %v6168_v7 }
 0x524   : > { %4426 = vmatpush.bf16.msra.mxu0 %v5931_v62  ;;  %4439 = vmatpush.bf16.msra.mxu1 %v6059_v50  ;;  %v5896_v18 = vld [vmem:[#allocation9 + $0x70] sm:$0xf0]  ;;  %v6299_v20 = vor.u32 %v7372_v47, %v6296_v9  ;;  %v7304_v48 = vld [vmem:[#allocation9 + $0x164] sm:$0xf] }
 0x525   : > { %4464 = vmatpush.bf16.msra.mxu3 %v6331_v56  ;;  %v6024_v40 = vld [vmem:[#allocation9 + $0x170] sm:$0xf0]  ;;  %v7336_v61 = vld [vmem:[#allocation9 + $0x264] sm:$0xf]  ;;  %v5899_v51 = vor.u32 %v7272_v53, %v5896_v18 }
 0x526   : > { %v6152_v54 = vld [vmem:[#allocation9 + $0x270] sm:$0xf0]  ;;  %v7368_v55 = vld [vmem:[#allocation9 + $0x364] sm:$0xf]  ;;  %v6027_v14 = vor.u32 %v7304_v48, %v6024_v40 }
 0x527   : > { %4452 = vmatpush.bf16.msra.mxu2 %v6187_v41  ;;  %v6280_v39 = vld [vmem:[#allocation9 + $0x370] sm:$0xf0]  ;;  %v7268_v2 = vld [vmem:[#allocation9 + $0x44] sm:$0xf]  ;;  %v6155_v38 = vor.u32 %v7336_v61, %v6152_v54 }
 0x528   : > { %4427 = vmatpush.bf16.msra.mxu0 %v5915_v11  ;;  %4440 = vmatpush.bf16.msra.mxu1 %v6043_v13  ;;  %v5880_v10 = vld [vmem:[#allocation9 + $0x50] sm:$0xf0]  ;;  %v6283_v0 = vor.u32 %v7368_v55, %v6280_v39  ;;  %v7300_v23 = vld [vmem:[#allocation9 + $0x144] sm:$0xf] }
 0x529   : > { %4465 = vmatpush.bf16.msra.mxu3 %v6315_v1  ;;  %4406 = vmatmul.bf16.vlgmr.msrb.gmra.mxu2 %v8612_v5  ;;  %v6008_v35 = vld [vmem:[#allocation9 + $0x150] sm:$0xf0]  ;;  %v7332_v63 = vld [vmem:[#allocation9 + $0x244] sm:$0xf]  ;;  %v5883_v45 = vor.u32 %v7268_v2, %v5880_v10 }
 0x52a   : > { %4380 = vmatmul.bf16.vlgmr.msrb.gmra.mxu0 %v8614_v29  ;;  %4419 = vmatmul.bf16.vlgmr.msrb.gmra.mxu3 %v8616_v12  ;;  %v6136_v25 = vld [vmem:[#allocation9 + $0x250] sm:$0xf0]  ;;  %v7364_v57 = vld [vmem:[#allocation9 + $0x344] sm:$0xf]  ;;  %v6011_v8 = vor.u32 %v7300_v23, %v6008_v35 }
 0x52b   : > { %4393 = vmatmul.bf16.vlgmr.msrb.gmra.mxu1 %v8618_v3  ;;  %4453 = vmatpush.bf16.msra.mxu2 %v6171_v21  ;;  %v6264_v19 = vld [vmem:[#allocation9 + $0x350] sm:$0xf0]  ;;  %v7264_v36 = vld [vmem:[#allocation9 + $0x24] sm:$0xf]  ;;  %v6139_v42 = vor.u32 %v7332_v63, %v6136_v25 }
 0x52c   : > { %4428 = vmatpush.bf16.msra.mxu0 %v5899_v51  ;;  %4441 = vmatpush.bf16.msra.mxu1 %v6027_v14  ;;  %v5864_v60 = vld [vmem:[#allocation9 + $0x30] sm:$0xf0]  ;;  %v6267_v27 = vor.u32 %v7364_v57, %v6264_v19  ;;  %v7296_v26 = vld [vmem:[#allocation9 + $0x124] sm:$0xf] }
 0x52d   : > { %4466 = vmatpush.bf16.msra.mxu3 %v6299_v20  ;;  %v5992_v30 = vld [vmem:[#allocation9 + $0x130] sm:$0xf0]  ;;  %v7328_v32 = vld [vmem:[#allocation9 + $0x224] sm:$0xf]  ;;  %v5867_v56 = vor.u32 %v7264_v36, %v5864_v60 }
 0x52e   : > { %v6120_v24 = vld [vmem:[#allocation9 + $0x230] sm:$0xf0]  ;;  %v7360_v16 = vld [vmem:[#allocation9 + $0x324] sm:$0xf]  ;;  %v5995_v62 = vor.u32 %v7296_v26, %v5992_v30 }
 0x52f   : > { %4454 = vmatpush.bf16.msra.mxu2 %v6155_v38  ;;  %v6248_v44 = vld [vmem:[#allocation9 + $0x330] sm:$0xf0]  ;;  %v7260_v6 = vld [vmem:[#allocation9 + $0x4] sm:$0xf]  ;;  %v6123_v34 = vor.u32 %v7328_v32, %v6120_v24 }
 0x530   : > { %4429 = vmatpush.bf16.msra.mxu0 %v5883_v45  ;;  %4442 = vmatpush.bf16.msra.mxu1 %v6011_v8  ;;  %v5848_v50 = vld [vmem:[#allocation9 + $0x10] sm:$0xf0]  ;;  %v7292_v33 = vld [vmem:[#allocation9 + $0x104] sm:$0xf]  ;;  %v6251_v41 = vor.u32 %v7360_v16, %v6248_v44 }
 0x531   : > { %4467 = vmatpush.bf16.msra.mxu3 %v6283_v0  ;;  %v5976_v59 = vld [vmem:[#allocation9 + $0x110] sm:$0xf0]  ;;  %v7324_v46 = vld [vmem:[#allocation9 + $0x204] sm:$0xf]  ;;  %v5851_v7 = vor.u32 %v7260_v6, %v5848_v50 }
 0x532   : > { %v6104_v28 = vld [vmem:[#allocation9 + $0x210] sm:$0xf0]  ;;  %v7356_v15 = vld [vmem:[#allocation9 + $0x304] sm:$0xf]  ;;  %v5979_v47 = vor.u32 %v7292_v33, %v5976_v59 }
 0x533   : > { %4455 = vmatpush.bf16.msra.mxu2 %v6139_v42  ;;  %v6232_v58 = vld [vmem:[#allocation9 + $0x310] sm:$0xf0]  ;;  %v7416_v49 = vld [vmem:[#allocation9 + $0x4e4] sm:$0xf]  ;;  %v6107_v53 = vor.u32 %v7324_v46, %v6104_v28 }
 0x534   : > { %v6472_v1 = vld [vmem:[#allocation9 + $0x4f0] sm:$0xf0]  ;;  %v7448_v4 = vld [vmem:[#allocation9 + $0x5e4] sm:$0xf]  ;;  %4430 = vmatpush.bf16.msra.mxu0 %v5867_v56  ;;  %4443 = vmatpush.bf16.msra.mxu1 %v5995_v62  ;;  %v6235_v18 = vor.u32 %v7356_v15, %v6232_v58 }
 0x535   : > { %4468 = vmatpush.bf16.msra.mxu3 %v6267_v27  ;;  %v6600_v22 = vld [vmem:[#allocation9 + $0x5f0] sm:$0xf0]  ;;  %v7480_v52 = vld [vmem:[#allocation9 + $0x6e4] sm:$0xf]  ;;  %v6475_v21 = vor.u32 %v7416_v49, %v6472_v1 }
 0x536   : > { %v6728_v9 = vld [vmem:[#allocation9 + $0x6f0] sm:$0xf0]  ;;  %v7512_v11 = vld [vmem:[#allocation9 + $0x7e4] sm:$0xf]  ;;  %v6603_v20 = vor.u32 %v7448_v4, %v6600_v22 }
 0x537   : > { %v6856_v13 = vld [vmem:[#allocation9 + $0x7f0] sm:$0xf0]  ;;  %4456 = vmatpush.bf16.msra.mxu2 %v6123_v34  ;;  %v7412_v48 = vld [vmem:[#allocation9 + $0x4c4] sm:$0xf]  ;;  %v6731_v61 = vor.u32 %v7480_v52, %v6728_v9 }
 0x538   : > { %v6456_v40 = vld [vmem:[#allocation9 + $0x4d0] sm:$0xf0]  ;;  %v6859_v54 = vor.u32 %v7512_v11, %v6856_v13  ;;  %v7444_v55 = vld [vmem:[#allocation9 + $0x5c4] sm:$0xf]  ;;  %4431 = vmatpush.bf16.msra.mxu0 %v5851_v7  ;;  %4444 = vmatpush.bf16.msra.mxu1 %v5979_v47 }
 0x539   : > { %4469 = vmatpush.bf16.msra.mxu3 %v6251_v41  ;;  %v6584_v39 = vld [vmem:[#allocation9 + $0x5d0] sm:$0xf0]  ;;  %v7476_v51 = vld [vmem:[#allocation9 + $0x6c4] sm:$0xf]  ;;  %v6459_v38 = vor.u32 %v7412_v48, %v6456_v40 }
 0x53a   : > { %v6712_v14 = vld [vmem:[#allocation9 + $0x6d0] sm:$0xf0]  ;;  %v7508_v2 = vld [vmem:[#allocation9 + $0x7c4] sm:$0xf]  ;;  %v6587_v0 = vor.u32 %v7444_v55, %v6584_v39 }
 0x53b   : > { %v6840_v10 = vld [vmem:[#allocation9 + $0x7d0] sm:$0xf0]  ;;  %4457 = vmatpush.bf16.msra.mxu2 %v6107_v53  ;;  %v7408_v23 = vld [vmem:[#allocation9 + $0x4a4] sm:$0xf]  ;;  %v6715_v63 = vor.u32 %v7476_v51, %v6712_v14  ;;  %4432 = vmatmul.bf16.vlgmr.msra.gmra.mxu0 %v8602_v17 }
 0x53c   : > { %4476 = vmatpush.bf16.msrb.mxu0 %v6475_v21  ;;  %4489 = vmatpush.bf16.msrb.mxu1 %v6603_v20  ;;  %v6440_v35 = vld [vmem:[#allocation9 + $0x4b0] sm:$0xf0]  ;;  %v6843_v25 = vor.u32 %v7508_v2, %v6840_v10  ;;  %v7440_v57 = vld [vmem:[#allocation9 + $0x5a4] sm:$0xf] }
 0x53d   : > { %4470 = vmatpush.bf16.msra.mxu3 %v6235_v18  ;;  %v6568_v19 = vld [vmem:[#allocation9 + $0x5b0] sm:$0xf0]  ;;  %v7472_v45 = vld [vmem:[#allocation9 + $0x6a4] sm:$0xf]  ;;  %4445 = vmatmul.bf16.vlgmr.msra.gmra.mxu1 %v8606_v43  ;;  %v6443_v42 = vor.u32 %v7408_v23, %v6440_v35 }
 0x53e   : > { %v6696_v8 = vld [vmem:[#allocation9 + $0x6b0] sm:$0xf0]  ;;  %v7504_v36 = vld [vmem:[#allocation9 + $0x7a4] sm:$0xf]  ;;  %4458 = vmatmul.bf16.vlgmr.msra.gmra.mxu2 %v8600_v37  ;;  %v6571_v27 = vor.u32 %v7440_v57, %v6568_v19 }
 0x53f   : > { %4502 = vmatpush.bf16.msrb.mxu2 %v6731_v61  ;;  %v6824_v60 = vld [vmem:[#allocation9 + $0x7b0] sm:$0xf0]  ;;  %v7404_v26 = vld [vmem:[#allocation9 + $0x484] sm:$0xf]  ;;  %v6699_v32 = vor.u32 %v7472_v45, %v6696_v8 }
 0x540   : > { %4471 = vmatmul.bf16.vlgmr.msra.gmra.mxu3 %v8604_v31  ;;  %4477 = vmatpush.bf16.msrb.mxu0 %v6459_v38  ;;  %v6424_v30 = vld [vmem:[#allocation9 + $0x490] sm:$0xf0]  ;;  %v6827_v24 = vor.u32 %v7504_v36, %v6824_v60  ;;  %v7436_v16 = vld [vmem:[#allocation9 + $0x584] sm:$0xf] }
 0x541   : > { %4515 = vmatpush.bf16.msrb.mxu3 %v6859_v54  ;;  %4490 = vmatpush.bf16.msrb.mxu1 %v6587_v0  ;;  %v6552_v44 = vld [vmem:[#allocation9 + $0x590] sm:$0xf0]  ;;  %v7468_v6 = vld [vmem:[#allocation9 + $0x684] sm:$0xf]  ;;  %v6427_v33 = vor.u32 %v7404_v26, %v6424_v30 }
 0x542   : > { %v6680_v56 = vld [vmem:[#allocation9 + $0x690] sm:$0xf0]  ;;  %v7500_v62 = vld [vmem:[#allocation9 + $0x784] sm:$0xf]  ;;  %v6555_v59 = vor.u32 %v7436_v16, %v6552_v44  ;;  %v6094_v16 = vld [vmem:[#allocation9 + $0x1e8] sm:$0xf] }
 0x543   : > { %4503 = vmatpush.bf16.msrb.mxu2 %v6715_v63  ;;  %v6808_v50 = vld [vmem:[#allocation9 + $0x790] sm:$0xf0]  ;;  %v7400_v34 = vld [vmem:[#allocation9 + $0x464] sm:$0xf]  ;;  %v6683_v46 = vor.u32 %v7468_v6, %v6680_v56  ;;  %v7323_v44 = vld [vmem:[#allocation9 + $0x1f4] sm:$0xf0] }
 0x544   : > { %4478 = vmatpush.bf16.msrb.mxu0 %v6443_v42  ;;  %v6408_v41 = vld [vmem:[#allocation9 + $0x470] sm:$0xf0]  ;;  %v6811_v28 = vor.u32 %v7500_v62, %v6808_v50  ;;  %v7432_v15 = vld [vmem:[#allocation9 + $0x564] sm:$0xf]  ;;  %v6222_v6 = vld [vmem:[#allocation9 + $0x2e8] sm:$0xf] }
 0x545   : > { %4516 = vmatpush.bf16.msrb.mxu3 %v6843_v25  ;;  %4491 = vmatpush.bf16.msrb.mxu1 %v6571_v27  ;;  %v6536_v58 = vld [vmem:[#allocation9 + $0x570] sm:$0xf0]  ;;  %v7464_v49 = vld [vmem:[#allocation9 + $0x664] sm:$0xf]  ;;  %v6411_v52 = vor.u32 %v7400_v34, %v6408_v41  ;;  %v7355_v50 = vld [vmem:[#allocation9 + $0x2f4] sm:$0xf0] }
 0x546   : > { %v6664_v1 = vld [vmem:[#allocation9 + $0x670] sm:$0xf0]  ;;  %v7496_v4 = vld [vmem:[#allocation9 + $0x764] sm:$0xf]  ;;  %v6539_v7 = vor.u32 %v7432_v15, %v6536_v58  ;;  %v5950_v15 = vld [vmem:[#allocation9 + $0xc8] sm:$0xf] }
 0x547   : > { %4504 = vmatpush.bf16.msrb.mxu2 %v6699_v32  ;;  %v6792_v22 = vld [vmem:[#allocation9 + $0x770] sm:$0xf0]  ;;  %v7396_v47 = vld [vmem:[#allocation9 + $0x444] sm:$0xf]  ;;  %v6667_v11 = vor.u32 %v7464_v49, %v6664_v1  ;;  %v5966_v32 = vld [vmem:[#allocation9 + $0xe8] sm:$0xf]  ;;  %v6223_v49 = vor.u32 %v7355_v50, %v6222_v6 }
 0x548   : > { %4479 = vmatpush.bf16.msrb.mxu0 %v6427_v33  ;;  %v6392_v9 = vld [vmem:[#allocation9 + $0x450] sm:$0xf0]  ;;  %v6795_v13 = vor.u32 %v7496_v4, %v6792_v22  ;;  %v7428_v53 = vld [vmem:[#allocation9 + $0x544] sm:$0xf]  ;;  %v6350_v33 = vld [vmem:[#allocation9 + $0x3e8] sm:$0xf] }
 0x549   : > { %4517 = vmatpush.bf16.msrb.mxu3 %v6827_v24  ;;  %4492 = vmatpush.bf16.msrb.mxu1 %v6555_v59  ;;  %v6520_v18 = vld [vmem:[#allocation9 + $0x550] sm:$0xf0]  ;;  %v7460_v21 = vld [vmem:[#allocation9 + $0x644] sm:$0xf]  ;;  %v6395_v61 = vor.u32 %v7396_v47, %v6392_v9  ;;  %v7291_v24 = vld [vmem:[#allocation9 + $0xf4] sm:$0xf0] }
 0x54a   : > { %v6648_v20 = vld [vmem:[#allocation9 + $0x650] sm:$0xf0]  ;;  %v7492_v48 = vld [vmem:[#allocation9 + $0x744] sm:$0xf]  ;;  %v6523_v54 = vor.u32 %v7428_v53, %v6520_v18  ;;  %v7387_v59 = vld [vmem:[#allocation9 + $0x3f4] sm:$0xf0] }
 0x54b   : > { %4505 = vmatpush.bf16.msrb.mxu2 %v6683_v46  ;;  %v6776_v40 = vld [vmem:[#allocation9 + $0x750] sm:$0xf0]  ;;  %v7392_v55 = vld [vmem:[#allocation9 + $0x424] sm:$0xf]  ;;  %v6651_v51 = vor.u32 %v7460_v21, %v6648_v20  ;;  %v5967_v46 = vor.u32 %v7291_v24, %v5966_v32  ;;  %v7287_v58 = vld [vmem:[#allocation9 + $0xd4] sm:$0xf0]  ;;  %v6351_v1 = vor.u32 %v7387_v59, %v6350_v33 }
 0x54c   : > { %4480 = vmatpush.bf16.msrb.mxu0 %v6411_v52  ;;  %v6376_v39 = vld [vmem:[#allocation9 + $0x430] sm:$0xf0]  ;;  %v6779_v14 = vor.u32 %v7492_v48, %v6776_v40  ;;  %v7424_v2 = vld [vmem:[#allocation9 + $0x524] sm:$0xf]  ;;  %v6078_v4 = vld [vmem:[#allocation9 + $0x1c8] sm:$0xf] }
 0x54d   : > { %4518 = vmatpush.bf16.msrb.mxu3 %v6811_v28  ;;  %4493 = vmatpush.bf16.msrb.mxu1 %v6539_v7  ;;  %v6504_v10 = vld [vmem:[#allocation9 + $0x530] sm:$0xf0]  ;;  %v7456_v38 = vld [vmem:[#allocation9 + $0x624] sm:$0xf]  ;;  %v6379_v25 = vor.u32 %v7392_v55, %v6376_v39  ;;  %v6095_v28 = vor.u32 %v7323_v44, %v6094_v16  ;;  %v7319_v22 = vld [vmem:[#allocation9 + $0x1d4] sm:$0xf0] }
 0x54e   : > { %v6632_v0 = vld [vmem:[#allocation9 + $0x630] sm:$0xf0]  ;;  %v7488_v23 = vld [vmem:[#allocation9 + $0x724] sm:$0xf]  ;;  %v6507_v57 = vor.u32 %v7424_v2, %v6504_v10  ;;  %v6206_v52 = vld [vmem:[#allocation9 + $0x2c8] sm:$0xf] }
 0x54f   : > { %4506 = vmatpush.bf16.msrb.mxu2 %v6667_v11  ;;  %v6760_v35 = vld [vmem:[#allocation9 + $0x730] sm:$0xf0]  ;;  %v7388_v63 = vld [vmem:[#allocation9 + $0x404] sm:$0xf]  ;;  %v6635_v36 = vor.u32 %v7456_v38, %v6632_v0  ;;  %v7351_v7 = vld [vmem:[#allocation9 + $0x2d4] sm:$0xf0]  ;;  %v5951_v11 = vor.u32 %v7287_v58, %v5950_v15 }
 0x550   : > { %4481 = vmatpush.bf16.msrb.mxu0 %v6395_v61  ;;  %v6360_v19 = vld [vmem:[#allocation9 + $0x410] sm:$0xf0]  ;;  %v7420_v45 = vld [vmem:[#allocation9 + $0x504] sm:$0xf]  ;;  %v6763_v60 = vor.u32 %v7488_v23, %v6760_v35  ;;  %v6334_v47 = vld [vmem:[#allocation9 + $0x3c8] sm:$0xf]  ;;  %v6207_v21 = vor.u32 %v7351_v7, %v6206_v52 }
 0x551   : > { %4519 = vmatpush.bf16.msrb.mxu3 %v6795_v13  ;;  %4494 = vmatpush.bf16.msrb.mxu1 %v6523_v54  ;;  %v6488_v8 = vld [vmem:[#allocation9 + $0x510] sm:$0xf0]  ;;  %v7452_v42 = vld [vmem:[#allocation9 + $0x604] sm:$0xf]  ;;  %v6363_v56 = vor.u32 %v7388_v63, %v6360_v19  ;;  %v7383_v9 = vld [vmem:[#allocation9 + $0x3d4] sm:$0xf0]  ;;  %v6079_v13 = vor.u32 %v7319_v22, %v6078_v4 }
 0x552   : > { %v6616_v27 = vld [vmem:[#allocation9 + $0x610] sm:$0xf0]  ;;  %v7484_v26 = vld [vmem:[#allocation9 + $0x704] sm:$0xf]  ;;  %v6491_v62 = vor.u32 %v7420_v45, %v6488_v8  ;;  %v5934_v53 = vld [vmem:[#allocation9 + $0xa8] sm:$0xf]  ;;  %v6335_v20 = vor.u32 %v7383_v9, %v6334_v47 }
 0x553   : > { %4507 = vmatpush.bf16.msrb.mxu2 %v6651_v51  ;;  %v6744_v30 = vld [vmem:[#allocation9 + $0x710] sm:$0xf0]  ;;  %v6619_v34 = vor.u32 %v7452_v42, %v6616_v27  ;;  %v7283_v18 = vld [vmem:[#allocation9 + $0xb4] sm:$0xf0]  ;;  %v6062_v48 = vld [vmem:[#allocation9 + $0x1a8] sm:$0xf] }
 0x554   : > { %4482 = vmatpush.bf16.msrb.mxu0 %v6379_v25  ;;  %v6747_v41 = vor.u32 %v7484_v26, %v6744_v30  ;;  %v7315_v40 = vld [vmem:[#allocation9 + $0x1b4] sm:$0xf0]  ;;  %v6190_v61 = vld [vmem:[#allocation9 + $0x2a8] sm:$0xf]  ;;  %v5935_v51 = vor.u32 %v7283_v18, %v5934_v53 }
 0x555   : > { %4520 = vmatpush.bf16.msrb.mxu3 %v6779_v14  ;;  %4495 = vmatpush.bf16.msrb.mxu1 %v6507_v57  ;;  %v7347_v54 = vld [vmem:[#allocation9 + $0x2b4] sm:$0xf0]  ;;  %v6318_v55 = vld [vmem:[#allocation9 + $0x3a8] sm:$0xf]  ;;  %v6063_v14 = vor.u32 %v7315_v40, %v6062_v48 }
 0x556   : > { %v7379_v39 = vld [vmem:[#allocation9 + $0x3b4] sm:$0xf0]  ;;  %v5918_v2 = vld [vmem:[#allocation9 + $0x88] sm:$0xf]  ;;  %v6191_v38 = vor.u32 %v7347_v54, %v6190_v61 }
 0x557   : > { %4508 = vmatpush.bf16.msrb.mxu2 %v6635_v36  ;;  %v7279_v10 = vld [vmem:[#allocation9 + $0x94] sm:$0xf0]  ;;  %v6319_v0 = vor.u32 %v7379_v39, %v6318_v55  ;;  %v6046_v23 = vld [vmem:[#allocation9 + $0x188] sm:$0xf] }
 0x558   : > { %4483 = vmatpush.bf16.msrb.mxu0 %v6363_v56  ;;  %v7311_v35 = vld [vmem:[#allocation9 + $0x194] sm:$0xf0]  ;;  %v6174_v63 = vld [vmem:[#allocation9 + $0x288] sm:$0xf]  ;;  %v5919_v45 = vor.u32 %v7279_v10, %v5918_v2 }
 0x559   : > { %4521 = vmatpush.bf16.msrb.mxu3 %v6763_v60  ;;  %4496 = vmatpush.bf16.msrb.mxu1 %v6491_v62  ;;  %v7343_v25 = vld [vmem:[#allocation9 + $0x294] sm:$0xf0]  ;;  %v6302_v57 = vld [vmem:[#allocation9 + $0x388] sm:$0xf]  ;;  %v6047_v8 = vor.u32 %v7311_v35, %v6046_v23 }
 0x55a   : > { %v7375_v19 = vld [vmem:[#allocation9 + $0x394] sm:$0xf0]  ;;  %v5902_v36 = vld [vmem:[#allocation9 + $0x68] sm:$0xf]  ;;  %v6175_v42 = vor.u32 %v7343_v25, %v6174_v63 }
 0x55b   : > { %4509 = vmatpush.bf16.msrb.mxu2 %v6619_v34  ;;  %4484 = vmatmul.bf16.vlgmr.msrb.gmra.mxu0 %v8614_v29  ;;  %v7275_v60 = vld [vmem:[#allocation9 + $0x74] sm:$0xf0]  ;;  %v6303_v27 = vor.u32 %v7375_v19, %v6302_v57  ;;  %v6030_v26 = vld [vmem:[#allocation9 + $0x168] sm:$0xf] }
 0x55c   : > { %4528 = vmatpush.bf16.msra.mxu0 %v5967_v46  ;;  %4497 = vmatmul.bf16.vlgmr.msrb.gmra.mxu1 %v8618_v3  ;;  %v7307_v30 = vld [vmem:[#allocation9 + $0x174] sm:$0xf0]  ;;  %v6158_v32 = vld [vmem:[#allocation9 + $0x268] sm:$0xf]  ;;  %v5903_v6 = vor.u32 %v7275_v60, %v5902_v36 }
 0x55d   : > { %4522 = vmatpush.bf16.msrb.mxu3 %v6747_v41  ;;  %4541 = vmatpush.bf16.msra.mxu1 %v6095_v28  ;;  %v7339_v24 = vld [vmem:[#allocation9 + $0x274] sm:$0xf0]  ;;  %v6286_v16 = vld [vmem:[#allocation9 + $0x368] sm:$0xf]  ;;  %v6031_v56 = vor.u32 %v7307_v30, %v6030_v26 }
 0x55e   : > { %4510 = vmatmul.bf16.vlgmr.msrb.gmra.mxu2 %v8612_v5  ;;  %v7371_v44 = vld [vmem:[#allocation9 + $0x374] sm:$0xf0]  ;;  %v5886_v62 = vld [vmem:[#allocation9 + $0x48] sm:$0xf]  ;;  %v6159_v33 = vor.u32 %v7339_v24, %v6158_v32 }
 0x55f   : > { %4554 = vmatpush.bf16.msra.mxu2 %v6223_v49  ;;  %v7271_v50 = vld [vmem:[#allocation9 + $0x54] sm:$0xf0]  ;;  %v6287_v59 = vor.u32 %v7371_v44, %v6286_v16  ;;  %v6014_v34 = vld [vmem:[#allocation9 + $0x148] sm:$0xf] }
 0x560   : > { %4523 = vmatmul.bf16.vlgmr.msrb.gmra.mxu3 %v8616_v12  ;;  %4529 = vmatpush.bf16.msra.mxu0 %v5951_v11  ;;  %v7303_v41 = vld [vmem:[#allocation9 + $0x154] sm:$0xf0]  ;;  %v6142_v46 = vld [vmem:[#allocation9 + $0x248] sm:$0xf]  ;;  %v5887_v49 = vor.u32 %v7271_v50, %v5886_v62 }
 0x561   : > { %4567 = vmatpush.bf16.msra.mxu3 %v6351_v1  ;;  %4542 = vmatpush.bf16.msra.mxu1 %v6079_v13  ;;  %v7335_v28 = vld [vmem:[#allocation9 + $0x254] sm:$0xf0]  ;;  %v6270_v15 = vld [vmem:[#allocation9 + $0x348] sm:$0xf]  ;;  %v6015_v1 = vor.u32 %v7303_v41, %v6014_v34 }
 0x562   : > { %v7367_v58 = vld [vmem:[#allocation9 + $0x354] sm:$0xf0]  ;;  %v5870_v4 = vld [vmem:[#allocation9 + $0x28] sm:$0xf]  ;;  %v6143_v52 = vor.u32 %v7335_v28, %v6142_v46 }
 0x563   : > { %4555 = vmatpush.bf16.msra.mxu2 %v6207_v21  ;;  %v7267_v22 = vld [vmem:[#allocation9 + $0x34] sm:$0xf0]  ;;  %v6271_v7 = vor.u32 %v7367_v58, %v6270_v15  ;;  %v5998_v47 = vld [vmem:[#allocation9 + $0x128] sm:$0xf] }
 0x564   : > { %4530 = vmatpush.bf16.msra.mxu0 %v5935_v51  ;;  %v7299_v9 = vld [vmem:[#allocation9 + $0x134] sm:$0xf0]  ;;  %v6126_v11 = vld [vmem:[#allocation9 + $0x228] sm:$0xf] }
 0x565   : > { %4568 = vmatpush.bf16.msra.mxu3 %v6335_v20  ;;  %4543 = vmatpush.bf16.msra.mxu1 %v6063_v14  ;;  %v7331_v13 = vld [vmem:[#allocation9 + $0x234] sm:$0xf0]  ;;  %v6254_v53 = vld [vmem:[#allocation9 + $0x328] sm:$0xf]  ;;  %v5871_v20 = vor.u32 %v7267_v22, %v5870_v4  ;;  %v5999_v48 = vor.u32 %v7299_v9, %v5998_v47 }
 0x566   : > { %v7363_v18 = vld [vmem:[#allocation9 + $0x334] sm:$0xf0]  ;;  %v5854_v21 = vld [vmem:[#allocation9 + $0x8] sm:$0xf]  ;;  %v6127_v55 = vor.u32 %v7331_v13, %v6126_v11 }
 0x567   : > { %4556 = vmatpush.bf16.msra.mxu2 %v6191_v38  ;;  %v7263_v40 = vld [vmem:[#allocation9 + $0x14] sm:$0xf0]  ;;  %v5982_v61 = vld [vmem:[#allocation9 + $0x108] sm:$0xf]  ;;  %v6255_v39 = vor.u32 %v7363_v18, %v6254_v53 }
 0x568   : > { %4531 = vmatpush.bf16.msra.mxu0 %v5919_v45  ;;  %v7295_v54 = vld [vmem:[#allocation9 + $0x114] sm:$0xf0]  ;;  %v6110_v51 = vld [vmem:[#allocation9 + $0x208] sm:$0xf]  ;;  %v5855_v25 = vor.u32 %v7263_v40, %v5854_v21 }
 0x569   : > { %4569 = vmatpush.bf16.msra.mxu3 %v6319_v0  ;;  %4544 = vmatpush.bf16.msra.mxu1 %v6047_v8  ;;  %v7327_v14 = vld [vmem:[#allocation9 + $0x214] sm:$0xf0]  ;;  %v6238_v2 = vld [vmem:[#allocation9 + $0x308] sm:$0xf]  ;;  %v5983_v57 = vor.u32 %v7295_v54, %v5982_v61 }
 0x56a   : > { %v7359_v10 = vld [vmem:[#allocation9 + $0x314] sm:$0xf0]  ;;  %v6478_v38 = vld [vmem:[#allocation9 + $0x4e8] sm:$0xf]  ;;  %v6111_v36 = vor.u32 %v7327_v14, %v6110_v51 }
 0x56b   : > { %4557 = vmatpush.bf16.msra.mxu2 %v6175_v42  ;;  %v7419_v0 = vld [vmem:[#allocation9 + $0x4f4] sm:$0xf0]  ;;  %v6606_v23 = vld [vmem:[#allocation9 + $0x5e8] sm:$0xf]  ;;  %v6239_v60 = vor.u32 %v7359_v10, %v6238_v2 }
 0x56c   : > { %4532 = vmatpush.bf16.msra.mxu0 %v5903_v6  ;;  %v7451_v35 = vld [vmem:[#allocation9 + $0x5f4] sm:$0xf0]  ;;  %v6734_v63 = vld [vmem:[#allocation9 + $0x6e8] sm:$0xf]  ;;  %v6479_v42 = vor.u32 %v7419_v0, %v6478_v38 }
 0x56d   : > { %4570 = vmatpush.bf16.msra.mxu3 %v6303_v27  ;;  %4545 = vmatpush.bf16.msra.mxu1 %v6031_v56  ;;  %v7483_v19 = vld [vmem:[#allocation9 + $0x6f4] sm:$0xf0]  ;;  %v6862_v45 = vld [vmem:[#allocation9 + $0x7e8] sm:$0xf]  ;;  %v6607_v27 = vor.u32 %v7451_v35, %v6606_v23 }
 0x56e   : > { %v7515_v8 = vld [vmem:[#allocation9 + $0x7f4] sm:$0xf0]  ;;  %v6462_v26 = vld [vmem:[#allocation9 + $0x4c8] sm:$0xf]  ;;  %v6735_v32 = vor.u32 %v7483_v19, %v6734_v63 }
 0x56f   : > { %4558 = vmatpush.bf16.msra.mxu2 %v6159_v33  ;;  %v7415_v30 = vld [vmem:[#allocation9 + $0x4d4] sm:$0xf0]  ;;  %v6863_v24 = vor.u32 %v7515_v8, %v6862_v45  ;;  %v6590_v16 = vld [vmem:[#allocation9 + $0x5c8] sm:$0xf] }
 0x570   : > { %4533 = vmatpush.bf16.msra.mxu0 %v5887_v49  ;;  %v7447_v44 = vld [vmem:[#allocation9 + $0x5d4] sm:$0xf0]  ;;  %v6718_v6 = vld [vmem:[#allocation9 + $0x6c8] sm:$0xf]  ;;  %v6463_v33 = vor.u32 %v7415_v30, %v6462_v26 }
 0x571   : > { %4571 = vmatpush.bf16.msra.mxu3 %v6287_v59  ;;  %4546 = vmatpush.bf16.msra.mxu1 %v6015_v1  ;;  %v7479_v56 = vld [vmem:[#allocation9 + $0x6d4] sm:$0xf0]  ;;  %v6846_v62 = vld [vmem:[#allocation9 + $0x7c8] sm:$0xf]  ;;  %v6591_v59 = vor.u32 %v7447_v44, %v6590_v16 }
 0x572   : > { %v7511_v50 = vld [vmem:[#allocation9 + $0x7d4] sm:$0xf0]  ;;  %v6446_v34 = vld [vmem:[#allocation9 + $0x4a8] sm:$0xf]  ;;  %v6719_v46 = vor.u32 %v7479_v56, %v6718_v6 }
 0x573   : > { %4559 = vmatpush.bf16.msra.mxu2 %v6143_v52  ;;  %v7411_v41 = vld [vmem:[#allocation9 + $0x4b4] sm:$0xf0]  ;;  %v6847_v28 = vor.u32 %v7511_v50, %v6846_v62  ;;  %v6574_v15 = vld [vmem:[#allocation9 + $0x5a8] sm:$0xf] }
 0x574   : > { %4534 = vmatpush.bf16.msra.mxu0 %v5871_v20  ;;  %v7443_v58 = vld [vmem:[#allocation9 + $0x5b4] sm:$0xf0]  ;;  %v6702_v49 = vld [vmem:[#allocation9 + $0x6a8] sm:$0xf]  ;;  %v6447_v52 = vor.u32 %v7411_v41, %v6446_v34 }
 0x575   : > { %4572 = vmatpush.bf16.msra.mxu3 %v6271_v7  ;;  %4547 = vmatpush.bf16.msra.mxu1 %v5999_v48  ;;  %v7475_v1 = vld [vmem:[#allocation9 + $0x6b4] sm:$0xf0]  ;;  %v6830_v4 = vld [vmem:[#allocation9 + $0x7a8] sm:$0xf]  ;;  %v6575_v7 = vor.u32 %v7443_v58, %v6574_v15 }
 0x576   : > { %v7507_v22 = vld [vmem:[#allocation9 + $0x7b4] sm:$0xf0]  ;;  %v6430_v47 = vld [vmem:[#allocation9 + $0x488] sm:$0xf]  ;;  %v6703_v11 = vor.u32 %v7475_v1, %v6702_v49 }
 0x577   : > { %4560 = vmatpush.bf16.msra.mxu2 %v6127_v55  ;;  %v7407_v9 = vld [vmem:[#allocation9 + $0x494] sm:$0xf0]  ;;  %v6831_v13 = vor.u32 %v7507_v22, %v6830_v4  ;;  %v6558_v53 = vld [vmem:[#allocation9 + $0x588] sm:$0xf] }
 0x578   : > { %4535 = vmatpush.bf16.msra.mxu0 %v5855_v25  ;;  %v7439_v18 = vld [vmem:[#allocation9 + $0x594] sm:$0xf0]  ;;  %v6686_v21 = vld [vmem:[#allocation9 + $0x688] sm:$0xf]  ;;  %v6431_v61 = vor.u32 %v7407_v9, %v6430_v47 }
 0x579   : > { %4573 = vmatpush.bf16.msra.mxu3 %v6255_v39  ;;  %4548 = vmatpush.bf16.msra.mxu1 %v5983_v57  ;;  %v7471_v20 = vld [vmem:[#allocation9 + $0x694] sm:$0xf0]  ;;  %v6814_v48 = vld [vmem:[#allocation9 + $0x788] sm:$0xf]  ;;  %v6559_v54 = vor.u32 %v7439_v18, %v6558_v53  ;;  %v7321_v53 = vld [vmem:[#allocation9 + $0x1ec] sm:$0xf] }
 0x57a   : > { %v7503_v40 = vld [vmem:[#allocation9 + $0x794] sm:$0xf0]  ;;  %v6414_v55 = vld [vmem:[#allocation9 + $0x468] sm:$0xf]  ;;  %v6687_v51 = vor.u32 %v7471_v20, %v6686_v21  ;;  %v6096_v18 = vld [vmem:[#allocation9 + $0x1f8] sm:$0xf0] }
 0x57b   : > { %4561 = vmatpush.bf16.msra.mxu2 %v6111_v36  ;;  %4536 = vmatmul.bf16.vlgmr.msra.gmra.mxu0 %v8602_v17  ;;  %v7403_v39 = vld [vmem:[#allocation9 + $0x474] sm:$0xf0]  ;;  %v6815_v14 = vor.u32 %v7503_v40, %v6814_v48  ;;  %v6542_v2 = vld [vmem:[#allocation9 + $0x568] sm:$0xf]  ;;  %v7353_v21 = vld [vmem:[#allocation9 + $0x2ec] sm:$0xf] }
 0x57c   : > { %4580 = vmatpush.bf16.msrb.mxu0 %v6479_v42  ;;  %4549 = vmatmul.bf16.vlgmr.msra.gmra.mxu1 %v8606_v43  ;;  %v7435_v10 = vld [vmem:[#allocation9 + $0x574] sm:$0xf0]  ;;  %v6670_v38 = vld [vmem:[#allocation9 + $0x668] sm:$0xf]  ;;  %v6415_v63 = vor.u32 %v7403_v39, %v6414_v55  ;;  %v6352_v55 = vld [vmem:[#allocation9 + $0x3f8] sm:$0xf0] }
 0x57d   : > { %4574 = vmatpush.bf16.msra.mxu3 %v6239_v60  ;;  %4593 = vmatpush.bf16.msrb.mxu1 %v6607_v27  ;;  %v7467_v0 = vld [vmem:[#allocation9 + $0x674] sm:$0xf0]  ;;  %v6798_v23 = vld [vmem:[#allocation9 + $0x768] sm:$0xf]  ;;  %v6543_v25 = vor.u32 %v7435_v10, %v6542_v2  ;;  %v6099_v2 = vor.u32 %v7321_v53, %v6096_v18 }
 0x57e   : > { %4562 = vmatmul.bf16.vlgmr.msra.gmra.mxu2 %v8600_v37  ;;  %v7499_v35 = vld [vmem:[#allocation9 + $0x774] sm:$0xf0]  ;;  %v6398_v57 = vld [vmem:[#allocation9 + $0x448] sm:$0xf]  ;;  %v6671_v45 = vor.u32 %v7467_v0, %v6670_v38  ;;  %v7285_v38 = vld [vmem:[#allocation9 + $0xcc] sm:$0xf] }
 0x57f   : > { %4606 = vmatpush.bf16.msrb.mxu2 %v6735_v32  ;;  %v7399_v19 = vld [vmem:[#allocation9 + $0x454] sm:$0xf0]  ;;  %v6799_v8 = vor.u32 %v7499_v35, %v6798_v23  ;;  %v6526_v36 = vld [vmem:[#allocation9 + $0x548] sm:$0xf]  ;;  %v5952_v0 = vld [vmem:[#allocation9 + $0xd8] sm:$0xf0] }
 0x580   : > { %4575 = vmatmul.bf16.vlgmr.msra.gmra.mxu3 %v8604_v31  ;;  %4581 = vmatpush.bf16.msrb.mxu0 %v6463_v33  ;;  %v7431_v60 = vld [vmem:[#allocation9 + $0x554] sm:$0xf0]  ;;  %v6654_v42 = vld [vmem:[#allocation9 + $0x648] sm:$0xf]  ;;  %v6399_v32 = vor.u32 %v7399_v19, %v6398_v57  ;;  %v7349_v57 = vld [vmem:[#allocation9 + $0x2cc] sm:$0xf] }
 0x581   : > { %4619 = vmatpush.bf16.msrb.mxu3 %v6863_v24  ;;  %4594 = vmatpush.bf16.msrb.mxu1 %v6591_v59  ;;  %v7463_v27 = vld [vmem:[#allocation9 + $0x654] sm:$0xf0]  ;;  %v6782_v26 = vld [vmem:[#allocation9 + $0x748] sm:$0xf]  ;;  %v6527_v24 = vor.u32 %v7431_v60, %v6526_v36  ;;  %v6208_v19 = vld [vmem:[#allocation9 + $0x2d8] sm:$0xf0] }
 0x582   : > { %v7495_v30 = vld [vmem:[#allocation9 + $0x754] sm:$0xf0]  ;;  %v6382_v16 = vld [vmem:[#allocation9 + $0x428] sm:$0xf]  ;;  %v6655_v6 = vor.u32 %v7463_v27, %v6654_v42  ;;  %v5955_v42 = vor.u32 %v7285_v38, %v5952_v0  ;;  %v6288_v38 = vld [vmem:[#allocation9 + $0x378] sm:$0xf0] }
 0x583   : > { %4607 = vmatpush.bf16.msrb.mxu2 %v6719_v46  ;;  %v7395_v44 = vld [vmem:[#allocation9 + $0x434] sm:$0xf0]  ;;  %v6783_v56 = vor.u32 %v7495_v30, %v6782_v26  ;;  %v6510_v62 = vld [vmem:[#allocation9 + $0x528] sm:$0xf]  ;;  %v7281_v30 = vld [vmem:[#allocation9 + $0xac] sm:$0xf] }
 0x584   : > { %4582 = vmatpush.bf16.msrb.mxu0 %v6447_v52  ;;  %v7427_v50 = vld [vmem:[#allocation9 + $0x534] sm:$0xf0]  ;;  %v6638_v33 = vld [vmem:[#allocation9 + $0x628] sm:$0xf]  ;;  %v6383_v15 = vor.u32 %v7395_v44, %v6382_v16  ;;  %v7313_v44 = vld [vmem:[#allocation9 + $0x1ac] sm:$0xf] }
 0x585   : > { %4620 = vmatpush.bf16.msrb.mxu3 %v6847_v28  ;;  %4595 = vmatpush.bf16.msrb.mxu1 %v6575_v7  ;;  %v7459_v59 = vld [vmem:[#allocation9 + $0x634] sm:$0xf0]  ;;  %v6766_v34 = vld [vmem:[#allocation9 + $0x728] sm:$0xf]  ;;  %v6511_v58 = vor.u32 %v7427_v50, %v6510_v62  ;;  %v6192_v50 = vld [vmem:[#allocation9 + $0x2b8] sm:$0xf0] }
 0x586   : > { %v7491_v41 = vld [vmem:[#allocation9 + $0x734] sm:$0xf0]  ;;  %v6366_v46 = vld [vmem:[#allocation9 + $0x408] sm:$0xf]  ;;  %v6639_v22 = vor.u32 %v7459_v59, %v6638_v33  ;;  %v7377_v33 = vld [vmem:[#allocation9 + $0x3ac] sm:$0xf] }
 0x587   : > { %4608 = vmatpush.bf16.msrb.mxu2 %v6703_v11  ;;  %v7391_v28 = vld [vmem:[#allocation9 + $0x414] sm:$0xf0]  ;;  %v6494_v49 = vld [vmem:[#allocation9 + $0x508] sm:$0xf]  ;;  %v6767_v52 = vor.u32 %v7491_v41, %v6766_v34  ;;  %v7289_v11 = vld [vmem:[#allocation9 + $0xec] sm:$0xf] }
 0x588   : > { %4583 = vmatpush.bf16.msrb.mxu0 %v6431_v61  ;;  %v7423_v1 = vld [vmem:[#allocation9 + $0x514] sm:$0xf0]  ;;  %v6622_v4 = vld [vmem:[#allocation9 + $0x608] sm:$0xf]  ;;  %v6367_v48 = vor.u32 %v7391_v28, %v6366_v46  ;;  %v6224_v61 = vld [vmem:[#allocation9 + $0x2f8] sm:$0xf0] }
 0x589   : > { %4621 = vmatpush.bf16.msrb.mxu3 %v6831_v13  ;;  %4596 = vmatpush.bf16.msrb.mxu1 %v6559_v54  ;;  %v7455_v7 = vld [vmem:[#allocation9 + $0x614] sm:$0xf0]  ;;  %v6750_v47 = vld [vmem:[#allocation9 + $0x708] sm:$0xf]  ;;  %v5968_v13 = vld [vmem:[#allocation9 + $0xf8] sm:$0xf0]  ;;  %v6495_v40 = vor.u32 %v7423_v1, %v6494_v49  ;;  %v6227_v23 = vor.u32 %v7353_v21, %v6224_v61 }
 0x58a   : > { %v7487_v9 = vld [vmem:[#allocation9 + $0x714] sm:$0xf0]  ;;  %v7385_v54 = vld [vmem:[#allocation9 + $0x3ec] sm:$0xf]  ;;  %v6623_v39 = vor.u32 %v7455_v7, %v6622_v4  ;;  %v6320_v59 = vld [vmem:[#allocation9 + $0x3b8] sm:$0xf0] }
 0x58b   : > { %4609 = vmatpush.bf16.msrb.mxu2 %v6687_v51  ;;  %v8639_v20 = vld [vmem:[%s8749_s30] sm:$0xf]  ;;  %v6751_v51 = vor.u32 %v7487_v9, %v6750_v47  ;;  %v6355_v35 = vor.u32 %v7385_v54, %v6352_v55  ;;  %v7277_v46 = vld [vmem:[#allocation9 + $0x8c] sm:$0xf]  ;;  %v5920_v28 = vld [vmem:[#allocation9 + $0x98] sm:$0xf0]  ;;  %v6323_v49 = vor.u32 %v7377_v33, %v6320_v59 }
 0x58c   : > { %4584 = vmatpush.bf16.msrb.mxu0 %v6415_v63  ;;  %v3032_v10 = vperm.slane %v8639_v20, 0  ;;  %v7317_v63 = vld [vmem:[#allocation9 + $0x1cc] sm:$0xf]  ;;  %v6048_v4 = vld [vmem:[#allocation9 + $0x198] sm:$0xf0]  ;;  %v5923_v18 = vor.u32 %v7277_v46, %v5920_v28 }
 0x58d   : > { %4622 = vmatpush.bf16.msrb.mxu3 %v6815_v14  ;;  %4597 = vmatpush.bf16.msrb.mxu1 %v6543_v25  ;;  %v5971_v14 = vor.u32 %v7289_v11, %v5968_v13  ;;  %v6080_v25 = vld [vmem:[#allocation9 + $0x1d8] sm:$0xf0]  ;;  %v7309_v1 = vld [vmem:[#allocation9 + $0x18c] sm:$0xf] }
 0x58e   : > { %v6083_v27 = vor.u32 %v7317_v63, %v6080_v25  ;;  %v6176_v47 = vld [vmem:[#allocation9 + $0x298] sm:$0xf0]  ;;  %v7373_v9 = vld [vmem:[#allocation9 + $0x38c] sm:$0xf]  ;;  %v6051_v21 = vor.u32 %v7309_v1, %v6048_v4 }
 0x58f   : > { %4610 = vmatpush.bf16.msrb.mxu2 %v6671_v45  ;;  %v7381_v45 = vld [vmem:[#allocation9 + $0x3cc] sm:$0xf]  ;;  %v6304_v11 = vld [vmem:[#allocation9 + $0x398] sm:$0xf0] }
 0x590   : > { %4585 = vmatpush.bf16.msrb.mxu0 %v6399_v32  ;;  %v5936_v32 = vld [vmem:[#allocation9 + $0xb8] sm:$0xf0]  ;;  %v6307_v55 = vor.u32 %v7373_v9, %v6304_v11  ;;  %v7297_v33 = vld [vmem:[#allocation9 + $0x12c] sm:$0xf] }
 0x591   : > { %4623 = vmatpush.bf16.msrb.mxu3 %v6799_v8  ;;  %4598 = vmatpush.bf16.msrb.mxu1 %v6527_v24  ;;  %v6336_v8 = vld [vmem:[#allocation9 + $0x3d8] sm:$0xf0]  ;;  %v6211_v24 = vor.u32 %v7349_v57, %v6208_v19  ;;  %v5939_v34 = vor.u32 %v7281_v30, %v5936_v32  ;;  %v7361_v28 = vld [vmem:[#allocation9 + $0x32c] sm:$0xf] }
 0x592   : > { %v6339_v16 = vor.u32 %v7381_v45, %v6336_v8  ;;  %v5904_v61 = vld [vmem:[#allocation9 + $0x78] sm:$0xf0]  ;;  %v7301_v45 = vld [vmem:[#allocation9 + $0x14c] sm:$0xf] }
 0x593   : > { %4611 = vmatpush.bf16.msrb.mxu2 %v6655_v6  ;;  %v6064_v6 = vld [vmem:[#allocation9 + $0x1b8] sm:$0xf0]  ;;  %v7325_v11 = vld [vmem:[#allocation9 + $0x20c] sm:$0xf] }
 0x594   : > { %4586 = vmatpush.bf16.msrb.mxu0 %v6383_v15  ;;  %v6067_v41 = vor.u32 %v7313_v44, %v6064_v6  ;;  %v5888_v63 = vld [vmem:[#allocation9 + $0x58] sm:$0xf0]  ;;  %v7265_v6 = vld [vmem:[#allocation9 + $0x2c] sm:$0xf] }
 0x595   : > { %4624 = vmatpush.bf16.msrb.mxu3 %v6783_v56  ;;  %4599 = vmatpush.bf16.msrb.mxu1 %v6511_v58  ;;  %v7345_v56 = vld [vmem:[#allocation9 + $0x2ac] sm:$0xf]  ;;  %v6016_v8 = vld [vmem:[#allocation9 + $0x158] sm:$0xf0] }
 0x596   : > { %v6195_v58 = vor.u32 %v7345_v56, %v6192_v50  ;;  %v5872_v56 = vld [vmem:[#allocation9 + $0x38] sm:$0xf0] }
 0x597   : > { %4612 = vmatpush.bf16.msrb.mxu2 %v6639_v22  ;;  %v4329_v36 = vpop.f32.mrf.mxu0  ;;  %v7341_v22 = vld [vmem:[#allocation9 + $0x28c] sm:$0xf]  ;;  %v6000_v59 = vld [vmem:[#allocation9 + $0x138] sm:$0xf0] }
 0x598   : > { %4587 = vmatpush.bf16.msrb.mxu0 %v6367_v48  ;;  %v4330_v60 = vadd.f32 %v4329_v36, %v3032_v10  ;;  %v4342_v26 = vpop.f32.mrf.mxu1  ;;  %v6179_v54 = vor.u32 %v7341_v22, %v6176_v47  ;;  %v7369_v10 = vld [vmem:[#allocation9 + $0x36c] sm:$0xf]  ;;  %v6128_v46 = vld [vmem:[#allocation9 + $0x238] sm:$0xf0]  ;;  %v6003_v1 = vor.u32 %v7297_v33, %v6000_v59 }
 0x599   : > { %4625 = vmatpush.bf16.msrb.mxu3 %v6767_v52  ;;  %4600 = vmatpush.bf16.msrb.mxu1 %v6495_v40  ;;  %v7273_v40 = vld [vmem:[#allocation9 + $0x6c] sm:$0xf]  ;;  %v6291_v19 = vor.u32 %v7369_v10, %v6288_v38  ;;  %v5856_v4 = vld [vmem:[#allocation9 + $0x18] sm:$0xf0] }
 0x59a   : > { %v4343_v62 = vadd.f32 %v4342_v26, %v4330_v60  ;;  %v5907_v0 = vor.u32 %v7273_v40, %v5904_v61  ;;  %v7333_v36 = vld [vmem:[#allocation9 + $0x24c] sm:$0xf]  ;;  %v6272_v26 = vld [vmem:[#allocation9 + $0x358] sm:$0xf0] }
 0x59b   : > { %4613 = vmatpush.bf16.msrb.mxu2 %v6623_v39  ;;  %4588 = vmatmul.bf16.vlgmr.msrb.gmra.mxu0 %v8614_v29  ;;  %v7305_v39 = vld [vmem:[#allocation9 + $0x16c] sm:$0xf]  ;;  %v6480_v40 = vld [vmem:[#allocation9 + $0x4f8] sm:$0xf0] }
 0x59c   : > { %4632 = vmatpush.bf16.msra.mxu0 %v5971_v14  ;;  %4601 = vmatmul.bf16.vlgmr.msrb.gmra.mxu1 %v8618_v3  ;;  %v4355_v15 = vpop.f32.mrf.mxu2  ;;  %v7337_v14 = vld [vmem:[#allocation9 + $0x26c] sm:$0xf]  ;;  %v6864_v38 = vld [vmem:[#allocation9 + $0x7f8] sm:$0xf0] }
 0x59d   : > { %4626 = vmatpush.bf16.msrb.mxu3 %v6751_v51  ;;  %4645 = vmatpush.bf16.msra.mxu1 %v6099_v2  ;;  %v4356_v52 = vadd.f32 %v4355_v15, %v4343_v62  ;;  %v4368_v7 = vpop.f32.mrf.mxu3  ;;  %v6032_v51 = vld [vmem:[#allocation9 + $0x178] sm:$0xf0]  ;;  %v7293_v22 = vld [vmem:[#allocation9 + $0x10c] sm:$0xf] }
 0x59e   : > { %4614 = vmatmul.bf16.vlgmr.msrb.gmra.mxu2 %v8612_v5  ;;  %v6160_v2 = vld [vmem:[#allocation9 + $0x278] sm:$0xf0]  ;;  %v7449_v61 = vld [vmem:[#allocation9 + $0x5ec] sm:$0xf] }
 0x59f   : > { %4658 = vmatpush.bf16.msra.mxu2 %v6227_v23  ;;  %v4331_v13 = vpop.f32.mrf.mxu0  ;;  %v4369_v53 = vadd.f32 %v4368_v7, %v4356_v52  ;;  %v6035_v23 = vor.u32 %v7305_v39, %v6032_v51  ;;  %v6163_v57 = vor.u32 %v7337_v14, %v6160_v2  ;;  %v6256_v15 = vld [vmem:[#allocation9 + $0x338] sm:$0xf0]  ;;  %v7513_v10 = vld [vmem:[#allocation9 + $0x7ec] sm:$0xf] }
 0x5a0   : > { %4627 = vmatmul.bf16.vlgmr.msrb.gmra.mxu3 %v8616_v12  ;;  %4633 = vmatpush.bf16.msra.mxu0 %v5955_v42  ;;  %v4344_v48 = vpop.f32.mrf.mxu1  ;;  %v6144_v42 = vld [vmem:[#allocation9 + $0x258] sm:$0xf0]  ;;  %v6259_v9 = vor.u32 %v7361_v28, %v6256_v15  ;;  %v7441_v33 = vld [vmem:[#allocation9 + $0x5ac] sm:$0xf] }
 0x5a1   : > { %4671 = vmatpush.bf16.msra.mxu3 %v6355_v35  ;;  %4646 = vmatpush.bf16.msra.mxu1 %v6083_v27  ;;  %v7269_v35 = vld [vmem:[#allocation9 + $0x4c] sm:$0xf]  ;;  %v6147_v62 = vor.u32 %v7333_v36, %v6144_v42  ;;  %v5984_v52 = vld [vmem:[#allocation9 + $0x118] sm:$0xf0] }
 0x5a2   : > { %v7365_v27 = vld [vmem:[#allocation9 + $0x34c] sm:$0xf]  ;;  %v6112_v13 = vld [vmem:[#allocation9 + $0x218] sm:$0xf0]  ;;  %v5987_v14 = vor.u32 %v7293_v22, %v5984_v52 }
 0x5a3   : > { %4659 = vmatpush.bf16.msra.mxu2 %v6211_v24  ;;  %v5891_v24 = vor.u32 %v7269_v35, %v5888_v63  ;;  %v6275_v50 = vor.u32 %v7365_v27, %v6272_v26  ;;  %v7417_v48 = vld [vmem:[#allocation9 + $0x4ec] sm:$0xf]  ;;  %v6736_v2 = vld [vmem:[#allocation9 + $0x6f8] sm:$0xf0] }
 0x5a4   : > { %4634 = vmatpush.bf16.msra.mxu0 %v5939_v34  ;;  %v4357_v25 = vpop.f32.mrf.mxu2  ;;  %v7329_v34 = vld [vmem:[#allocation9 + $0x22c] sm:$0xf]  ;;  %v6483_v63 = vor.u32 %v7417_v48, %v6480_v40  ;;  %v6720_v27 = vld [vmem:[#allocation9 + $0x6d8] sm:$0xf0] }
 0x5a5   : > { %4672 = vmatpush.bf16.msra.mxu3 %v6339_v16  ;;  %4647 = vmatpush.bf16.msra.mxu1 %v6067_v41  ;;  %v4370_v60 = vpop.f32.mrf.mxu3  ;;  %v6019_v16 = vor.u32 %v7301_v45, %v6016_v8  ;;  %v6131_v47 = vor.u32 %v7329_v34, %v6128_v46  ;;  %v6867_v8 = vor.u32 %v7513_v10, %v6864_v38  ;;  %v7445_v36 = vld [vmem:[#allocation9 + $0x5cc] sm:$0xf]  ;;  %v6576_v59 = vld [vmem:[#allocation9 + $0x5b8] sm:$0xf0] }
 0x5a6   : > { %v6592_v60 = vld [vmem:[#allocation9 + $0x5d8] sm:$0xf0]  ;;  %v7477_v42 = vld [vmem:[#allocation9 + $0x6cc] sm:$0xf] }
 0x5a7   : > { %4660 = vmatpush.bf16.msra.mxu2 %v6195_v58  ;;  %v4381_v30 = vpop.f32.mrf.mxu0  ;;  %v7261_v58 = vld [vmem:[#allocation9 + $0xc] sm:$0xf]  ;;  %v6704_v46 = vld [vmem:[#allocation9 + $0x6b8] sm:$0xf0] }
 0x5a8   : > { %4635 = vmatpush.bf16.msra.mxu0 %v5923_v18  ;;  %v4382_v32 = vadd.f32 %v4381_v30, %v4369_v53  ;;  %v4394_v44 = vpop.f32.mrf.mxu1  ;;  %v7357_v53 = vld [vmem:[#allocation9 + $0x30c] sm:$0xf]  ;;  %v5859_v51 = vor.u32 %v7261_v58, %v5856_v4  ;;  %v6848_v30 = vld [vmem:[#allocation9 + $0x7d8] sm:$0xf0] }
 0x5a9   : > { %4673 = vmatpush.bf16.msra.mxu3 %v6323_v49  ;;  %4648 = vmatpush.bf16.msra.mxu1 %v6051_v21  ;;  %v5875_v49 = vor.u32 %v7265_v6, %v5872_v56  ;;  %v6240_v21 = vld [vmem:[#allocation9 + $0x318] sm:$0xf0]  ;;  %v7509_v26 = vld [vmem:[#allocation9 + $0x7cc] sm:$0xf] }
 0x5aa   : > { %v8646_v41 = vadd.f32 %v4394_v44, %v4382_v32  ;;  %v6243_v35 = vor.u32 %v7357_v53, %v6240_v21  ;;  %v7409_v44 = vld [vmem:[#allocation9 + $0x4ac] sm:$0xf]  ;;  %v6448_v6 = vld [vmem:[#allocation9 + $0x4b8] sm:$0xf0] }
 0x5ab   : > { %4661 = vmatpush.bf16.msra.mxu2 %v6179_v54  ;;  %v6608_v54 = vld [vmem:[#allocation9 + $0x5f8] sm:$0xf0]  ;;  %v7473_v34 = vld [vmem:[#allocation9 + $0x6ac] sm:$0xf]  ;;  %v6451_v58 = vor.u32 %v7409_v44, %v6448_v6 }
 0x5ac   : > { %4636 = vmatpush.bf16.msra.mxu0 %v5907_v0  ;;  %v8648_v7 = vpop.f32.mrf.mxu2  ;;  %v6611_v25 = vor.u32 %v7449_v61, %v6608_v54  ;;  %v7505_v28 = vld [vmem:[#allocation9 + $0x7ac] sm:$0xf]  ;;  %v6832_v15 = vld [vmem:[#allocation9 + $0x7b8] sm:$0xf0]  ;;  %v6707_v22 = vor.u32 %v7473_v34, %v6704_v46 }
 0x5ad   : > { %4674 = vmatpush.bf16.msra.mxu3 %v6307_v55  ;;  %4649 = vmatpush.bf16.msra.mxu1 %v6035_v23  ;;  %v8650_v18 = vpop.f32.mrf.mxu3  ;;  %v7481_v55 = vld [vmem:[#allocation9 + $0x6ec] sm:$0xf]  ;;  %v6115_v23 = vor.u32 %v7325_v11, %v6112_v13  ;;  %v6432_v4 = vld [vmem:[#allocation9 + $0x498] sm:$0xf0]  ;;  %v6835_v52 = vor.u32 %v7505_v28, %v6832_v15  ;;  %v3033_v28 = vperm.slane %v8639_v20, 1 }
 0x5ae   : > { %v6739_v45 = vor.u32 %v7481_v55, %v6736_v2  ;;  %v6688_v11 = vld [vmem:[#allocation9 + $0x698] sm:$0xf0]  ;;  %v7501_v13 = vld [vmem:[#allocation9 + $0x78c] sm:$0xf] }
 0x5af   : > { %4662 = vmatpush.bf16.msra.mxu2 %v6163_v57  ;;  %v4383_v39 = vpop.f32.mrf.mxu0  ;;  %v7413_v57 = vld [vmem:[#allocation9 + $0x4cc] sm:$0xf]  ;;  %v6416_v48 = vld [vmem:[#allocation9 + $0x478] sm:$0xf0] }
 0x5b0   : > { %4637 = vmatpush.bf16.msra.mxu0 %v5891_v24  ;;  %v4396_v0 = vpop.f32.mrf.mxu1  ;;  %v7401_v21 = vld [vmem:[#allocation9 + $0x46c] sm:$0xf]  ;;  %v6544_v39 = vld [vmem:[#allocation9 + $0x578] sm:$0xf0] }
 0x5b1   : > { %4675 = vmatpush.bf16.msra.mxu3 %v6291_v19  ;;  %4650 = vmatpush.bf16.msra.mxu1 %v6019_v16  ;;  %v6464_v19 = vld [vmem:[#allocation9 + $0x4d8] sm:$0xf0]  ;;  %v6595_v16 = vor.u32 %v7445_v36, %v6592_v60  ;;  %v7433_v55 = vld [vmem:[#allocation9 + $0x56c] sm:$0xf]  ;;  %v6419_v38 = vor.u32 %v7401_v21, %v6416_v48  ;;  %v7531_v48 = vld [vmem:[#allocation10 + $0x74] sm:$0xf0] }
 0x5b2   : > { %v6467_v24 = vor.u32 %v7413_v57, %v6464_v19  ;;  %v7497_v2 = vld [vmem:[#allocation9 + $0x76c] sm:$0xf]  ;;  %v6800_v10 = vld [vmem:[#allocation9 + $0x778] sm:$0xf0]  ;;  %v6547_v0 = vor.u32 %v7433_v55, %v6544_v39 }
 0x5b3   : > { %4663 = vmatpush.bf16.msra.mxu2 %v6147_v62  ;;  %v6723_v62 = vor.u32 %v7477_v42, %v6720_v27  ;;  %v7429_v57 = vld [vmem:[#allocation9 + $0x54c] sm:$0xf]  ;;  %v6528_v19 = vld [vmem:[#allocation9 + $0x558] sm:$0xf0] }
 0x5b4   : > { %4638 = vmatpush.bf16.msra.mxu0 %v5875_v49  ;;  %v4409_v32 = vpop.f32.mrf.mxu2  ;;  %v6579_v49 = vor.u32 %v7441_v33, %v6576_v59  ;;  %v6656_v36 = vld [vmem:[#allocation9 + $0x658] sm:$0xf0]  ;;  %v7493_v60 = vld [vmem:[#allocation9 + $0x74c] sm:$0xf] }
 0x5b5   : > { %4676 = vmatpush.bf16.msra.mxu3 %v6275_v50  ;;  %4651 = vmatpush.bf16.msra.mxu1 %v6003_v1  ;;  %v4422_v56 = vpop.f32.mrf.mxu3  ;;  %v6851_v50 = vor.u32 %v7509_v26, %v6848_v30  ;;  %v7405_v1 = vld [vmem:[#allocation9 + $0x48c] sm:$0xf]  ;;  %v6784_v42 = vld [vmem:[#allocation9 + $0x758] sm:$0xf0]  ;;  %v6531_v32 = vor.u32 %v7429_v57, %v6528_v19  ;;  %v6910_v19 = vld [vmem:[#allocation10 + $0x50] sm:$0xf] }
 0x5b6   : > { %v7425_v44 = vld [vmem:[#allocation9 + $0x52c] sm:$0xf]  ;;  %v6640_v59 = vld [vmem:[#allocation9 + $0x638] sm:$0xf0] }
 0x5b7   : > { %4664 = vmatpush.bf16.msra.mxu2 %v6131_v47  ;;  %v6560_v47 = vld [vmem:[#allocation9 + $0x598] sm:$0xf0]  ;;  %v7457_v33 = vld [vmem:[#allocation9 + $0x62c] sm:$0xf] }
 0x5b8   : > { %4639 = vmatpush.bf16.msra.mxu0 %v5859_v51  ;;  %v8656_v53 = vpop.f32.mrf.mxu0  ;;  %v7465_v51 = vld [vmem:[#allocation9 + $0x66c] sm:$0xf]  ;;  %v6768_v46 = vld [vmem:[#allocation9 + $0x738] sm:$0xf0] }
 0x5b9   : > { %4677 = vmatpush.bf16.msra.mxu3 %v6259_v9  ;;  %4652 = vmatpush.bf16.msra.mxu1 %v5987_v14  ;;  %v7469_v9 = vld [vmem:[#allocation9 + $0x68c] sm:$0xf]  ;;  %v6672_v14 = vld [vmem:[#allocation9 + $0x678] sm:$0xf0] }
 0x5ba   : > { %v8658_v40 = vpop.f32.mrf.mxu1  ;;  %v6691_v61 = vor.u32 %v7469_v9, %v6688_v11  ;;  %v7489_v34 = vld [vmem:[#allocation9 + $0x72c] sm:$0xf]  ;;  %v6624_v9 = vld [vmem:[#allocation9 + $0x618] sm:$0xf0] }
 0x5bb   : > { %4665 = vmatpush.bf16.msra.mxu2 %v6115_v23  ;;  %4640 = vmatmul.bf16.vlgmr.msra.gmra.mxu0 %v8602_v17  ;;  %v6816_v17 = vld [vmem:[#allocation9 + $0x798] sm:$0xf0]  ;;  %v7397_v23 = vld [vmem:[#allocation9 + $0x44c] sm:$0xf] }
 0x5bc   : > { %4684 = vmatpush.bf16.msrb.mxu0 %v6483_v63  ;;  %4653 = vmatmul.bf16.vlgmr.msra.gmra.mxu1 %v8606_v43  ;;  %v6819_v54 = vor.u32 %v7501_v13, %v6816_v17  ;;  %v6675_v63 = vor.u32 %v7465_v51, %v6672_v14  ;;  %v7485_v13 = vld [vmem:[#allocation9 + $0x70c] sm:$0xf]  ;;  %v6752_v17 = vld [vmem:[#allocation9 + $0x718] sm:$0xf0] }
 0x5bd   : > { %4678 = vmatpush.bf16.msra.mxu3 %v6243_v35  ;;  %4697 = vmatpush.bf16.msrb.mxu1 %v6611_v25  ;;  %v6400_v35 = vld [vmem:[#allocation9 + $0x458] sm:$0xf0]  ;;  %v6803_v25 = vor.u32 %v7497_v2, %v6800_v10  ;;  %v6755_v14 = vor.u32 %v7485_v13, %v6752_v17 }
 0x5be   : > { %4666 = vmatmul.bf16.vlgmr.msra.gmra.mxu2 %v8600_v37  ;;  %v7437_v37 = vld [vmem:[#allocation9 + $0x58c] sm:$0xf]  ;;  %v6403_v30 = vor.u32 %v7397_v23, %v6400_v35  ;;  %v7529_v23 = vld [vmem:[#allocation10 + $0x64] sm:$0xf0]  ;;  %v6982_v35 = vld [vmem:[#allocation10 + $0xe0] sm:$0xf] }
 0x5bf   : > { %4710 = vmatpush.bf16.msrb.mxu2 %v6739_v45  ;;  %v6563_v43 = vor.u32 %v7437_v37, %v6560_v47  ;;  %v7461_v45 = vld [vmem:[#allocation9 + $0x64c] sm:$0xf]  ;;  %v6496_v37 = vld [vmem:[#allocation9 + $0x518] sm:$0xf0] }
 0x5c0   : > { %4679 = vmatmul.bf16.vlgmr.msra.gmra.mxu3 %v8604_v31  ;;  %4685 = vmatpush.bf16.msrb.mxu0 %v6467_v24  ;;  %v6435_v31 = vor.u32 %v7405_v1, %v6432_v4  ;;  %v4435_v26 = vpop.f32.mrf.mxu0  ;;  %v7393_v24 = vld [vmem:[#allocation9 + $0x42c] sm:$0xf]  ;;  %v6659_v56 = vor.u32 %v7461_v45, %v6656_v36  ;;  %v6368_v1 = vld [vmem:[#allocation9 + $0x418] sm:$0xf0]  ;;  %v6974_v45 = vld [vmem:[#allocation10 + $0xd0] sm:$0xf] }
 0x5c1   : > { %4723 = vmatpush.bf16.msrb.mxu3 %v6867_v8  ;;  %4698 = vmatpush.bf16.msrb.mxu1 %v6595_v16  ;;  %v8660_v8 = vpop.f32.mrf.mxu2  ;;  %v6384_v16 = vld [vmem:[#allocation9 + $0x438] sm:$0xf0]  ;;  %v7421_v4 = vld [vmem:[#allocation9 + $0x50c] sm:$0xf]  ;;  %v7543_v36 = vld [vmem:[#allocation10 + $0xd4] sm:$0xf0] }
 0x5c2   : > { %v4448_v6 = vpop.f32.mrf.mxu1  ;;  %v6387_v15 = vor.u32 %v7393_v24, %v6384_v16  ;;  %v7453_v47 = vld [vmem:[#allocation9 + $0x60c] sm:$0xf]  ;;  %v6499_v39 = vor.u32 %v7421_v4, %v6496_v37  ;;  %v6975_v26 = vor.u32 %v7543_v36, %v6974_v45  ;;  %v7541_v24 = vld [vmem:[#allocation10 + $0xc4] sm:$0xf0]  ;;  %v7563_v16 = vld [vmem:[#allocation10 + $0x174] sm:$0xf0] }
 0x5c3   : > { %4711 = vmatpush.bf16.msrb.mxu2 %v6723_v62  ;;  %v8662_v27 = vpop.f32.mrf.mxu3  ;;  %v6787_v62 = vor.u32 %v7493_v60, %v6784_v42  ;;  %v6627_v51 = vor.u32 %v7453_v47, %v6624_v9  ;;  %v6950_v4 = vld [vmem:[#allocation10 + $0xa0] sm:$0xf]  ;;  %v7038_v37 = vld [vmem:[#allocation10 + $0x150] sm:$0xf]  ;;  %v7559_v47 = vld [vmem:[#allocation10 + $0x154] sm:$0xf0] }
 0x5c4   : > { %4686 = vmatpush.bf16.msrb.mxu0 %v6451_v58  ;;  %v7546_v45 = vld [vmem:[#allocation10 + $0xf4] sm:$0xf]  ;;  %v6992_v36 = vld [vmem:[#allocation10 + $0xf8] sm:$0xf0] }
 0x5c5   : > { %4724 = vmatpush.bf16.msrb.mxu3 %v6851_v50  ;;  %4699 = vmatpush.bf16.msrb.mxu1 %v6579_v49  ;;  %v6512_v50 = vld [vmem:[#allocation9 + $0x538] sm:$0xf0]  ;;  %v7389_v49 = vld [vmem:[#allocation9 + $0x40c] sm:$0xf] }
 0x5c6   : > { %v6515_v58 = vor.u32 %v7425_v44, %v6512_v50  ;;  %v6371_v55 = vor.u32 %v7389_v49, %v6368_v1  ;;  %v6886_v49 = vld [vmem:[#allocation10 + $0x20] sm:$0xf]  ;;  %v7521_v1 = vld [vmem:[#allocation10 + $0x24] sm:$0xf0] }
 0x5c7   : > { %4712 = vmatpush.bf16.msrb.mxu2 %v6707_v22  ;;  %v6643_v22 = vor.u32 %v7457_v33, %v6640_v59  ;;  %v7046_v59 = vld [vmem:[#allocation10 + $0x160] sm:$0xf] }
 0x5c8   : > { %4687 = vmatpush.bf16.msrb.mxu0 %v6435_v31  ;;  %v6926_v31 = vld [vmem:[#allocation10 + $0x70] sm:$0xf] }
 0x5c9   : > { %4725 = vmatpush.bf16.msrb.mxu3 %v6835_v52  ;;  %4700 = vmatpush.bf16.msrb.mxu1 %v6563_v43  ;;  %v6771_v52 = vor.u32 %v7489_v34, %v6768_v46  ;;  %v4461_v11 = vpop.f32.mrf.mxu2  ;;  %v4434_v43 = vadd.f32 %v8656_v53, %v3033_v28  ;;  %v6927_v2 = vor.u32 %v7531_v48, %v6926_v31  ;;  %v7545_v53 = vld [vmem:[#allocation10 + $0xe4] sm:$0xf0]  ;;  %v6878_v48 = vld [vmem:[#allocation10 + $0x10] sm:$0xf] }
 0x5ca   : > { %v7561_v34 = vld [vmem:[#allocation10 + $0x164] sm:$0xf0]  ;;  %v7039_v11 = vor.u32 %v7559_v47, %v7038_v37  ;;  %v4408_v31 = vadd.f32 %v8648_v7, %v8646_v41  ;;  %v7524_v47 = vld [vmem:[#allocation10 + $0x44] sm:$0xf] }
 0x5cb   : > { %4713 = vmatpush.bf16.msrb.mxu2 %v6691_v61  ;;  %v4474_v21 = vpop.f32.mrf.mxu3  ;;  %v6990_v61 = vld [vmem:[#allocation10 + $0xf0] sm:$0xf]  ;;  %v7047_v46 = vor.u32 %v7561_v34, %v7046_v59  ;;  %v7526_v34 = vld [vmem:[#allocation10 + $0x54] sm:$0xf] }
 0x5cc   : > { %4688 = vmatpush.bf16.msrb.mxu0 %v6419_v38  ;;  %v4447_v38 = vadd.f32 %v8658_v40, %v4434_v43  ;;  %v7527_v40 = vld [vmem:[#allocation10 + $0x54] sm:$0xf0]  ;;  %v6887_v43 = vor.u32 %v7521_v1, %v6886_v49  ;;  %v6998_v49 = vld [vmem:[#allocation10 + $0x100] sm:$0xf]  ;;  %v7549_v1 = vld [vmem:[#allocation10 + $0x104] sm:$0xf0] }
 0x5cd   : > { %4726 = vmatpush.bf16.msrb.mxu3 %v6819_v54  ;;  %4701 = vmatpush.bf16.msrb.mxu1 %v6547_v0  ;;  %v7547_v54 = vld [vmem:[#allocation10 + $0xf4] sm:$0xf0]  ;;  %v6918_v0 = vld [vmem:[#allocation10 + $0x60] sm:$0xf]  ;;  %v6911_v42 = vor.u32 %v7527_v40, %v6910_v19  ;;  %v6928_v40 = vld [vmem:[#allocation10 + $0x78] sm:$0xf0] }
 0x5ce   : > { %v6991_v10 = vor.u32 %v7547_v54, %v6990_v61  ;;  %v4460_v57 = vadd.f32 %v8660_v8, %v4447_v38  ;;  %v7525_v8 = vld [vmem:[#allocation10 + $0x44] sm:$0xf0]  ;;  %v7519_v61 = vld [vmem:[#allocation10 + $0x14] sm:$0xf0]  ;;  %v6942_v54 = vld [vmem:[#allocation10 + $0x90] sm:$0xf] }
 0x5cf   : > { %4714 = vmatpush.bf16.msrb.mxu2 %v6675_v63  ;;  %v6919_v63 = vor.u32 %v7529_v23, %v6918_v0  ;;  %v6870_v38 = vld [vmem:[#allocation10] sm:$0xf]  ;;  %v4421_v0 = vadd.f32 %v8650_v18, %v4408_v31  ;;  %v6879_v41 = vor.u32 %v7519_v61, %v6878_v48  ;;  %v7517_v23 = vld [vmem:[#allocation10 + $0x4] sm:$0xf0]  ;;  %v7555_v19 = vld [vmem:[#allocation10 + $0x134] sm:$0xf0] }
 0x5d0   : > { %4689 = vmatpush.bf16.msrb.mxu0 %v6403_v30  ;;  %v4473_v60 = vadd.f32 %v8662_v27, %v4460_v57  ;;  %v6902_v30 = vld [vmem:[#allocation10 + $0x40] sm:$0xf]  ;;  %v7539_v27 = vld [vmem:[#allocation10 + $0xb4] sm:$0xf0]  ;;  %v7022_v57 = vld [vmem:[#allocation10 + $0x130] sm:$0xf]  ;;  %v6871_v18 = vor.u32 %v7517_v23, %v6870_v38 }
 0x5d1   : > { %4727 = vmatpush.bf16.msrb.mxu3 %v6803_v25  ;;  %4702 = vmatpush.bf16.msrb.mxu1 %v6531_v32  ;;  %v6983_v25 = vor.u32 %v7545_v53, %v6982_v35  ;;  %v6966_v32 = vld [vmem:[#allocation10 + $0xc0] sm:$0xf]  ;;  %v6903_v6 = vor.u32 %v7525_v8, %v6902_v30  ;;  %v7533_v53 = vld [vmem:[#allocation10 + $0x84] sm:$0xf0]  ;;  %v4736_v30 = vmax.f32 %v4421_v0, 0.0 }
 0x5d2   : > { %v6934_v35 = vld [vmem:[#allocation10 + $0x80] sm:$0xf]  ;;  %v7522_v48 = vld [vmem:[#allocation10 + $0x34] sm:$0xf]  ;;  %v6896_v61 = vld [vmem:[#allocation10 + $0x38] sm:$0xf0] }
 0x5d3   : > { %4715 = vmatpush.bf16.msrb.mxu2 %v6659_v56  ;;  %v6894_v56 = vld [vmem:[#allocation10 + $0x30] sm:$0xf]  ;;  %v6935_v8 = vor.u32 %v7533_v53, %v6934_v35  ;;  %v6899_v38 = vor.u32 %v7522_v48, %v6896_v61  ;;  %v7536_v23 = vld [vmem:[#allocation10 + $0xa4] sm:$0xf]  ;;  %v6952_v35 = vld [vmem:[#allocation10 + $0xa8] sm:$0xf0] }
 0x5d4   : > { %4690 = vmatpush.bf16.msrb.mxu0 %v6387_v15  ;;  %v7558_v53 = vld [vmem:[#allocation10 + $0x154] sm:$0xf]  ;;  %v7577_v48 = vld [vmem:[#allocation10 + $0x1e4] sm:$0xf0] }
 0x5d5   : > { %4728 = vmatpush.bf16.msrb.mxu3 %v6787_v62  ;;  %4703 = vmatpush.bf16.msrb.mxu1 %v6515_v58  ;;  %v6958_v62 = vld [vmem:[#allocation10 + $0xb0] sm:$0xf] }
 0x5d6   : > { %v6959_v58 = vor.u32 %v7539_v27, %v6958_v62  ;;  %v7006_v62 = vld [vmem:[#allocation10 + $0x110] sm:$0xf] }
 0x5d7   : > { %4716 = vmatpush.bf16.msrb.mxu2 %v6643_v22  ;;  %v7537_v22 = vld [vmem:[#allocation10 + $0xa4] sm:$0xf0] }
 0x5d8   : > { %4691 = vmatpush.bf16.msrb.mxu0 %v6371_v55  ;;  %v4485_v44 = vpop.f32.mrf.mxu0  ;;  %v6951_v21 = vor.u32 %v7537_v22, %v6950_v4  ;;  %v7562_v4 = vld [vmem:[#allocation10 + $0x174] sm:$0xf]  ;;  %v7056_v22 = vld [vmem:[#allocation10 + $0x178] sm:$0xf0] }
 0x5d9   : > { %4729 = vmatpush.bf16.msrb.mxu3 %v6771_v52  ;;  %4704 = vmatpush.bf16.msrb.mxu1 %v6499_v39  ;;  %v4486_v50 = vadd.f32 %v4485_v44, %v4473_v60  ;;  %v4498_v33 = vpop.f32.mrf.mxu1  ;;  %v7535_v39 = vld [vmem:[#allocation10 + $0x94] sm:$0xf0]  ;;  %v6920_v44 = vld [vmem:[#allocation10 + $0x68] sm:$0xf0]  ;;  %v7059_v31 = vor.u32 %v7562_v4, %v7056_v22 }
 0x5da   : > { %v6943_v7 = vor.u32 %v7535_v39, %v6942_v54  ;;  %v7538_v54 = vld [vmem:[#allocation10 + $0xb4] sm:$0xf]  ;;  %v6960_v39 = vld [vmem:[#allocation10 + $0xb8] sm:$0xf0] }
 0x5db   : > { %4717 = vmatpush.bf16.msrb.mxu2 %v6627_v51  ;;  %4692 = vmatmul.bf16.vlgmr.msrb.gmra.mxu0 %v8614_v29  ;;  %v7054_v29 = vld [vmem:[#allocation10 + $0x170] sm:$0xf]  ;;  %v4499_v28 = vadd.f32 %v4498_v33, %v4486_v50  ;;  %v7030_v51 = vld [vmem:[#allocation10 + $0x140] sm:$0xf]  ;;  %v7551_v50 = vld [vmem:[#allocation10 + $0x114] sm:$0xf0]  ;;  %v8678_v33 = vpack.c.bf16 %v4736_v30, %v4736_v30  ;;  %v6963_v0 = vor.u32 %v7538_v54, %v6960_v39 }
 0x5dc   : > { %5134 = vmatpush.bf16.msra.mxu0 %v6927_v2  ;;  %4705 = vmatmul.bf16.vlgmr.msrb.gmra.mxu1 %v8618_v3  ;;  %v7055_v3 = vor.u32 %v7563_v16, %v7054_v29  ;;  %v7528_v29 = vld [vmem:[#allocation10 + $0x64] sm:$0xf]  ;;  %v7014_v16 = vld [vmem:[#allocation10 + $0x120] sm:$0xf]  ;;  %v6944_v30 = vld [vmem:[#allocation10 + $0x98] sm:$0xf0] }
 0x5dd   : > { %4730 = vmatpush.bf16.msrb.mxu3 %v6755_v14  ;;  %5147 = vmatpush.bf16.msra.mxu1 %v6991_v10  ;;  %v7557_v14 = vld [vmem:[#allocation10 + $0x144] sm:$0xf0]  ;;  %v6923_v27 = vor.u32 %v7528_v29, %v6920_v44  ;;  %v3034_v29 = vperm.slane %v8639_v20, 2  ;;  %v7516_v44 = vld [vmem:[#allocation10 + $0x4] sm:$0xf] }
 0x5de   : > { %4718 = vmatmul.bf16.vlgmr.msrb.gmra.mxu2 %v8612_v5  ;;  %v6967_v5 = vor.u32 %v7541_v24, %v6966_v32  ;;  %v7031_v2 = vor.u32 %v7557_v14, %v7030_v51  ;;  %v6995_v24 = vor.u32 %v7546_v45, %v6992_v36  ;;  %v7560_v14 = vld [vmem:[#allocation10 + $0x164] sm:$0xf]  ;;  %v6955_v45 = vor.u32 %v7536_v23, %v6952_v35  ;;  %v7518_v36 = vld [vmem:[#allocation10 + $0x14] sm:$0xf]  ;;  %v7575_v39 = vld [vmem:[#allocation10 + $0x1d4] sm:$0xf0] }
 0x5df   : > { %5160 = vmatpush.bf16.msra.mxu2 %v7055_v3  ;;  %v7553_v3 = vld [vmem:[#allocation10 + $0x124] sm:$0xf0]  ;;  %v7086_v23 = vld [vmem:[#allocation10 + $0x1b0] sm:$0xf]  ;;  %v7571_v35 = vld [vmem:[#allocation10 + $0x1b4] sm:$0xf0] }
 0x5e0   : > { %4731 = vmatmul.bf16.vlgmr.msrb.gmra.mxu3 %v8616_v12  ;;  %5135 = vmatpush.bf16.msra.mxu0 %v6919_v63  ;;  %v7523_v12 = vld [vmem:[#allocation10 + $0x34] sm:$0xf0]  ;;  %v4487_v17 = vpop.f32.mrf.mxu0  ;;  %v7530_v63 = vld [vmem:[#allocation10 + $0x74] sm:$0xf] }
 0x5e1   : > { %5148 = vmatpush.bf16.msra.mxu1 %v6983_v25  ;;  %v6895_v15 = vor.u32 %v7523_v12, %v6894_v56  ;;  %v4511_v52 = vpop.f32.mrf.mxu2  ;;  %v4500_v55 = vpop.f32.mrf.mxu1  ;;  %v6931_v32 = vor.u32 %v7530_v63, %v6928_v40  ;;  %v7015_v56 = vor.u32 %v7553_v3, %v7014_v16  ;;  %v6999_v17 = vor.u32 %v7549_v1, %v6998_v49  ;;  %v7040_v63 = vld [vmem:[#allocation10 + $0x158] sm:$0xf0]  ;;  %v7579_v1 = vld [vmem:[#allocation10 + $0x1f4] sm:$0xf0] }
 0x5e2   : > { %v4512_v13 = vadd.f32 %v4511_v52, %v4499_v28  ;;  %v7542_v28 = vld [vmem:[#allocation10 + $0xd4] sm:$0xf] }
 0x5e3   : > { %5161 = vmatpush.bf16.msra.mxu2 %v7047_v46  ;;  %v4524_v9 = vpop.f32.mrf.mxu3  ;;  %v6912_v46 = vld [vmem:[#allocation10 + $0x58] sm:$0xf0] }
 0x5e4   : > { %5136 = vmatpush.bf16.msra.mxu0 %v6911_v42  ;;  %v4525_v10 = vadd.f32 %v4524_v9, %v4512_v13  ;;  %v7023_v42 = vor.u32 %v7555_v19, %v7022_v57  ;;  %v6915_v52 = vor.u32 %v7526_v34, %v6912_v46  ;;  %v6904_v9 = vld [vmem:[#allocation10 + $0x48] sm:$0xf0]  ;;  %v7043_v57 = vor.u32 %v7558_v53, %v7040_v63 }
 0x5e5   : > { %5149 = vmatpush.bf16.msra.mxu1 %v6975_v26  ;;  %v6968_v13 = vld [vmem:[#allocation10 + $0xc8] sm:$0xf0] }
 0x5e6   : > { %v4737_v26 = vmax.f32 %v4525_v10, 0.0 }
 0x5e7   : > { %5162 = vmatpush.bf16.msra.mxu2 %v7039_v11  ;;  %v7540_v11 = vld [vmem:[#allocation10 + $0xc4] sm:$0xf] }
 0x5e8   : > { %5137 = vmatpush.bf16.msra.mxu0 %v6903_v6  ;;  %v7544_v6 = vld [vmem:[#allocation10 + $0xe4] sm:$0xf]  ;;  %v8676_v12 = vpack.c.bf16 %v4737_v26, %v4737_v26 }
 0x5e9   : > { %5150 = vmatpush.bf16.msra.mxu1 %v6967_v5  ;;  %v4513_v25 = vpop.f32.mrf.mxu2  ;;  %v6984_v5 = vld [vmem:[#allocation10 + $0xe8] sm:$0xf0] }
 0x5ea   : > { %v6987_v59 = vor.u32 %v7544_v6, %v6984_v5  ;;  %v6872_v6 = vld [vmem:[#allocation10 + $0x8] sm:$0xf0]  ;;  %v7532_v5 = vld [vmem:[#allocation10 + $0x84] sm:$0xf] }
 0x5eb   : > { %5163 = vmatpush.bf16.msra.mxu2 %v7031_v2  ;;  %v4526_v60 = vpop.f32.mrf.mxu3  ;;  %v7048_v2 = vld [vmem:[#allocation10 + $0x168] sm:$0xf0]  ;;  %v6875_v20 = vor.u32 %v7516_v44, %v6872_v6  ;;  %v7576_v6 = vld [vmem:[#allocation10 + $0x1e4] sm:$0xf] }
 0x5ec   : > { %5138 = vmatpush.bf16.msra.mxu0 %v6895_v15  ;;  %v6976_v15 = vld [vmem:[#allocation10 + $0xd8] sm:$0xf0]  ;;  %v7051_v10 = vor.u32 %v7560_v14, %v7048_v2 }
 0x5ed   : > { %5151 = vmatpush.bf16.msra.mxu1 %v6959_v58  ;;  %v7007_v58 = vor.u32 %v7551_v50, %v7006_v62  ;;  %v6979_v37 = vor.u32 %v7542_v28, %v6976_v15  ;;  %v6880_v60 = vld [vmem:[#allocation10 + $0x18] sm:$0xf0]  ;;  %v7554_v62 = vld [vmem:[#allocation10 + $0x134] sm:$0xf]  ;;  %v7552_v28 = vld [vmem:[#allocation10 + $0x124] sm:$0xf] }
 0x5ee   : > { %v6883_v16 = vor.u32 %v7518_v36, %v6880_v60  ;;  %v7024_v50 = vld [vmem:[#allocation10 + $0x138] sm:$0xf0]  ;;  %v7016_v15 = vld [vmem:[#allocation10 + $0x128] sm:$0xf0] }
 0x5ef   : > { %5164 = vmatpush.bf16.msra.mxu2 %v7023_v42  ;;  %v7534_v42 = vld [vmem:[#allocation10 + $0x94] sm:$0xf]  ;;  %v7019_v22 = vor.u32 %v7552_v28, %v7016_v15  ;;  %v7572_v15 = vld [vmem:[#allocation10 + $0x1c4] sm:$0xf] }
 0x5f0   : > { %5139 = vmatpush.bf16.msra.mxu0 %v6887_v43  ;;  %v6907_v43 = vor.u32 %v7524_v47, %v6904_v9  ;;  %v6947_v3 = vor.u32 %v7534_v42, %v6944_v30  ;;  %v7008_v47 = vld [vmem:[#allocation10 + $0x118] sm:$0xf0]  ;;  %v7070_v30 = vld [vmem:[#allocation10 + $0x190] sm:$0xf] }
 0x5f1   : > { %5152 = vmatpush.bf16.msra.mxu1 %v6951_v21  ;;  %v6971_v21 = vor.u32 %v7540_v11, %v6968_v13  ;;  %v7548_v13 = vld [vmem:[#allocation10 + $0x104] sm:$0xf] }
 0x5f3   : > { %5165 = vmatpush.bf16.msra.mxu2 %v7015_v56  ;;  %v6936_v56 = vld [vmem:[#allocation10 + $0x88] sm:$0xf0] }
 0x5f4   : > { %5140 = vmatpush.bf16.msra.mxu0 %v6879_v41  ;;  %v7520_v41 = vld [vmem:[#allocation10 + $0x24] sm:$0xf]  ;;  %v6939_v49 = vor.u32 %v7532_v5, %v6936_v56  ;;  %v7112_v5 = vld [vmem:[#allocation10 + $0x1e8] sm:$0xf0] }
 0x5f5   : > { %5153 = vmatpush.bf16.msra.mxu1 %v6943_v7  ;;  %v6888_v7 = vld [vmem:[#allocation10 + $0x28] sm:$0xf0] }
 0x5f6   : > { %v6891_v40 = vor.u32 %v7520_v41, %v6888_v7 }
 0x5f7   : > { %5166 = vmatpush.bf16.msra.mxu2 %v7007_v58  ;;  %v7118_v58 = vld [vmem:[#allocation10 + $0x1f0] sm:$0xf] }
 0x5f8   : > { %5141 = vmatpush.bf16.msra.mxu0 %v6871_v18  ;;  %v4537_v55 = vpop.f32.mrf.mxu0  ;;  %v7119_v4 = vor.u32 %v7579_v1, %v7118_v58  ;;  %v7096_v58 = vld [vmem:[#allocation10 + $0x1c8] sm:$0xf0] }
 0x5f9   : > { %5154 = vmatpush.bf16.msra.mxu1 %v6935_v8  ;;  %v4550_v51 = vpop.f32.mrf.mxu1  ;;  %v7556_v8 = vld [vmem:[#allocation10 + $0x144] sm:$0xf]  ;;  %v4538_v34 = vadd.f32 %v4537_v55, %v3034_v29  ;;  %v7102_v55 = vld [vmem:[#allocation10 + $0x1d0] sm:$0xf] }
 0x5fa   : > { %5173 = vmatpush.bf16.msra.mxu3 %v7119_v4  ;;  %v7103_v2 = vor.u32 %v7575_v39, %v7102_v55  ;;  %v7570_v4 = vld [vmem:[#allocation10 + $0x1b4] sm:$0xf]  ;;  %v7064_v55 = vld [vmem:[#allocation10 + $0x188] sm:$0xf0] }
 0x5fb   : > { %5142 = vmatmul.bf16.vlgmr.msra.gmra.mxu0 %v8678_v33  ;;  %5167 = vmatpush.bf16.msra.mxu2 %v6999_v17  ;;  %v7000_v17 = vld [vmem:[#allocation10 + $0x108] sm:$0xf0] }
 0x5fc   : > { %5186 = vmatpush.bf16.msrb.mxu0 %v6931_v32  ;;  %5155 = vmatmul.bf16.vlgmr.msra.gmra.mxu1 %v8676_v12  ;;  %v7032_v32 = vld [vmem:[#allocation10 + $0x148] sm:$0xf0] }
 0x5fd   : > { %5199 = vmatpush.bf16.msrb.mxu1 %v6995_v24  ;;  %v7035_v24 = vor.u32 %v7556_v8, %v7032_v32  ;;  %v7062_v32 = vld [vmem:[#allocation10 + $0x180] sm:$0xf] }
 0x5ff   : > { %5212 = vmatpush.bf16.msrb.mxu2 %v7059_v31  ;;  %v7003_v31 = vor.u32 %v7548_v13, %v7000_v17 }
 0x600   : > { %5187 = vmatpush.bf16.msrb.mxu0 %v6923_v27  ;;  %v4539_v26 = vpop.f32.mrf.mxu0 }
 0x601   : > { %5200 = vmatpush.bf16.msrb.mxu1 %v6987_v59  ;;  %v4563_v25 = vpop.f32.mrf.mxu2  ;;  %v4552_v18 = vpop.f32.mrf.mxu1  ;;  %v7027_v59 = vor.u32 %v7554_v62, %v7024_v50  ;;  %v7115_v62 = vor.u32 %v7576_v6, %v7112_v5  ;;  %v7587_v6 = vld [vmem:[#allocation12 + $0x38] sm:$0xff] }
 0x602   : > { %v7567_v18 = vld [vmem:[#allocation10 + $0x194] sm:$0xf0] }
 0x603   : > { %5213 = vmatpush.bf16.msrb.mxu2 %v7051_v10  ;;  %v4576_v19 = vpop.f32.mrf.mxu3  ;;  %v7071_v8 = vor.u32 %v7567_v18, %v7070_v30  ;;  %v7595_v5 = vld [vmem:[#allocation12 + $0x78] sm:$0xff] }
 0x604   : > { %5188 = vmatpush.bf16.msrb.mxu0 %v6915_v52  ;;  %v4551_v52 = vadd.f32 %v4550_v51, %v4538_v34 }
 0x605   : > { %5201 = vmatpush.bf16.msrb.mxu1 %v6979_v37  ;;  %v7550_v37 = vld [vmem:[#allocation10 + $0x114] sm:$0xf] }
 0x606   : > { %v7011_v9 = vor.u32 %v7550_v37, %v7008_v47  ;;  %v4564_v11 = vadd.f32 %v4563_v25, %v4551_v52  ;;  %v7737_v37 = vld [vmem:[%s8749_s30] sm:$0xf] }
 0x607   : > { %5214 = vmatpush.bf16.msrb.mxu2 %v7043_v57  ;;  %v7087_v57 = vor.u32 %v7571_v35, %v7086_v23  ;;  %v3035_v47 = vperm.slane %v7737_v37, 3  ;;  %v7589_v37 = vld [vmem:[#allocation12 + $0x48] sm:$0xff] }
 0x608   : > { %5189 = vmatpush.bf16.msrb.mxu0 %v6907_v43  ;;  %v4577_v43 = vadd.f32 %v4576_v19, %v4564_v11  ;;  %v7080_v11 = vld [vmem:[#allocation10 + $0x1a8] sm:$0xf0] }
 0x609   : > { %5202 = vmatpush.bf16.msrb.mxu1 %v6971_v21  ;;  %v4565_v27 = vpop.f32.mrf.mxu2  ;;  %v7110_v21 = vld [vmem:[#allocation10 + $0x1e0] sm:$0xf] }
 0x60a   : > { %v7111_v54 = vor.u32 %v7577_v48, %v7110_v21  ;;  %v7574_v27 = vld [vmem:[#allocation10 + $0x1d4] sm:$0xf]  ;;  %v7072_v21 = vld [vmem:[#allocation10 + $0x198] sm:$0xf0] }
 0x60b   : > { %5215 = vmatpush.bf16.msrb.mxu2 %v7035_v24  ;;  %v4578_v46 = vpop.f32.mrf.mxu3  ;;  %v7565_v24 = vld [vmem:[#allocation10 + $0x184] sm:$0xf0] }
 0x60c   : > { %5190 = vmatpush.bf16.msrb.mxu0 %v6899_v38  ;;  %5174 = vmatpush.bf16.msra.mxu3 %v7111_v54  ;;  %v7573_v38 = vld [vmem:[#allocation10 + $0x1c4] sm:$0xf0]  ;;  %v7063_v29 = vor.u32 %v7565_v24, %v7062_v32  ;;  %v7564_v54 = vld [vmem:[#allocation10 + $0x184] sm:$0xf] }
 0x60d   : > { %5203 = vmatpush.bf16.msrb.mxu1 %v6963_v0 }
 0x60f   : > { %5216 = vmatpush.bf16.msrb.mxu2 %v7027_v59  ;;  %v7104_v59 = vld [vmem:[#allocation10 + $0x1d8] sm:$0xf0] }
 0x610   : > { %5191 = vmatpush.bf16.msrb.mxu0 %v6891_v40  ;;  %5175 = vmatpush.bf16.msra.mxu3 %v7103_v2  ;;  %v7078_v40 = vld [vmem:[#allocation10 + $0x1a0] sm:$0xf]  ;;  %v7107_v34 = vor.u32 %v7574_v27, %v7104_v59 }
 0x611   : > { %5204 = vmatpush.bf16.msrb.mxu1 %v6955_v45  ;;  %v7569_v45 = vld [vmem:[#allocation10 + $0x1a4] sm:$0xf0]  ;;  %v7584_v59 = vld [vmem:[#allocation12 + $0x20] sm:$0xff] }
 0x612   : > { %v7079_v42 = vor.u32 %v7569_v45, %v7078_v40  ;;  %v4808_v40 = vld [vmem:[%s8750_s5] sm:$0x3] }
 0x613   : > { %5217 = vmatpush.bf16.msrb.mxu2 %v7019_v22  ;;  %v7088_v22 = vld [vmem:[#allocation10 + $0x1b8] sm:$0xf0]  ;;  %v4810_v45 = vperm.slane %v4808_v40, 0 }
 0x614   : > { %5192 = vmatpush.bf16.msrb.mxu0 %v6883_v16  ;;  %v7578_v16 = vld [vmem:[#allocation10 + $0x1f4] sm:$0xf]  ;;  %v7091_v52 = vor.u32 %v7570_v4, %v7088_v22  ;;  %v7592_v4 = vld [vmem:[#allocation12 + $0x60] sm:$0xff]  ;;  %v7591_v22 = vld [vmem:[#allocation12 + $0x58] sm:$0xff] }
 0x615   : > { %5205 = vmatpush.bf16.msrb.mxu1 %v6947_v3  ;;  %v7120_v3 = vld [vmem:[#allocation10 + $0x1f8] sm:$0xf0] }
 0x616   : > { %v7123_v44 = vor.u32 %v7578_v16, %v7120_v3 }
 0x617   : > { %5218 = vmatpush.bf16.msrb.mxu2 %v7011_v9  ;;  %v7568_v9 = vld [vmem:[#allocation10 + $0x1a4] sm:$0xf] }
 0x618   : > { %5193 = vmatpush.bf16.msrb.mxu0 %v6875_v20  ;;  %v4589_v61 = vpop.f32.mrf.mxu0  ;;  %v7083_v17 = vor.u32 %v7568_v9, %v7080_v11 }
 0x619   : > { %5206 = vmatpush.bf16.msrb.mxu1 %v6939_v49  ;;  %v4590_v51 = vadd.f32 %v4589_v61, %v4577_v43  ;;  %v4602_v14 = vpop.f32.mrf.mxu1  ;;  %v7099_v49 = vor.u32 %v7572_v15, %v7096_v58  ;;  %v7566_v43 = vld [vmem:[#allocation10 + $0x194] sm:$0xf] }
 0x61a   : > { %v7075_v61 = vor.u32 %v7566_v43, %v7072_v21 }
 0x61b   : > { %5194 = vmatmul.bf16.vlgmr.msrb.gmra.mxu0 %v8678_v33  ;;  %5219 = vmatpush.bf16.msrb.mxu2 %v7003_v31  ;;  %v4603_v10 = vadd.f32 %v4602_v14, %v4590_v51  ;;  %v7094_v33 = vld [vmem:[#allocation10 + $0x1c0] sm:$0xf]  ;;  %v7067_v51 = vor.u32 %v7564_v54, %v7064_v55 }
 0x61c   : > { %5207 = vmatmul.bf16.vlgmr.msrb.gmra.mxu1 %v8676_v12  ;;  %v7095_v0 = vor.u32 %v7573_v38, %v7094_v33  ;;  %5374 = vmatpush.bf16.msra.mxu0 %v7587_v6 }
 0x61d   : > { %5387 = vmatpush.bf16.msra.mxu1 %v7595_v5 }
 0x61e   : > { %5176 = vmatpush.bf16.msra.mxu3 %v7095_v0 }
 0x620   : > { %v4591_v53 = vpop.f32.mrf.mxu0 }
 0x621   : > { %v4615_v12 = vpop.f32.mrf.mxu2  ;;  %v4604_v25 = vpop.f32.mrf.mxu1 }
 0x622   : > { %v4616_v41 = vadd.f32 %v4615_v12, %v4603_v10  ;;  %5177 = vmatpush.bf16.msra.mxu3 %v7087_v57 }
 0x623   : > { %v4628_v7 = vpop.f32.mrf.mxu3 }
 0x624   : > { %v4629_v63 = vadd.f32 %v4628_v7, %v4616_v41 }
 0x626   : > { %v4738_v19 = vmax.f32 %v4629_v63, 0.0  ;;  %5178 = vmatpush.bf16.msra.mxu3 %v7079_v42 }
 0x628   : > { %v4742_v36 = vpack.c.bf16 %v4738_v19, %v4738_v19 }
 0x629   : > { %v4617_v60 = vpop.f32.mrf.mxu2 }
 0x62a   : > { %5168 = vmatmul.bf16.vlgmr.msra.gmra.mxu2 %v4742_v36  ;;  %5179 = vmatpush.bf16.msra.mxu3 %v7071_v8  ;;  %v4811_v8 = vperm.slane %v4808_v40, 1 }
 0x62b   : > { %v4630_v26 = vpop.f32.mrf.mxu3 }
 0x62e   : > { %5180 = vmatpush.bf16.msra.mxu3 %v7063_v29 }
 0x632   : > { %5225 = vmatpush.bf16.msrb.mxu3 %v7123_v44 }
 0x636   : > { %5226 = vmatpush.bf16.msrb.mxu3 %v7115_v62  ;;  %v7594_v62 = vld [vmem:[#allocation12 + $0x70] sm:$0xff] }
 0x637   : > { %5388 = vmatpush.bf16.msra.mxu1 %v7594_v62 }
 0x638   : > { %v4641_v56 = vpop.f32.mrf.mxu0 }
 0x639   : > { %v4654_v50 = vpop.f32.mrf.mxu1  ;;  %v4642_v48 = vadd.f32 %v4641_v56, %v3035_v47  ;;  %v7586_v56 = vld [vmem:[#allocation12 + $0x30] sm:$0xff]  ;;  %v7588_v47 = vld [vmem:[#allocation12 + $0x40] sm:$0xff] }
 0x63a   : > { %5220 = vmatmul.bf16.vlgmr.msrb.gmra.mxu2 %v4742_v36  ;;  %5227 = vmatpush.bf16.msrb.mxu3 %v7107_v34  ;;  %v7583_v34 = vld [vmem:[#allocation12 + $0x18] sm:$0xff] }
 0x63b   : > { %v4655_v39 = vadd.f32 %v4654_v50, %v4642_v48  ;;  %5375 = vmatpush.bf16.msra.mxu0 %v7586_v56  ;;  %v7585_v50 = vld [vmem:[#allocation12 + $0x28] sm:$0xff] }
 0x63e   : > { %5228 = vmatpush.bf16.msrb.mxu3 %v7099_v49  ;;  %v7593_v49 = vld [vmem:[#allocation12 + $0x68] sm:$0xff] }
 0x63f   : > { %5376 = vmatpush.bf16.msra.mxu0 %v7585_v50  ;;  %5389 = vmatpush.bf16.msra.mxu1 %v7593_v49 }
 0x640   : > { %v4643_v20 = vpop.f32.mrf.mxu0 }
 0x641   : > { %v4667_v46 = vpop.f32.mrf.mxu2  ;;  %v4656_v1 = vpop.f32.mrf.mxu1  ;;  %v7581_v20 = vld [vmem:[#allocation12 + $0x8] sm:$0xff] }
 0x642   : > { %5229 = vmatpush.bf16.msrb.mxu3 %v7091_v52  ;;  %v4668_v14 = vadd.f32 %v4667_v46, %v4655_v39  ;;  %v7580_v1 = vld [vmem:[#allocation12] sm:$0xff]  ;;  %v7590_v52 = vld [vmem:[#allocation12 + $0x50] sm:$0xff] }
 0x643   : > { %v4680_v28 = vpop.f32.mrf.mxu3  ;;  %5377 = vmatpush.bf16.msra.mxu0 %v7584_v59  ;;  %5390 = vmatpush.bf16.msra.mxu1 %v7592_v4 }
 0x644   : > { %v4681_v2 = vadd.f32 %v4680_v28, %v4668_v14  ;;  %v7582_v28 = vld [vmem:[#allocation12 + $0x10] sm:$0xff] }
 0x646   : > { %5230 = vmatpush.bf16.msrb.mxu3 %v7083_v17 }
 0x647   : > { %5378 = vmatpush.bf16.msra.mxu0 %v7583_v34  ;;  %5391 = vmatpush.bf16.msra.mxu1 %v7591_v22 }
 0x649   : > { %v4669_v13 = vpop.f32.mrf.mxu2 }
 0x64a   : > { %5231 = vmatpush.bf16.msrb.mxu3 %v7075_v61 }
 0x64b   : > { %v4682_v31 = vpop.f32.mrf.mxu3  ;;  %5379 = vmatpush.bf16.msra.mxu0 %v7582_v28  ;;  %5392 = vmatpush.bf16.msra.mxu1 %v7590_v52 }
 0x64e   : > { %5232 = vmatpush.bf16.msrb.mxu3 %v7067_v51 }
 0x64f   : > { %5380 = vmatpush.bf16.msra.mxu0 %v7581_v20  ;;  %5393 = vmatpush.bf16.msra.mxu1 %v7589_v37 }
 0x653   : > { %5381 = vmatpush.bf16.msra.mxu0 %v7580_v1  ;;  %5394 = vmatpush.bf16.msra.mxu1 %v7588_v47 }
 0x658   : > { %v4693_v10 = vpop.f32.mrf.mxu0 }
 0x659   : > { %v4706_v33 = vpop.f32.mrf.mxu1  ;;  %v4694_v38 = vadd.f32 %v4693_v10, %v4681_v2  ;;  %v7736_v2 = vld [vmem:[%s8751_s9] ss:$0 sm:$0xff] }
 0x65b   : > { %v4707_v12 = vadd.f32 %v4706_v33, %v4694_v38 }
 0x660   : > { %v4695_v23 = vpop.f32.mrf.mxu0 }
 0x661   : > { %v4719_v0 = vpop.f32.mrf.mxu2  ;;  %v4708_v35 = vpop.f32.mrf.mxu1 }
 0x662   : > { %v4720_v7 = vadd.f32 %v4719_v0, %v4707_v12 }
 0x663   : > { %v4732_v41 = vpop.f32.mrf.mxu3 }
 0x664   : > { %v4733_v53 = vadd.f32 %v4732_v41, %v4720_v7 }
 0x666   : > { %v4739_v63 = vmax.f32 %v4733_v53, 0.0 }
 0x668   : > { %v4743_v25 = vpack.c.bf16 %v4739_v63, %v4739_v63 }
 0x669   : > { %v4721_v57 = vpop.f32.mrf.mxu2 }
 0x66a   : > { %5181 = vmatmul.bf16.vlgmr.msra.gmra.mxu3 %v4743_v25 }
 0x66b   : > { %v4734_v19 = vpop.f32.mrf.mxu3 }
 0x678   : > { %v5143_v36 = vpop.f32.mrf.mxu0 }
 0x679   : > { %v5156_v60 = vpop.f32.mrf.mxu1  ;;  %v5144_v42 = vadd.f32 %v5143_v36, %v4810_v45 }
 0x67a   : > { %5233 = vmatmul.bf16.vlgmr.msrb.gmra.mxu3 %v4743_v25 }
 0x67b   : > { %v5157_v26 = vadd.f32 %v5156_v60, %v5144_v42 }
 0x680   : > { %v5145_v30 = vpop.f32.mrf.mxu0 }
 0x681   : > { %v5158_v18 = vpop.f32.mrf.mxu1 }
 0x698   : > { %v5195_v32 = vpop.f32.mrf.mxu0 }
 0x699   : > { %v5208_v24 = vpop.f32.mrf.mxu1  ;;  %v5196_v29 = vadd.f32 %v5195_v32, %v4811_v8 }
 0x69b   : > { %v5209_v16 = vadd.f32 %v5208_v24, %v5196_v29 }
 0x6a0   : > { %v5197_v3 = vpop.f32.mrf.mxu0 }
 0x6a1   : > { %v5210_v44 = vpop.f32.mrf.mxu1 }
 0x6ad   : > { %v5169_v27 = vpop.f32.mrf.mxu2 }
 0x6ae   : > { %v5170_v9 = vadd.f32 %v5169_v27, %v5157_v26 }
 0x6b5   : > { %v5171_v46 = vpop.f32.mrf.mxu2 }
 0x6bd   : > { %v5221_v15 = vpop.f32.mrf.mxu2 }
 0x6be   : > { %v5222_v21 = vadd.f32 %v5221_v15, %v5209_v16 }
 0x6c5   : > { %v5223_v58 = vpop.f32.mrf.mxu2 }
 0x6ed   : > { %v5182_v11 = vpop.f32.mrf.mxu3 }
 0x6ee   : > { %v5183_v13 = vadd.f32 %v5182_v11, %v5170_v9 }
 0x6f0   : > { %v5238_v17 = vmax.f32 %v5183_v13, 0.0 }
 0x6f2   : > { %v5240_v31 = vpack.c.bf16 %v5238_v17, %v5238_v17 }
 0x6f4   : > { %5382 = vmatmul.bf16.vlgmr.msra.gmra.mxu0 %v5240_v31 }
 0x6f5   : > { %v5184_v43 = vpop.f32.mrf.mxu3 }
 0x6fd   : > { %v5234_v48 = vpop.f32.mrf.mxu3 }
 0x6fe   : > { %v5235_v61 = vadd.f32 %v5234_v48, %v5222_v21 }
 0x700   : > { %v5239_v54 = vmax.f32 %v5235_v61, 0.0 }
 0x702   : > { %v5241_v55 = vpack.c.bf16 %v5239_v54, %v5239_v54 }
 0x704   : > { %5395 = vmatmul.bf16.vlgmr.msra.gmra.mxu1 %v5241_v55 }
 0x705   : > { %v5236_v39 = vpop.f32.mrf.mxu3 }
 0x771   : > { %v5383_v51 = vpop.f32.mrf.mxu0 }
 0x772   : > { %v5384_v10 = vadd.f32 %v7736_v2, %v5383_v51 }
 0x779   : > { %v5385_v14 = vpop.f32.mrf.mxu0 }
 0x781   : > { %v5396_v33 = vpop.f32.mrf.mxu1 }
 0x782   : > { %v5397_v38 = vadd.f32 %v5396_v33, %v5384_v10 }
 0x784   : > { %5400 = vst [vmem:[#allocation13] sm:$0x3] %v5397_v38 }
 0x789   : > { %v5398_v12 = vpop.f32.mrf.mxu1 }
 0x78a PF: > { %s8752_s16 = sadd.s32 4294967295, %s7970_s29   ;;  %s8753_s18 = sld [smem:[#allocation27_spill]] }
 0x78b   : > { %p7659_p1 = scmp.eq.s32.totalorder %s8752_s16, 1  ;;  %s7986_s13 = smov [#allocation13]  }
 0x78c   : > { %s5409_s20 = sshll.u32 %s7986_s13, 4  ;;  %s5410_s20 = int_to_ptr.vmem [resolvable:$true] %s5409_s20 }
 0x790   : > { %s5411_s19 = sshll.u32 %s8753_s18, 4  ;;  %s5412_s19 = int_to_ptr.hbm [resolvable:$true] %s5411_s19 }
 0x791   : > { %7630 = dma.vmem_to_hbm [thread:$0]  (%p7659_p1), %s5410_s20, 32, %s5412_s19, [#allocation6]  }
 0x792   : > { %7949 = dma.done.wait (%p7659_p1), [#allocation6], 32  }
 0x793   : > { %7951 = vsyncadd (%p7659_p1), [#allocation6], 4294967264 }
 0x794 PF: > { %s27_s29 = sadd.s32 1, %s7970_s29   ;;  %s8754_s10 = sld [smem:[#allocation19_spill]] }
 0x795   : > { %p24_p2 = scmp.ge.s32.totalorder %s27_s29, 4   ;;  %s8755_s8 = sld [smem:[#allocation18_spill]] }
 0x796   : > { %s8756_s25 = smov %s7958_s26  ;;  %s8758_s27 = smov %s7966_s28 }
 0x797   :  { %26 = sbr.rel (!%p24_p2) target bundleno = 15 (0xf), region = 180 }
 0x79a   : > { %s8757_s26 = smov %s8754_s10 }
 0x79b   : > { %s8759_s28 = smov %s8755_s8 }
 0x79c   :  { %5425 = vsyncpa [#allocation5], 1 }
 0x79d   :  { %5427 = vsyncpa [#allocation5 + $0x1], 1 }
 0x79e   :  { %5428 = vsyncpa [#allocation8], 1 }
 0x79f   :  { %5429 = vsyncpa [#allocation11], 1 }
 0x7a0   :  { %5430 = vsyncpa [#allocation6], 1 }
 0x7a1   :  { %5432 = vsyncpa [#allocation6 + $0x1], 1 }

</bundles_post_ra>
